<compile_context>
chip_gen: v7x
topology: tpu7x:2x2x1
jax: 0.10.0
libtpu: 0.0.40
codegen_flags: <defaults>
</compile_context>

<pallas_src>
import functools

import jax
import jax.numpy as jnp
from jax.experimental import pallas as pl
from jax.experimental.pallas import tpu as pltpu

# ----------------------------- small problem sizes -----------------------------
MEM = 128         # memSize (512 in the original); 128 keeps the lane axis dense
NUM_CLASSES = 10  # num_classes (61 in the original)
SEQ = 4           # seqLen
BATCH = 2
H = W = 8
P = H * W
IN_C_RGB = 3
IN_C_FLOW = 2


# =============================== Pallas kernels ================================
def _xgate_attn_kernel(feat_ref, wfc_ref, wfcT_ref, bfc_ref, wx_ref, b_ref, xg_ref,
                       *, n, p, mem):
    """RGB stream, one frame per grid step: CAM spatial attention (attentionModel)
    followed by the x-side ConvLSTM gate matmul (attended_feat @ Wx + b)."""
    feat3 = feat_ref[...]                                    # (N, P, MEM) f32
    pooled = jnp.mean(feat3, axis=1)                         # (N, MEM)  avgpool
    logits = (jnp.dot(pooled, wfcT_ref[...],
                      preferred_element_type=jnp.float32)
              + bfc_ref[...])                                # (N, classes)
    nc = logits.shape[-1]
    maxv = jnp.max(logits, axis=-1, keepdims=True)
    iota = jax.lax.broadcasted_iota(jnp.int32, logits.shape, 1)
    idx = jnp.min(jnp.where(logits == maxv, iota, nc), axis=-1, keepdims=True)
    onehot = (iota == idx).astype(jnp.float32)               # top-1 class one-hot
    wsel = jnp.dot(onehot, wfc_ref[...],
                   preferred_element_type=jnp.float32)       # (N, MEM) selected fc row
    cam = jnp.sum(feat3 * wsel[:, None, :], axis=-1)         # (N, P) class activation
    cam = cam - jnp.max(cam, axis=-1, keepdims=True)
    e = jnp.exp(cam)
    attn = e * pl.reciprocal(jnp.sum(e, axis=-1, keepdims=True), approx=True)
    attended = (feat3 * attn[:, :, None]).reshape(n * p, mem)
    xg_ref[...] = (jnp.dot(attended.astype(jnp.bfloat16), wx_ref[...],
                           preferred_element_type=jnp.float32)
                   + b_ref[...])                             # (N*P, 4*MEM) f32


def _xgate_plain_kernel(feat_ref, wx_ref, b_ref, xg_ref, *, n, p, mem):
    """Flow stream (noAttentionModel), one frame per grid step: feat @ Wx + b."""
    feat = feat_ref[...].reshape(n * p, mem)
    xg_ref[...] = (jnp.dot(feat.astype(jnp.bfloat16), wx_ref[...],
                           preferred_element_type=jnp.float32)
                   + b_ref[...])


def _recurrence_kernel(xg_ref, wh_ref, o_ref, h_ref, c_ref, *, seq, n, p, mem):
    """ConvLSTM recurrence, grid=(stream, t).  Streams are independent ("parallel",
    so v7x runs them on both TensorCores); only h @ Wh + gate elementwise math sits
    on the sequential t axis.  xg for step t streams in via its BlockSpec."""
    t = pl.program_id(1)

    @pl.when(t == 0)
    def _init():
        h_ref[...] = jnp.zeros_like(h_ref)
        c_ref[...] = jnp.zeros_like(c_ref)

    gates = xg_ref[...] + jnp.dot(h_ref[...].astype(jnp.bfloat16), wh_ref[...],
                                  preferred_element_type=jnp.float32)
    # gate column layout (i, f, o, g): one contiguous sigmoid slice.  sigmoid via
    # tanh is a single EUP op (vs exp + reciprocal) -> less pressure on the EUP slot.
    sig = 0.5 * (jnp.tanh(0.5 * gates[:, :3 * mem]) + 1.0)
    i = sig[:, :mem]
    f = sig[:, mem:2 * mem]
    o = sig[:, 2 * mem:3 * mem]
    g = jnp.tanh(gates[:, 3 * mem:])
    c_new = f * c_ref[...] + i * g
    h_new = o * jnp.tanh(c_new)
    h_ref[...] = h_new
    c_ref[...] = c_new

    @pl.when(t == seq - 1)
    def _finalize():
        # spatial average pool of the final hidden state -> (N, MEM)
        o_ref[...] = jnp.mean(h_new.reshape(n, p, mem), axis=1)


# ================================ glue / wrappers ==============================
def backbone_features(x_tnchw, w_bb, b_bb):
    """Stand-in backbone: NCHW -> channels-last, per-pixel linear + ReLU (XLA).
    One-off, lane-sparse (C_in=2/3) work kept out of the Pallas kernels."""
    seq, n, c_in, hh, ww = x_tnchw.shape
    x = jnp.transpose(x_tnchw, (0, 1, 3, 4, 2)).reshape(seq, n, hh * ww, c_in)
    return jax.nn.relu(jnp.einsum('snpc,cm->snpm', x, w_bb) + b_bb)   # (S,N,P,MEM) f32


def compute_xgates(feat, params, use_attention):
    """Batched precompute of the x-side gates for all frames: grid=(SEQ,), parallel."""
    seq, n, p, mem = feat.shape
    npix = n * p
    wx = params["wx"].astype(jnp.bfloat16)
    b = params["b_lstm"].reshape(1, -1)

    if use_attention:
        wfc = params["w_fc_res"]
        wfcT = wfc.T
        bfc = params["b_fc_res"].reshape(1, -1)
        kernel = functools.partial(_xgate_attn_kernel, n=n, p=p, mem=mem)
        args = [feat, wfc, wfcT, bfc, wx, b]
        in_specs = [
            pl.BlockSpec((None, n, p, mem), lambda t: (t, 0, 0, 0)),
            pl.BlockSpec(wfc.shape, lambda t: (0, 0)),
            pl.BlockSpec(wfcT.shape, lambda t: (0, 0)),
            pl.BlockSpec(bfc.shape, lambda t: (0, 0)),
            pl.BlockSpec(wx.shape, lambda t: (0, 0)),
            pl.BlockSpec(b.shape, lambda t: (0, 0)),
        ]
    else:
        kernel = functools.partial(_xgate_plain_kernel, n=n, p=p, mem=mem)
        args = [feat, wx, b]
        in_specs = [
            pl.BlockSpec((None, n, p, mem), lambda t: (t, 0, 0, 0)),
            pl.BlockSpec(wx.shape, lambda t: (0, 0)),
            pl.BlockSpec(b.shape, lambda t: (0, 0)),
        ]

    return pl.pallas_call(
        kernel,
        out_shape=jax.ShapeDtypeStruct((seq, npix, 4 * mem), jnp.float32),
        grid_spec=pltpu.PrefetchScalarGridSpec(
            num_scalar_prefetch=0,
            grid=(seq,),
            in_specs=in_specs,
            out_specs=pl.BlockSpec((None, npix, 4 * mem), lambda t: (t, 0, 0)),
        ),
        compiler_params=pltpu.CompilerParams(dimension_semantics=("parallel",)),
    )(*args)


def run_recurrence(xg_stack, wh_stack, seq, n, p, mem):
    """Both streams' ConvLSTM recurrences in one pallas_call, grid=(2, SEQ)."""
    npix = n * p
    return pl.pallas_call(
        functools.partial(_recurrence_kernel, seq=seq, n=n, p=p, mem=mem),
        out_shape=jax.ShapeDtypeStruct((2, n, mem), jnp.float32),
        grid_spec=pltpu.PrefetchScalarGridSpec(
            num_scalar_prefetch=0,
            grid=(2, seq),
            in_specs=[
                # xg streamed per (stream, timestep): only one step resident (x2 buf)
                pl.BlockSpec((None, None, npix, 4 * mem), lambda s, t: (s, t, 0, 0)),
                # per-stream recurrent weight, resident across the t axis
                pl.BlockSpec((None, mem, 4 * mem), lambda s, t: (s, 0, 0)),
            ],
            out_specs=pl.BlockSpec((None, n, mem), lambda s, t: (s, 0, 0)),
            scratch_shapes=[
                pltpu.VMEM((npix, mem), jnp.float32),   # h state (per core)
                pltpu.VMEM((npix, mem), jnp.float32),   # c state (per core)
            ],
        ),
        compiler_params=pltpu.CompilerParams(
            dimension_semantics=("parallel", "arbitrary")),
    )(xg_stack, wh_stack)


def two_stream_forward(frames, flow, params):
    # backbone projections (XLA, one-off, lane-sparse)
    feat_flow = backbone_features(flow, params["flow"]["w_bb"], params["flow"]["b_bb"])
    feat_rgb = backbone_features(frames, params["rgb"]["w_bb"], params["rgb"]["b_bb"])

    # batched x-side gate precompute (Pallas, per-frame grid)
    xg_flow = compute_xgates(feat_flow, params["flow"], use_attention=False)
    xg_rgb = compute_xgates(feat_rgb, params["rgb"], use_attention=True)

    # stacked sequential recurrence (Pallas, streams parallel / time arbitrary)
    xg_stack = jnp.stack([xg_flow, xg_rgb], axis=0)            # (2, SEQ, N*P, 4*MEM)
    wh_stack = jnp.stack([params["flow"]["wh"],
                          params["rgb"]["wh"]], axis=0).astype(jnp.bfloat16)
    seq, n, p, mem = feat_flow.shape
    feats = run_recurrence(xg_stack, wh_stack, seq, n, p, mem)  # (2, N, MEM)

    # classifier head: concat(flow, rgb) -> Dropout(0.5) eval-mode identity -> fc2.
    # Tiny GEMM, done in plain XLA (a pallas_call launch would cost more than it).
    two_stream = jnp.concatenate([feats[0], feats[1]], axis=1)  # (N, 2*MEM)
    return two_stream @ params["w_fc2"] + params["b_fc2"]


# ================================= parameters ==================================
def _normal(key, shape, scale=0.1):
    return scale * jax.random.normal(key, shape, jnp.float32)


def init_params(key):
    ks = jax.random.split(key, 12)
    # gate column layout inside wx/wh/b_lstm is (i, f, o, g)
    rgb = {
        "w_bb": _normal(ks[0], (IN_C_RGB, MEM)),
        "b_bb": _normal(ks[1], (MEM,)),
        "w_fc_res": _normal(ks[2], (NUM_CLASSES, MEM)),
        "b_fc_res": _normal(ks[3], (NUM_CLASSES,)),
        "wx": _normal(ks[4], (MEM, 4 * MEM)),
        "wh": _normal(ks[5], (MEM, 4 * MEM)),
        "b_lstm": _normal(ks[6], (4 * MEM,)),
    }
    flow = {
        "w_bb": _normal(ks[7], (IN_C_FLOW, MEM)),
        "b_bb": _normal(ks[8], (MEM,)),
        "wx": _normal(ks[9], (MEM, 4 * MEM)),
        "wh": _normal(ks[10], (MEM, 4 * MEM)),
        "b_lstm": _normal(ks[11], (4 * MEM,)),
    }
    kf = jax.random.split(jax.random.fold_in(key, 123), 2)
    return {
        "rgb": rgb,
        "flow": flow,
        "w_fc2": _normal(kf[0], (2 * MEM, NUM_CLASSES)),   # stored pre-transposed
        "b_fc2": _normal(kf[1], (NUM_CLASSES,)),
    }


# ==================================== main =====================================
if __name__ == "__main__":
    key = jax.random.PRNGKey(0)
    k_frames, k_flow = jax.random.split(key)
    frames = jax.random.normal(k_frames, (SEQ, BATCH, IN_C_RGB, H, W), jnp.float32)
    flow = jax.random.normal(k_flow, (SEQ, BATCH, IN_C_FLOW, H, W), jnp.float32)

    params = init_params(jax.random.PRNGKey(42))

    fwd = jax.jit(lambda a, b: two_stream_forward(a, b, params))
    out = fwd(frames, flow)
    out = jax.block_until_ready(out)

    assert out.shape == (BATCH, NUM_CLASSES), out.shape
    assert bool(jnp.all(jnp.isfinite(out)))
    print("KERNEL_OK")
</pallas_src>

<mosaic_0001>
module attributes {stable_mosaic.version = 11 : i64} {
  func.func @_xgate_attn_kernel(%arg0: i32, %arg1: memref<1x2x64x128xf32, #tpu.memory_space<vmem>>, %arg2: memref<10x128xf32, #tpu.memory_space<vmem>>, %arg3: memref<128x10xf32, #tpu.memory_space<vmem>>, %arg4: memref<1x10xf32, #tpu.memory_space<vmem>>, %arg5: memref<128x512xbf16, #tpu.memory_space<vmem>>, %arg6: memref<1x512xf32, #tpu.memory_space<vmem>>, %arg7: memref<1x128x512xf32, #tpu.memory_space<vmem>>) attributes {dimension_semantics = [#tpu.dimension_semantics<parallel>], iteration_bounds = array<i64: 4>, scalar_prefetch = 0 : i64, scratch_operands = 0 : i64, tpu.core_type = #tpu.core_type<tc>, window_params = [{transform_indices = @transform_0, window_bounds = array<i64: 1, 2, 64, 128>}, {pipeline_mode = #tpu.pipeline_mode<synchronous>, transform_indices = @transform_1, window_bounds = array<i64: 10, 128>}, {pipeline_mode = #tpu.pipeline_mode<synchronous>, transform_indices = @transform_2, window_bounds = array<i64: 128, 10>}, {pipeline_mode = #tpu.pipeline_mode<synchronous>, transform_indices = @transform_3, window_bounds = array<i64: 1, 10>}, {pipeline_mode = #tpu.pipeline_mode<synchronous>, transform_indices = @transform_4, window_bounds = array<i64: 128, 512>}, {pipeline_mode = #tpu.pipeline_mode<synchronous>, transform_indices = @transform_5, window_bounds = array<i64: 1, 512>}, {transform_indices = @transform_6, window_bounds = array<i64: 1, 128, 512>}]} {
    %c0 = arith.constant 0 : index
    %c0_0 = arith.constant 0 : index
    %c0_1 = arith.constant 0 : index
    %c0_2 = arith.constant 0 : index
    %0 = vector.load %arg1[%c0, %c0_0, %c0_1, %c0_2] : memref<1x2x64x128xf32, #tpu.memory_space<vmem>>, vector<1x2x64x128xf32>
    %1 = vector.shape_cast %0 : vector<1x2x64x128xf32> to vector<2x64x128xf32>
    %cst = arith.constant dense<0.000000e+00> : vector<2x128xf32>
    %2 = vector.multi_reduction <add>, %1, %cst [1] : vector<2x64x128xf32> to vector<2x128xf32>
    %cst_3 = arith.constant 6.400000e+01 : f32
    %3 = vector.broadcast %cst_3 : f32 to vector<2x128xf32>
    %4 = arith.divf %2, %3 : vector<2x128xf32>
    %c0_4 = arith.constant 0 : index
    %c0_5 = arith.constant 0 : index
    %5 = vector.load %arg3[%c0_4, %c0_5] : memref<128x10xf32, #tpu.memory_space<vmem>>, vector<128x10xf32>
    %cst_6 = arith.constant dense<0.000000e+00> : vector<2x10xf32>
    %6 = tpu.matmul %4, %5, %cst_6 {dimension_numbers = #tpu.dot_dimension_numbers<[1], [0], [0], [1], [0, 0, 1, 1], [], []>} : vector<2x128xf32>, vector<128x10xf32>, vector<2x10xf32> -> vector<2x10xf32>
    %c0_7 = arith.constant 0 : index
    %c0_8 = arith.constant 0 : index
    %7 = vector.load %arg4[%c0_7, %c0_8] : memref<1x10xf32, #tpu.memory_space<vmem>>, vector<1x10xf32>
    %8 = vector.broadcast %7 : vector<1x10xf32> to vector<2x10xf32>
    %9 = arith.addf %6, %8 : vector<2x10xf32>
    %cst_9 = arith.constant dense<0xFF800000> : vector<2xf32>
    %10 = vector.multi_reduction <maximumf>, %9, %cst_9 [1] : vector<2x10xf32> to vector<2xf32>
    %11 = vector.shape_cast %10 : vector<2xf32> to vector<2x1xf32>
    %12 = tpu.iota {dimensions = array<i32: 1>} : vector<2x10xi32>
    %13 = vector.broadcast %11 : vector<2x1xf32> to vector<2x10xf32>
    %14 = arith.cmpf oeq, %9, %13 : vector<2x10xf32>
    %c10_i32 = arith.constant 10 : i32
    %15 = vector.broadcast %c10_i32 : i32 to vector<2x10xi32>
    %16 = arith.select %14, %12, %15 : vector<2x10xi1>, vector<2x10xi32>
    %cst_10 = arith.constant dense<2147483647> : vector<2xi32>
    %17 = vector.multi_reduction <minsi>, %16, %cst_10 [1] : vector<2x10xi32> to vector<2xi32>
    %18 = vector.shape_cast %17 : vector<2xi32> to vector<2x1xi32>
    %19 = vector.broadcast %18 : vector<2x1xi32> to vector<2x10xi32>
    %20 = arith.cmpi eq, %12, %19 : vector<2x10xi32>
    %21 = arith.extui %20 : vector<2x10xi1> to vector<2x10xi32>
    %22 = arith.sitofp %21 : vector<2x10xi32> to vector<2x10xf32>
    %c0_11 = arith.constant 0 : index
    %c0_12 = arith.constant 0 : index
    %23 = vector.load %arg2[%c0_11, %c0_12] : memref<10x128xf32, #tpu.memory_space<vmem>>, vector<10x128xf32>
    %cst_13 = arith.constant dense<0.000000e+00> : vector<2x128xf32>
    %24 = tpu.matmul %22, %23, %cst_13 {dimension_numbers = #tpu.dot_dimension_numbers<[1], [0], [0], [1], [0, 0, 1, 1], [], []>} : vector<2x10xf32>, vector<10x128xf32>, vector<2x128xf32> -> vector<2x128xf32>
    %25 = vector.shape_cast %24 : vector<2x128xf32> to vector<2x1x128xf32>
    %26 = vector.broadcast %25 : vector<2x1x128xf32> to vector<2x64x128xf32>
    %27 = arith.mulf %1, %26 : vector<2x64x128xf32>
    %cst_14 = arith.constant dense<0.000000e+00> : vector<2x64xf32>
    %28 = vector.multi_reduction <add>, %27, %cst_14 [2] : vector<2x64x128xf32> to vector<2x64xf32>
    %cst_15 = arith.constant dense<0xFF800000> : vector<2xf32>
    %29 = vector.multi_reduction <maximumf>, %28, %cst_15 [1] : vector<2x64xf32> to vector<2xf32>
    %30 = vector.shape_cast %29 : vector<2xf32> to vector<2x1xf32>
    %31 = vector.broadcast %30 : vector<2x1xf32> to vector<2x64xf32>
    %32 = arith.subf %28, %31 : vector<2x64xf32>
    %33 = math.exp %32 : vector<2x64xf32>
    %cst_16 = arith.constant dense<0.000000e+00> : vector<2xf32>
    %34 = vector.multi_reduction <add>, %33, %cst_16 [1] : vector<2x64xf32> to vector<2xf32>
    %35 = vector.shape_cast %34 : vector<2xf32> to vector<2x1xf32>
    %36 = tpu.reciprocal %35 {approx = true} : vector<2x1xf32> -> vector<2x1xf32>
    %37 = vector.broadcast %36 : vector<2x1xf32> to vector<2x64xf32>
    %38 = arith.mulf %33, %37 : vector<2x64xf32>
    %39 = vector.shape_cast %38 : vector<2x64xf32> to vector<2x64x1xf32>
    %40 = vector.broadcast %39 : vector<2x64x1xf32> to vector<2x64x128xf32>
    %41 = arith.mulf %1, %40 : vector<2x64x128xf32>
    %42 = vector.shape_cast %41 : vector<2x64x128xf32> to vector<128x128xf32>
    %43 = arith.truncf %42 : vector<128x128xf32> to vector<128x128xbf16>
    %c0_17 = arith.constant 0 : index
    %c0_18 = arith.constant 0 : index
    %44 = vector.load %arg5[%c0_17, %c0_18] : memref<128x512xbf16, #tpu.memory_space<vmem>>, vector<128x512xbf16>
    %cst_19 = arith.constant dense<0.000000e+00> : vector<128x512xf32>
    %45 = tpu.matmul %43, %44, %cst_19 {dimension_numbers = #tpu.dot_dimension_numbers<[1], [0], [0], [1], [0, 0, 1, 1], [], []>} : vector<128x128xbf16>, vector<128x512xbf16>, vector<128x512xf32> -> vector<128x512xf32>
    %c0_20 = arith.constant 0 : index
    %c0_21 = arith.constant 0 : index
    %46 = vector.load %arg6[%c0_20, %c0_21] : memref<1x512xf32, #tpu.memory_space<vmem>>, vector<1x512xf32>
    %47 = vector.broadcast %46 : vector<1x512xf32> to vector<128x512xf32>
    %48 = arith.addf %45, %47 : vector<128x512xf32>
    %c0_22 = arith.constant 0 : index
    %c0_23 = arith.constant 0 : index
    %c0_24 = arith.constant 0 : index
    %49 = vector.load %arg7[%c0_22, %c0_23, %c0_24] : memref<1x128x512xf32, #tpu.memory_space<vmem>>, vector<1x128x512xf32>
    %50 = vector.shape_cast %49 : vector<1x128x512xf32> to vector<128x512xf32>
    %51 = vector.shape_cast %48 : vector<128x512xf32> to vector<1x128x512xf32>
    tpu.vector_store %arg7[%c0_22, %c0_23, %c0_24], %51 {strides = array<i32>} : memref<1x128x512xf32, #tpu.memory_space<vmem>>, vector<1x128x512xf32>,
    return
  }
  func.func @transform_0(%arg0: i32) -> (i32, i32, i32, i32) {
    %c0_i32 = arith.constant 0 : i32
    %c0_i32_0 = arith.constant 0 : i32
    %c0_i32_1 = arith.constant 0 : i32
    %c0_i32_2 = arith.constant 0 : i32
    return %arg0, %c0_i32, %c0_i32_0, %c0_i32_1 : i32, i32, i32, i32
  }
  func.func @transform_1(%arg0: i32) -> (i32, i32) {
    %c0_i32 = arith.constant 0 : i32
    %c0_i32_0 = arith.constant 0 : i32
    %c0_i32_1 = arith.constant 0 : i32
    return %c0_i32, %c0_i32_0 : i32, i32
  }
  func.func @transform_2(%arg0: i32) -> (i32, i32) {
    %c0_i32 = arith.constant 0 : i32
    %c0_i32_0 = arith.constant 0 : i32
    %c0_i32_1 = arith.constant 0 : i32
    return %c0_i32, %c0_i32_0 : i32, i32
  }
  func.func @transform_3(%arg0: i32) -> (i32, i32) {
    %c0_i32 = arith.constant 0 : i32
    %c0_i32_0 = arith.constant 0 : i32
    %c0_i32_1 = arith.constant 0 : i32
    return %c0_i32, %c0_i32_0 : i32, i32
  }
  func.func @transform_4(%arg0: i32) -> (i32, i32) {
    %c0_i32 = arith.constant 0 : i32
    %c0_i32_0 = arith.constant 0 : i32
    %c0_i32_1 = arith.constant 0 : i32
    return %c0_i32, %c0_i32_0 : i32, i32
  }
  func.func @transform_5(%arg0: i32) -> (i32, i32) {
    %c0_i32 = arith.constant 0 : i32
    %c0_i32_0 = arith.constant 0 : i32
    %c0_i32_1 = arith.constant 0 : i32
    return %c0_i32, %c0_i32_0 : i32, i32
  }
  func.func @transform_6(%arg0: i32) -> (i32, i32, i32) {
    %c0_i32 = arith.constant 0 : i32
    %c0_i32_0 = arith.constant 0 : i32
    %c0_i32_1 = arith.constant 0 : i32
    return %arg0, %c0_i32, %c0_i32_0 : i32, i32, i32
  }
}

module attributes {stable_mosaic.version = 11 : i64} {
  func.func @_xgate_plain_kernel(%arg0: i32, %arg1: memref<1x2x64x128xf32, #tpu.memory_space<vmem>>, %arg2: memref<128x512xbf16, #tpu.memory_space<vmem>>, %arg3: memref<1x512xf32, #tpu.memory_space<vmem>>, %arg4: memref<1x128x512xf32, #tpu.memory_space<vmem>>) attributes {dimension_semantics = [#tpu.dimension_semantics<parallel>], iteration_bounds = array<i64: 4>, scalar_prefetch = 0 : i64, scratch_operands = 0 : i64, tpu.core_type = #tpu.core_type<tc>, window_params = [{transform_indices = @transform_0, window_bounds = array<i64: 1, 2, 64, 128>}, {pipeline_mode = #tpu.pipeline_mode<synchronous>, transform_indices = @transform_1, window_bounds = array<i64: 128, 512>}, {pipeline_mode = #tpu.pipeline_mode<synchronous>, transform_indices = @transform_2, window_bounds = array<i64: 1, 512>}, {transform_indices = @transform_3, window_bounds = array<i64: 1, 128, 512>}]} {
    %c0 = arith.constant 0 : index
    %c0_0 = arith.constant 0 : index
    %c0_1 = arith.constant 0 : index
    %c0_2 = arith.constant 0 : index
    %0 = vector.load %arg1[%c0, %c0_0, %c0_1, %c0_2] : memref<1x2x64x128xf32, #tpu.memory_space<vmem>>, vector<1x2x64x128xf32>
    %1 = vector.shape_cast %0 : vector<1x2x64x128xf32> to vector<2x64x128xf32>
    %2 = vector.shape_cast %1 : vector<2x64x128xf32> to vector<128x128xf32>
    %3 = arith.truncf %2 : vector<128x128xf32> to vector<128x128xbf16>
    %c0_3 = arith.constant 0 : index
    %c0_4 = arith.constant 0 : index
    %4 = vector.load %arg2[%c0_3, %c0_4] : memref<128x512xbf16, #tpu.memory_space<vmem>>, vector<128x512xbf16>
    %cst = arith.constant dense<0.000000e+00> : vector<128x512xf32>
    %5 = tpu.matmul %3, %4, %cst {dimension_numbers = #tpu.dot_dimension_numbers<[1], [0], [0], [1], [0, 0, 1, 1], [], []>} : vector<128x128xbf16>, vector<128x512xbf16>, vector<128x512xf32> -> vector<128x512xf32>
    %c0_5 = arith.constant 0 : index
    %c0_6 = arith.constant 0 : index
    %6 = vector.load %arg3[%c0_5, %c0_6] : memref<1x512xf32, #tpu.memory_space<vmem>>, vector<1x512xf32>
    %7 = vector.broadcast %6 : vector<1x512xf32> to vector<128x512xf32>
    %8 = arith.addf %5, %7 : vector<128x512xf32>
    %c0_7 = arith.constant 0 : index
    %c0_8 = arith.constant 0 : index
    %c0_9 = arith.constant 0 : index
    %9 = vector.load %arg4[%c0_7, %c0_8, %c0_9] : memref<1x128x512xf32, #tpu.memory_space<vmem>>, vector<1x128x512xf32>
    %10 = vector.shape_cast %9 : vector<1x128x512xf32> to vector<128x512xf32>
    %11 = vector.shape_cast %8 : vector<128x512xf32> to vector<1x128x512xf32>
    tpu.vector_store %arg4[%c0_7, %c0_8, %c0_9], %11 {strides = array<i32>} : memref<1x128x512xf32, #tpu.memory_space<vmem>>, vector<1x128x512xf32>,
    return
  }
  func.func @transform_0(%arg0: i32) -> (i32, i32, i32, i32) {
    %c0_i32 = arith.constant 0 : i32
    %c0_i32_0 = arith.constant 0 : i32
    %c0_i32_1 = arith.constant 0 : i32
    %c0_i32_2 = arith.constant 0 : i32
    return %arg0, %c0_i32, %c0_i32_0, %c0_i32_1 : i32, i32, i32, i32
  }
  func.func @transform_1(%arg0: i32) -> (i32, i32) {
    %c0_i32 = arith.constant 0 : i32
    %c0_i32_0 = arith.constant 0 : i32
    %c0_i32_1 = arith.constant 0 : i32
    return %c0_i32, %c0_i32_0 : i32, i32
  }
  func.func @transform_2(%arg0: i32) -> (i32, i32) {
    %c0_i32 = arith.constant 0 : i32
    %c0_i32_0 = arith.constant 0 : i32
    %c0_i32_1 = arith.constant 0 : i32
    return %c0_i32, %c0_i32_0 : i32, i32
  }
  func.func @transform_3(%arg0: i32) -> (i32, i32, i32) {
    %c0_i32 = arith.constant 0 : i32
    %c0_i32_0 = arith.constant 0 : i32
    %c0_i32_1 = arith.constant 0 : i32
    return %arg0, %c0_i32, %c0_i32_0 : i32, i32, i32
  }
}

module attributes {stable_mosaic.version = 11 : i64} {
  func.func @_recurrence_kernel(%arg0: i32, %arg1: i32, %arg2: memref<1x1x128x512xf32, #tpu.memory_space<vmem>>, %arg3: memref<1x128x512xbf16, #tpu.memory_space<vmem>>, %arg4: memref<1x2x128xf32, #tpu.memory_space<vmem>>, %arg5: memref<128x128xf32, #tpu.memory_space<vmem>>, %arg6: memref<128x128xf32, #tpu.memory_space<vmem>>) attributes {dimension_semantics = [#tpu.dimension_semantics<parallel>, #tpu.dimension_semantics<arbitrary>], iteration_bounds = array<i64: 2, 4>, scalar_prefetch = 0 : i64, scratch_operands = 2 : i64, tpu.core_type = #tpu.core_type<tc>, window_params = [{transform_indices = @transform_0, window_bounds = array<i64: 1, 1, 128, 512>}, {transform_indices = @transform_1, window_bounds = array<i64: 1, 128, 512>}, {transform_indices = @transform_2, window_bounds = array<i64: 1, 2, 128>}]} {
    %c0_i32 = arith.constant 0 : i32
    %0 = arith.cmpi eq, %arg1, %c0_i32 : i32
    %1 = arith.extui %0 : i1 to i32
    %c0_i32_0 = arith.constant 0 : i32
    %2 = arith.cmpi ne, %1, %c0_i32_0 : i32
    scf.if %2 {
      %cst_19 = arith.constant 0.000000e+00 : f32
      %35 = vector.broadcast %cst_19 : f32 to vector<128x128xf32>
      %c0_20 = arith.constant 0 : index
      %c0_21 = arith.constant 0 : index
      %36 = vector.load %arg5[%c0_20, %c0_21] : memref<128x128xf32, #tpu.memory_space<vmem>>, vector<128x128xf32>
      tpu.vector_store %arg5[%c0_20, %c0_21], %35 {strides = array<i32>} : memref<128x128xf32, #tpu.memory_space<vmem>>, vector<128x128xf32>,
      %cst_22 = arith.constant 0.000000e+00 : f32
      %37 = vector.broadcast %cst_22 : f32 to vector<128x128xf32>
      %c0_23 = arith.constant 0 : index
      %c0_24 = arith.constant 0 : index
      %38 = vector.load %arg6[%c0_23, %c0_24] : memref<128x128xf32, #tpu.memory_space<vmem>>, vector<128x128xf32>
      tpu.vector_store %arg6[%c0_23, %c0_24], %37 {strides = array<i32>} : memref<128x128xf32, #tpu.memory_space<vmem>>, vector<128x128xf32>,
    } else {
    }
    %c0 = arith.constant 0 : index
    %c0_1 = arith.constant 0 : index
    %c0_2 = arith.constant 0 : index
    %c0_3 = arith.constant 0 : index
    %3 = vector.load %arg2[%c0, %c0_1, %c0_2, %c0_3] : memref<1x1x128x512xf32, #tpu.memory_space<vmem>>, vector<1x1x128x512xf32>
    %4 = vector.shape_cast %3 : vector<1x1x128x512xf32> to vector<128x512xf32>
    %c0_4 = arith.constant 0 : index
    %c0_5 = arith.constant 0 : index
    %5 = vector.load %arg5[%c0_4, %c0_5] : memref<128x128xf32, #tpu.memory_space<vmem>>, vector<128x128xf32>
    %6 = arith.truncf %5 : vector<128x128xf32> to vector<128x128xbf16>
    %c0_6 = arith.constant 0 : index
    %c0_7 = arith.constant 0 : index
    %c0_8 = arith.constant 0 : index
    %7 = vector.load %arg3[%c0_6, %c0_7, %c0_8] : memref<1x128x512xbf16, #tpu.memory_space<vmem>>, vector<1x128x512xbf16>
    %8 = vector.shape_cast %7 : vector<1x128x512xbf16> to vector<128x512xbf16>
    %cst = arith.constant dense<0.000000e+00> : vector<128x512xf32>
    %9 = tpu.matmul %6, %8, %cst {dimension_numbers = #tpu.dot_dimension_numbers<[1], [0], [0], [1], [0, 0, 1, 1], [], []>} : vector<128x128xbf16>, vector<128x512xbf16>, vector<128x512xf32> -> vector<128x512xf32>
    %10 = arith.addf %4, %9 : vector<128x512xf32>
    %11 = vector.extract_strided_slice %10 {offsets = [0, 0], sizes = [128, 384], strides = [1, 1]} : vector<128x512xf32> to vector<128x384xf32>
    %cst_9 = arith.constant 5.000000e-01 : f32
    %12 = vector.broadcast %cst_9 : f32 to vector<128x384xf32>
    %13 = arith.mulf %12, %11 : vector<128x384xf32>
    %14 = math.tanh %13 : vector<128x384xf32>
    %cst_10 = arith.constant 1.000000e+00 : f32
    %15 = vector.broadcast %cst_10 : f32 to vector<128x384xf32>
    %16 = arith.addf %14, %15 : vector<128x384xf32>
    %cst_11 = arith.constant 5.000000e-01 : f32
    %17 = vector.broadcast %cst_11 : f32 to vector<128x384xf32>
    %18 = arith.mulf %17, %16 : vector<128x384xf32>
    %19 = vector.extract_strided_slice %18 {offsets = [0, 0], sizes = [128, 128], strides = [1, 1]} : vector<128x384xf32> to vector<128x128xf32>
    %20 = vector.extract_strided_slice %18 {offsets = [0, 128], sizes = [128, 128], strides = [1, 1]} : vector<128x384xf32> to vector<128x128xf32>
    %21 = vector.extract_strided_slice %18 {offsets = [0, 256], sizes = [128, 128], strides = [1, 1]} : vector<128x384xf32> to vector<128x128xf32>
    %22 = vector.extract_strided_slice %10 {offsets = [0, 384], sizes = [128, 128], strides = [1, 1]} : vector<128x512xf32> to vector<128x128xf32>
    %23 = math.tanh %22 : vector<128x128xf32>
    %c0_12 = arith.constant 0 : index
    %c0_13 = arith.constant 0 : index
    %24 = vector.load %arg6[%c0_12, %c0_13] : memref<128x128xf32, #tpu.memory_space<vmem>>, vector<128x128xf32>
    %25 = arith.mulf %20, %24 : vector<128x128xf32>
    %26 = arith.mulf %19, %23 : vector<128x128xf32>
    %27 = arith.addf %25, %26 : vector<128x128xf32>
    %28 = math.tanh %27 : vector<128x128xf32>
    %29 = arith.mulf %21, %28 : vector<128x128xf32>
    %c0_14 = arith.constant 0 : index
    %c0_15 = arith.constant 0 : index
    %30 = vector.load %arg5[%c0_14, %c0_15] : memref<128x128xf32, #tpu.memory_space<vmem>>, vector<128x128xf32>
    tpu.vector_store %arg5[%c0_14, %c0_15], %29 {strides = array<i32>} : memref<128x128xf32, #tpu.memory_space<vmem>>, vector<128x128xf32>,
    %c0_16 = arith.constant 0 : index
    %c0_17 = arith.constant 0 : index
    %31 = vector.load %arg6[%c0_16, %c0_17] : memref<128x128xf32, #tpu.memory_space<vmem>>, vector<128x128xf32>
    tpu.vector_store %arg6[%c0_16, %c0_17], %27 {strides = array<i32>} : memref<128x128xf32, #tpu.memory_space<vmem>>, vector<128x128xf32>,
    %c3_i32 = arith.constant 3 : i32
    %32 = arith.cmpi eq, %arg1, %c3_i32 : i32
    %33 = arith.extui %32 : i1 to i32
    %c0_i32_18 = arith.constant 0 : i32
    %34 = arith.cmpi ne, %33, %c0_i32_18 : i32
    scf.if %34 {
      %35 = vector.shape_cast %29 : vector<128x128xf32> to vector<2x64x128xf32>
      %cst_19 = arith.constant dense<0.000000e+00> : vector<2x128xf32>
      %36 = vector.multi_reduction <add>, %35, %cst_19 [1] : vector<2x64x128xf32> to vector<2x128xf32>
      %cst_20 = arith.constant 6.400000e+01 : f32
      %37 = vector.broadcast %cst_20 : f32 to vector<2x128xf32>
      %38 = arith.divf %36, %37 : vector<2x128xf32>
      %c0_21 = arith.constant 0 : index
      %c0_22 = arith.constant 0 : index
      %c0_23 = arith.constant 0 : index
      %39 = vector.load %arg4[%c0_21, %c0_22, %c0_23] : memref<1x2x128xf32, #tpu.memory_space<vmem>>, vector<1x2x128xf32>
      %40 = vector.shape_cast %39 : vector<1x2x128xf32> to vector<2x128xf32>
      %41 = vector.shape_cast %38 : vector<2x128xf32> to vector<1x2x128xf32>
      tpu.vector_store %arg4[%c0_21, %c0_22, %c0_23], %41 {strides = array<i32>} : memref<1x2x128xf32, #tpu.memory_space<vmem>>, vector<1x2x128xf32>,
    } else {
    }
    return
  }
  func.func @transform_0(%arg0: i32, %arg1: i32) -> (i32, i32, i32, i32) {
    %c0_i32 = arith.constant 0 : i32
    %c0_i32_0 = arith.constant 0 : i32
    %c0_i32_1 = arith.constant 0 : i32
    return %arg0, %arg1, %c0_i32, %c0_i32_0 : i32, i32, i32, i32
  }
  func.func @transform_1(%arg0: i32, %arg1: i32) -> (i32, i32, i32) {
    %c0_i32 = arith.constant 0 : i32
    %c0_i32_0 = arith.constant 0 : i32
    %c0_i32_1 = arith.constant 0 : i32
    return %arg0, %c0_i32, %c0_i32_0 : i32, i32, i32
  }
  func.func @transform_2(%arg0: i32, %arg1: i32) -> (i32, i32, i32) {
    %c0_i32 = arith.constant 0 : i32
    %c0_i32_0 = arith.constant 0 : i32
    %c0_i32_1 = arith.constant 0 : i32
    return %arg0, %c0_i32, %c0_i32_0 : i32, i32, i32
  }
}

</mosaic_0001>

<bundles_post_ra>
// kernel: _lambda_.4
= control target key start
LH: loop header
LB: loop body
LE: loop exit
PB: predicated region body
PF: predicated region fallthrough
CT: control target
= control target key end

     0   :  { %11 = vsyncpa [#allocation3], 0  ;;  %s3012_s0 = inlined_call_operand.vmem [shape: f32[4,2,64,128], index: 0, kind: input, shape index: {}]   ;;  %s3013_s1 = inlined_call_operand.hbm [shape: f32[10,128], index: 1, kind: input, shape index: {}]   ;;  %s3014_s2 = inlined_call_operand.hbm [shape: f32[128,10], index: 2, kind: input, shape index: {}]   ;;  %s3015_s3 = inlined_call_operand.hbm [shape: f32[1,10], index: 3, kind: input, shape index: {}]   ;;  %s3016_s4 = inlined_call_operand.vmem [shape: bf16[128,512], index: 4, kind: input, shape index: {}]   ;;  %s3017_s5 = inlined_call_operand.hbm [shape: f32[1,512], index: 5, kind: input, shape index: {}]   ;;  %s3018_s6 = inlined_call_operand.vmem [shape: f32[4,128,512], index: 6, kind: output, shape index: {}]  }
   0x1   :  { %12 = vsyncpa [#allocation5], 0 }
   0x2   :  { %13 = vsyncpa [#allocation8], 0  ;;  %s2185_s21 = smov 0  }
   0x3 LB: > { %s2191_s22 = sadd.s32 4294967295, %s2136_s21   ;;  %p1692_p0 = scmp.ge.s32.totalorder %s2136_s21, 1  ;;  %s2136_s21 = sphi %s2185_s21, %s19_s21  }
   0x4   : > { %p181_p1 = scmp.lt.s32.totalorder %s2136_s21, 5  ;;  %p3019_p2 = scmp.eq.s32.totalorder %s2191_s22, 0 }
   0x5   : > { %s2138_s24 = smov [#allocation4]   ;;  %s2139_s26 = smov [#allocation2]  }
   0x6   : > { %p2196_p3 = pnand %p1692_p0, %p181_p1  ;;  %s206_s25 = sshll.u32 %s2138_s24, 4  ;;  %s2200_s25 = int_to_ptr.vmem [resolvable:$true] %s206_s25 }
   0x7   : > { %s193_s27 = sshll.u32 %s2139_s26, 4  ;;  %s2140_s29 = smov [#allocation6]   ;;  %s2204_s27 = int_to_ptr.vmem [resolvable:$true] %s193_s27 }
   0x8   : > { %s3021_s23 = scalar_select %p2196_p3, 1, 0 }
   0x9   : > { %p1869_p4 = pneg %p2196_p3  ;;  %s220_s30 = sshll.u32 %s2140_s29, 4  ;;  %s2212_s30 = int_to_ptr.vmem [resolvable:$true] %s220_s30 }
   0xa   : > { %s2141_s7 = smov [#allocation7]   ;;  %s2006_s11 = scalar_lea.hbm %s3014_s2, 2048 }
   0xb   : > { %p2208_p5 = pnand %p3019_p2, %p1869_p4  ;;  %s2214_s8 = sshll.u32 %s2141_s7, 4  ;;  %s235_s8 = int_to_ptr.vmem [resolvable:$true] %s2214_s8 }
   0xc   : > { %p2007_p6 = scmp.ne.s32.totalorder %s3014_s2, %s2006_s11  ;;  %p2013_p10 = scmp.lt.u32.totalorder %s2006_s11, %s3014_s2 }
   0xd   : > { %p2224_p7 = pneg %p2208_p5 }
   0xf   : > { %p2009_p8 = pnand %p2224_p7, %p2007_p6 }
  0x11   : > { %p2010_p9 = pneg %p2009_p8 }
  0x13   : > { %p2015_p11 = pnand %p2013_p10, %p2010_p9 }
  0x15   : > { %2018 = shalt.err (!%p2015_p11)
}
  0x16   : > { %s2019_s17 = scalar_lea.vmem %s2200_s25, 2048  ;;  %p2027_p1 = scmp.lt.s32.totalorder %s2200_s25, %s2200_s25 }
  0x17   : > { %p2020_p12 = scmp.ne.s32.totalorder %s2200_s25, %s2019_s17  ;;  %p2028_p4 = scmp.lt.s32.totalorder %s2019_s17, %s2019_s17 }
  0x19   : > { %p2022_p13 = pnand %p2020_p12, %p2224_p7  ;;  %p2029_p6 = por %p2028_p4, %p2027_p1 }
  0x1b   : > { %p2023_p0 = pneg %p2022_p13 }
  0x1d   : > { %p2030_p8 = pnand %p2029_p6, %p2023_p0 }
  0x1f   : > { %2033 = shalt.err (!%p2030_p8)
}
  0x20   : > { %s2142_s18 = smov 128   ;;  %s2143_s19 = smov 8  }
  0x21   : > { %1875 = dma.hbm_to_vmem [thread:$0]  (!%p2208_p5), %s3014_s2, 2048, %s2200_s25, [#allocation5], %s2142_s18, %s2142_s18, %s2143_s19  }
  0x22   : > { %s2034_s7 = scalar_lea.hbm %s3013_s1, 256 }
  0x23   : > { %p2035_p9 = scmp.ne.s32.totalorder %s3013_s1, %s2034_s7  ;;  %p2041_p12 = scmp.lt.u32.totalorder %s2034_s7, %s3013_s1 }
  0x25   : > { %p2037_p10 = pnand %p2035_p9, %p2224_p7 }
  0x27   : > { %p2038_p11 = pneg %p2037_p10 }
  0x29   : > { %p2043_p13 = pnand %p2041_p12, %p2038_p11 }
  0x2b   : > { %2046 = shalt.err (!%p2043_p13)
}
  0x2c   : > { %s2047_s25 = scalar_lea.vmem %s2204_s27, 256  ;;  %p2055_p6 = scmp.lt.s32.totalorder %s2204_s27, %s2204_s27 }
  0x2d   : > { %p2048_p0 = scmp.ne.s32.totalorder %s2204_s27, %s2047_s25  ;;  %p2056_p8 = scmp.lt.s32.totalorder %s2047_s25, %s2047_s25 }
  0x2f   : > { %p2050_p1 = pnand %p2048_p0, %p2224_p7  ;;  %p2057_p9 = por %p2056_p8, %p2055_p6 }
  0x31   : > { %p2051_p4 = pneg %p2050_p1 }
  0x33   : > { %p2058_p10 = pnand %p2057_p9, %p2051_p4 }
  0x35   : > { %2061 = shalt.err (!%p2058_p10)
}
  0x36   : > { %1872 = dma.hbm_to_vmem [thread:$0]  (!%p2208_p5), %s3013_s1, 256, %s2204_s27, [#allocation3], %s2142_s18, %s2142_s18, %s2143_s19  }
  0x37   : > { %s2062_s20 = scalar_lea.hbm %s3015_s3, 16 }
  0x38   : > { %p2063_p11 = scmp.ne.s32.totalorder %s3015_s3, %s2062_s20  ;;  %p2069_p0 = scmp.lt.u32.totalorder %s2062_s20, %s3015_s3 }
  0x3a   : > { %p2065_p12 = pnand %p2063_p11, %p2224_p7 }
  0x3c   : > { %p2066_p13 = pneg %p2065_p12 }
  0x3e   : > { %p2071_p1 = pnand %p2069_p0, %p2066_p13 }
  0x40   : > { %2074 = shalt.err (!%p2071_p1)
}
  0x41   : > { %s2075_s27 = scalar_lea.vmem %s2212_s30, 16  ;;  %s2082_s18 = scalar_lea.vmem %s2212_s30, 32 }
  0x42   : > { %p2076_p4 = scmp.ne.s32.totalorder %s2212_s30, %s2075_s27  ;;  %p2083_p9 = scmp.lt.s32.totalorder %s2212_s30, %s2212_s30 }
  0x43   : > { %p2084_p10 = scmp.lt.s32.totalorder %s2082_s18, %s2075_s27 }
  0x44   : > { %p2078_p6 = pnand %p2076_p4, %p2224_p7 }
  0x45   : > { %p2085_p11 = por %p2084_p10, %p2083_p9 }
  0x46   : > { %p2079_p8 = pneg %p2078_p6 }
  0x48   : > { %p2086_p12 = pnand %p2085_p11, %p2079_p8 }
  0x4a   : > { %2089 = shalt.err (!%p2086_p12)
}
  0x4b   : > { %1878 = dma.hbm_to_vmem [thread:$0]  (!%p2208_p5), %s3015_s3, 16, %s2212_s30, [#allocation5]  }
  0x4c   : > { %s2090_s12 = scalar_lea.hbm %s3017_s5, 64 }
  0x4d   : > { %p2091_p13 = scmp.ne.s32.totalorder %s3017_s5, %s2090_s12  ;;  %p2097_p4 = scmp.lt.u32.totalorder %s2090_s12, %s3017_s5 }
  0x4f   : > { %p2093_p0 = pnand %p2091_p13, %p2224_p7 }
  0x51   : > { %p2094_p1 = pneg %p2093_p0 }
  0x53   : > { %p2099_p6 = pnand %p2097_p4, %p2094_p1 }
  0x55   : > { %2102 = shalt.err (!%p2099_p6)
}
  0x56   : > { %s2103_s17 = scalar_lea.vmem %s235_s8, 64  ;;  %p2111_p11 = scmp.lt.s32.totalorder %s235_s8, %s235_s8 }
  0x57   : > { %p2104_p8 = scmp.ne.s32.totalorder %s235_s8, %s2103_s17  ;;  %p2112_p12 = scmp.lt.s32.totalorder %s2103_s17, %s2103_s17 }
  0x59   : > { %p2106_p9 = pnand %p2104_p8, %p2224_p7  ;;  %p2113_p2 = por %p2112_p12, %p2111_p11 }
  0x5b   : > { %p2107_p10 = pneg %p2106_p9 }
  0x5d   : > { %p2114_p3 = pnand %p2113_p2, %p2107_p10 }
  0x5f   : > { %2117 = shalt.err (!%p2114_p3)
}
  0x60   : > { %1881 = dma.hbm_to_vmem [thread:$0]  (!%p2208_p5), %s3017_s5, 64, %s235_s8, [#allocation8]  }
  0x61   : > { %p3024_p13 = scmp.ne.s32.totalorder %s3021_s23, 0 }
  0x62   : > { %p3025_p0 = scmp.eq.s32.totalorder (!%p3024_p13), %s2191_s22, 0 }
  0x63   : > { %255 = sbr.rel (%p3024_p13) target bundleno = 2107 (0x83b), region = 44 }
  0x6a   : > { %2123 = dma.done.wait (%p3025_p0), [#allocation3], 256   ;;  %p3026_p7 = pmov %p3025_p0 }
  0x6b   : > { %p3027_p1 = pmov %p3025_p0 }
  0x6c   : > { %2125 = vsyncadd (%p3026_p7), [#allocation3], 4294967040 }
  0x6d   : > { %2127 = dma.done.wait (%p3027_p1), [#allocation5], 2064   ;;  %p3028_p2 = pmov %p3025_p0 }
  0x6e   : > { %p3029_p3 = pmov %p3025_p0 }
  0x6f   : > { %2129 = vsyncadd (%p3028_p2), [#allocation5], 4294965232 }
  0x70   : > { %2131 = dma.done.wait (%p3029_p3), [#allocation8], 64   ;;  %p3030_p5 = pmov %p3025_p0 }
  0x71   : > { %p297_p4 = scmp.lt.s32.totalorder %s2191_s22, 3  ;;  %v2144_v0 = vmov 0.0|0.0   ;;  %vm2145_vm0 = vmmov 0   ;;  %v2146_v1 = vmov 0.0   ;;  %v353_v2 = vld [vmem:[#allocation4] sm:$0xff]  ;;  %v354_v3 = vld [vmem:[#allocation4 + $0x8] sm:$0xff] }
  0x72   : > { %2133 = vsyncadd (%p3030_p5), [#allocation8], 4294967232  ;;  %1809 = vmatprep.subr.bf16.mxu0 %v2144_v0  ;;  %1799 = vmatprep.mubr.msk.f32.mxu0 %vm2145_vm0, %v2146_v1  ;;  %v355_v4 = vld [vmem:[#allocation4 + $0x10] sm:$0xff]  ;;  %v1810_v5 = vpack.c.bf16 %v354_v3, %v353_v2  ;;  %v356_v6 = vld [vmem:[#allocation4 + $0x18] sm:$0xff]  ;;  %vm378_vm1 = vcmask 1041409   ;;  %vm451_vm2 = vcmask 74752  }
  0x73   : > { %s3032_s22 = smov (!%p297_p4, %s2191_s22), 3  ;;  %1833 = vmatprep.subr.bf16.mxu1 %v2144_v0  ;;  %1806 = vmatprep.mubr.msk.f32.mxu1 %vm2145_vm0, %v2146_v1  ;;  %v1813_v7 = vpack.c.bf16 %v356_v6, %v355_v4  ;;  %v357_v8 = vld [vmem:[#allocation4 + $0x20] sm:$0xff]  ;;  %v358_v9 = vld [vmem:[#allocation4 + $0x28] sm:$0xff]  ;;  %v359_v15 = vld [vmem:[#allocation4 + $0x30] sm:$0xff]  ;;  %vm483_vm5 = vcmask 1041408   ;;  %vm2147_vm6 = vmmov 1  }
  0x74   : > { %s1745_s23 = sshll.u32 %s3032_s22, 7  ;;  %1811 = vmatpush3.bf16.msra.mxu0 %v1810_v5  ;;  %v1816_v14 = vpack.c.bf16 %v358_v9, %v357_v8  ;;  %v360_v16 = vld [vmem:[#allocation4 + $0x38] sm:$0xff]  ;;  %v361_v24 = vld [vmem:[#allocation4 + $0x40] sm:$0xff]  ;;  %v362_v25 = vld [vmem:[#allocation4 + $0x48] sm:$0xff]  ;;  %vm479_vm8 = vcmask 80896   ;;  %vm663_vm10 = vcmask 130112  }
  0x75   : > { %s2337_s14 = scalar_lea.vmem %s3012_s0, %s1745_s23  ;;  %1812 = vmatprep.subr.bf16.mxu0 %v2144_v0  ;;  %v1819_v30 = vpack.c.bf16 %v360_v16, %v359_v15  ;;  %v363_v37 = vld [vmem:[#allocation4 + $0x50] sm:$0xff]  ;;  %v364_v38 = vld [vmem:[#allocation4 + $0x58] sm:$0xff]  ;;  %v1822_v41 = vpack.c.bf16 %v362_v25, %v361_v24  ;;  %v365_v46 = vld [vmem:[#allocation4 + $0x60] sm:$0xff]  ;;  %vm670_vm11 = vcmask 195712   ;;  %vm677_vm12 = vcmask 261312   ;;  %s1746_s26 = sshll.u32 %s3032_s22, 9 }
  0x76   : > { %v2341_v10 = vld [vmem:[%s2337_s14] sm:$0xff]  ;;  %v2344_v11 = vld [vmem:[%s2337_s14 + $0x8] sm:$0xff]  ;;  %v2347_v12 = vld [vmem:[%s2337_s14 + $0x10] sm:$0xff]  ;;  %v1825_v49 = vpack.c.bf16 %v364_v38, %v363_v37  ;;  %vm684_vm13 = vcmask 326912   ;;  %vm691_vm14 = vcmask 392512   ;;  %vm698_vm15 = vcmask 458112   ;;  %s2879_s7 = scalar_lea.vmem %s3018_s6, %s1746_s26 }
  0x77   : > { %v324_v13 = vadd.f32 %v2344_v11, %v2341_v10  ;;  %v2352_v17 = vld [vmem:[%s2337_s14 + $0x18] sm:$0xff]  ;;  %v2356_v18 = vld [vmem:[%s2337_s14 + $0x40] sm:$0xff]  ;;  %v2359_v19 = vld [vmem:[%s2337_s14 + $0x48] sm:$0xff]  ;;  %vm705_vm0 = vcmask 523712  }
  0x78   : > { %1814 = vmatpush3.bf16.msra.mxu0 %v1813_v7  ;;  %v2362_v20 = vld [vmem:[%s2337_s14 + $0x50] sm:$0xff]  ;;  %v2366_v22 = vld [vmem:[%s2337_s14 + $0x20] sm:$0xff]  ;;  %v337_v23 = vadd.f32 %v2359_v19, %v2356_v18  ;;  %v2371_v26 = vld [vmem:[%s2337_s14 + $0x28] sm:$0xff] }
  0x79   : > { %1815 = vmatprep.subr.bf16.mxu0 %v2144_v0  ;;  %v325_v21 = vadd.f32 %v324_v13, %v2347_v12  ;;  %v2374_v27 = vld [vmem:[%s2337_s14 + $0x58] sm:$0xff]  ;;  %v2377_v28 = vld [vmem:[%s2337_s14 + $0x60] sm:$0xff]  ;;  %v2381_v31 = vld [vmem:[%s2337_s14 + $0x30] sm:$0xff] }
  0x7a   : > { %v338_v32 = vadd.f32 %v337_v23, %v2362_v20  ;;  %v2386_v33 = vld [vmem:[%s2337_s14 + $0x68] sm:$0xff]  ;;  %v2390_v35 = vld [vmem:[%s2337_s14 + $0x38] sm:$0xff]  ;;  %v2394_v39 = vld [vmem:[%s2337_s14 + $0x70] sm:$0xff] }
  0x7b   : > { %v326_v29 = vadd.f32 %v325_v21, %v2352_v17  ;;  %v2400_v43 = vld [vmem:[%s2337_s14 + $0x78] sm:$0xff]  ;;  %v367_v56 = vld [vmem:[#allocation4 + $0x70] sm:$0xff]  ;;  %v368_v57 = vld [vmem:[#allocation4 + $0x78] sm:$0xff] }
  0x7c   : > { %1817 = vmatpush3.bf16.msra.mxu0 %v1816_v14  ;;  %v339_v36 = vadd.f32 %v338_v32, %v2374_v27  ;;  %v366_v47 = vld [vmem:[#allocation4 + $0x68] sm:$0xff]  ;;  %v1831_v61 = vpack.c.bf16 %v368_v57, %v367_v56  ;;  %v1707_v9 = vld [vmem:[#allocation6] ss:$0 sm:$0xff]  ;;  %v477_v38 = vld [vmem:[#allocation2] sm:$0xff] }
  0x7d   : > { %1818 = vmatprep.subr.bf16.mxu0 %v2144_v0  ;;  %v327_v34 = vadd.f32 %v326_v29, %v2366_v22  ;;  %v1828_v54 = vpack.c.bf16 %v366_v47, %v365_v46  ;;  %vm1835_vm7 = vmpackc.low %vm483_vm5, %vm2147_vm6 }
  0x7e   : > { %v340_v42 = vadd.f32 %v339_v36, %v2377_v28 }
  0x7f   : > { %v328_v40 = vadd.f32 %v327_v34, %v2371_v26 }
  0x80   : > { %1820 = vmatpush3.bf16.msra.mxu0 %v1819_v30  ;;  %v341_v45 = vadd.f32 %v340_v42, %v2386_v33 }
  0x81   : > { %1821 = vmatprep.subr.bf16.mxu0 %v2144_v0  ;;  %v329_v44 = vadd.f32 %v328_v40, %v2381_v31  ;;  %v478_v40 = vld [vmem:[#allocation2 + $0x8] sm:$0x3] }
  0x82   : > { %v342_v50 = vadd.f32 %v341_v45, %v2394_v39 }
  0x83   : > { %v330_v48 = vadd.f32 %v329_v44, %v2390_v35 }
  0x84   : > { %1823 = vmatpush3.bf16.msra.mxu0 %v1822_v41  ;;  %v343_v52 = vadd.f32 %v342_v50, %v2400_v43  ;;  %v1834_v41 = vpack.c.bf16 %v478_v40, %v477_v38 }
  0x85   : > { %1824 = vmatprep.subr.bf16.mxu0 %v2144_v0  ;;  %v331_v51 = vrot.slane %v330_v48, 4 }
  0x86   : > { %v344_v55 = vrot.slane %v343_v52, 4  ;;  %1836 = vmatpush3.bf16.msk.msra.mxu1 %vm1835_vm7, %v1834_v41 }
  0x87   : > { %v332_v53 = vadd.f32 %v331_v51, %v330_v48 }
  0x88   : > { %1826 = vmatpush3.bf16.msra.mxu0 %v1825_v49  ;;  %v345_v59 = vadd.f32 %v344_v55, %v343_v52  ;;  %v2148_v49 = vmov 1966171168  }
  0x89   : > { %1827 = vmatprep.subr.bf16.mxu0 %v2144_v0  ;;  %v333_v58 = vrot.slane %v332_v53, 2  ;;  %v559_v50 = vunpack.c.l.s4 %v2148_v49 }
  0x8a   : > { %v346_v62 = vrot.slane %v345_v59, 2 }
  0x8b   : > { %v334_v60 = vadd.f32 %v333_v58, %v332_v53  ;;  %v560_v52 = vunpack.c.0.s8 %v559_v50 }
  0x8c   : > { %1829 = vmatpush3.bf16.msra.mxu0 %v1828_v54  ;;  %v347_v2 = vadd.f32 %v346_v62, %v345_v59 }
  0x8d   : > { %1830 = vmatprep.subr.bf16.mxu0 %v2144_v0  ;;  %v335_v63 = vrot.slane %v334_v60, 1  ;;  %v455_v0 = vlaneseq }
  0x8e   : > { %v348_v4 = vrot.slane %v347_v2, 1 }
  0x8f   : > { %v336_v3 = vadd.f32 %v335_v63, %v334_v60  ;;  %v2411_v21 = vand.u32 127, %v455_v0  ;;  %v2416_v51 = vshrl.u32 %v455_v0, 7 }
  0x90   : > { %1832 = vmatpush3.bf16.msra.mxu0 %v1831_v61  ;;  %v349_v5 = vadd.f32 %v348_v4, %v347_v2 }
  0x91   : > { %v351_v6 = vmul.f32 0.015625, %v336_v3  ;;  %v563_v53 = vsub.s32 %v560_v52, %v2416_v51  ;;  %v2420_v56 = vsub.s32 0, %v2416_v51  ;;  %v672_v0 = vadd.s32 4294967272, %v2411_v21 }
  0x92   : > { %v352_v7 = vmul.f32 0.015625, %v349_v5 }
  0x94   : > { %v379_v8 = vsel %vm378_vm1, %v352_v7, %v351_v6 }
  0x95   : > { %1800 = vmatmul.mubr.f32.vlgmr.msra.gmra.mrb[0].mxu0 %v379_v8 }
 0x168   : > { %v447_v13 = vpop.f32.mrb[0].mxu0 }
 0x169   : > { %v448_v14 = vadd.f32 %v1707_v9, %v447_v13  ;;  %v1801_v15 = vpop.f32.mrb[1].mxu0 }
 0x16b   : > { %v452_v16 = vsel %vm451_vm2, %v448_v14, -inf }
 0x16c   : > { %453 = vmax.xlane.f32.xlu0 %v452_v16  ;;  %v665_v16 = vadd.s32 4294967280, %v2411_v21 }
 0x1f9   : > { %v454_v23 = vpop.xlane.xlu0 %453 }
 0x1fa   : > { %vm457_vm3 = vcmp.eq.f32.partialorder %v448_v14, %v454_v23  ;;  %v679_v23 = vadd.s32 4294967264, %v2411_v21 }
 0x1fb   : > { %v458_v24 = vsel %vm457_vm3, %v2411_v21, 10 }
 0x1fc   : > { %v459_v25 = vsel %vm451_vm2, %v458_v24, 2147483647  ;;  %v686_v24 = vadd.s32 4294967256, %v2411_v21  ;;  %v2480_v38 = vsub.s32 %v679_v23, %v2416_v51  ;;  %vm748_vm2 = vcmask 517120  }
 0x1fd   : > { %v461_v29 = vshra.s32 %v459_v25, 16  ;;  %v460_v32 = vand.u32 65535, %v459_v25 }
 0x1fe   : > { %v2483_v40 = vsub.s32 %v686_v24, %v2416_v51 }
 0x1ff   : > { %v463_v30 = vcvt.s32.f32 %v461_v29  ;;  %v462_v36 = vcvt.s32.f32 %v460_v32  ;;  %v2470_v32 = vsub.s32 %v2411_v21, %v2416_v51 }
 0x201   : > { %464 = vmin.xlane.f32.xlu0 %v463_v30 }
 0x28e   : > { %v465_v34 = vpop.xlane.xlu0 %464 }
 0x28f   : > { %vm466_vm4 = vcmp.eq.f32.partialorder %v463_v30, %v465_v34  ;;  %v471_v42 = vcvt.f32.s32 %v465_v34  ;;  %v2473_v34 = vsub.s32 %v665_v16, %v2416_v51 }
 0x290   : > { %v467_v37 = vsel %vm466_vm4, %v462_v36, inf  ;;  %v693_v36 = vadd.s32 4294967248, %v2411_v21 }
 0x291   : > { %468 = vmin.xlane.f32.xlu1 %v467_v37  ;;  %v472_v45 = vshll.u32 %v471_v42, 16  ;;  %v2477_v37 = vsub.s32 %v672_v0, %v2416_v51 }
 0x31e   : > { %v469_v44 = vpop.xlane.xlu1 %468 }
 0x31f   : > { %v470_v46 = vcvt.f32.s32 %v469_v44  ;;  %v700_v44 = vadd.s32 4294967240, %v2411_v21 }
 0x321   : > { %v473_v47 = vadd.s32 %v472_v45, %v470_v46 }
 0x323   : > { %vm474_vm9 = vcmp.eq.s32.totalorder %v2411_v21, %v473_v47 }
 0x324   : > { %v1708_v48 = vsel %vm474_vm9, 1.0, %v2146_v1 }
 0x325   : > { %1807 = vmatmul.mubr.msk.f32.vlgmr.msra.gmra.mrb[0].mxu1 %vm479_vm8, %v1708_v48 }
 0x3f8   : > { %v553_v54 = vpop.f32.mrb[0].mxu1 }
 0x3f9   : > { %v564_v55 = vrot.slane %v553_v54, %v563_v53  ;;  %v1808_v57 = vpop.f32.mrb[1].mxu1 }
 0x3fb   : > { %v565_v58 = vcombine.high %v564_v55, %v564_v55  ;;  %v572_v59 = vrot.slane %v564_v55, %v563_v53 }
 0x3fd   : > { %v579_v60 = vrot.slane %v565_v58, %v563_v53  ;;  %v583_v61 = vrot.slane %v572_v59, %v2420_v56 }
 0x3ff   : > { %v587_v1 = vrot.slane %v579_v60, %v2420_v56  ;;  %v591_v62 = vmul.f32 %v583_v61, %v2344_v11  ;;  %v590_v63 = vmul.f32 %v583_v61, %v2341_v10  ;;  %v592_v2 = vmul.f32 %v583_v61, %v2347_v12 }
 0x400   : > { %v593_v4 = vmul.f32 %v583_v61, %v2352_v17  ;;  %v594_v6 = vmul.f32 %v583_v61, %v2366_v22  ;;  %v595_v8 = vmul.f32 %v583_v61, %v2371_v26  ;;  %v596_v22 = vmul.f32 %v583_v61, %v2381_v31 }
 0x401   : > { %608 = vadd.xlane.f32.xlu0 %v591_v62  ;;  %606 = vadd.xlane.f32.xlu1 %v590_v63  ;;  %v599_v3 = vmul.f32 %v587_v1, %v2359_v19  ;;  %v600_v5 = vmul.f32 %v587_v1, %v2362_v20  ;;  %v601_v7 = vmul.f32 %v587_v1, %v2374_v27 }
 0x402   : > { %v602_v12 = vmul.f32 %v587_v1, %v2377_v28  ;;  %v603_v19 = vmul.f32 %v587_v1, %v2386_v33  ;;  %v598_v9 = vmul.f32 %v587_v1, %v2356_v18  ;;  %v604_v20 = vmul.f32 %v587_v1, %v2394_v39 }
 0x403   : > { %v605_v27 = vmul.f32 %v587_v1, %v2400_v43  ;;  %v597_v26 = vmul.f32 %v583_v61, %v2390_v35  ;;  %v658_v43 = vadd.s32 4294967288, %v2411_v21  ;;  %v2500_v21 = vsub.s32 %v693_v36, %v2416_v51 }
 0x404   : > { %v2515_v61 = vsub.s32 %v700_v44, %v2416_v51  ;;  %v2149_v36 = vmov 0   ;;  %v2548_v44 = vsub.s32 1, %v2416_v51 }
 0x405   : > { %610 = vadd.xlane.f32.xlu1 %v592_v2  ;;  %624 = vadd.xlane.f32.xlu0 %v599_v3  ;;  %v2466_v30 = vsub.s32 %v658_v43, %v2416_v51 }
 0x406   : > { %1911 = vset.pattern.permute.xlu1 %v2149_v36  ;;  %1910 = vset.pattern.permute.xlu0 %v2149_v36 }
 0x407   : > { %1336 = vmatprep.mubr.bf16.mxu1 %v2149_v36  ;;  %1449 = vmatprep.mubr.bf16.mxu0 %v2149_v36 }
 0x409   : > { %612 = vadd.xlane.f32.xlu1 %v593_v4  ;;  %626 = vadd.xlane.f32.xlu0 %v600_v5 }
 0x40d   : > { %614 = vadd.xlane.f32.xlu1 %v594_v6  ;;  %628 = vadd.xlane.f32.xlu0 %v601_v7 }
 0x411   : > { %616 = vadd.xlane.f32.xlu1 %v595_v8  ;;  %630 = vadd.xlane.f32.xlu0 %v602_v12 }
 0x415   : > { %632 = vadd.xlane.f32.xlu0 %v603_v19  ;;  %622 = vadd.xlane.f32.xlu1 %v598_v9 }
 0x419   : > { %634 = vadd.xlane.f32.xlu0 %v604_v20  ;;  %618 = vadd.xlane.f32.xlu1 %v596_v22 }
 0x41d   : > { %636 = vadd.xlane.f32.xlu0 %v605_v27  ;;  %620 = vadd.xlane.f32.xlu1 %v597_v26 }
 0x48e   : > { %v2440_v28 = vpop.xlane.xlu0 %608  ;;  %v2442_v13 = vpop.xlane.xlu1 %606 }
 0x48f   : > { %v662_v45 = vrot.slane %v2440_v28, %v2466_v30  ;;  %v657_v46 = vrot.slane %v2442_v13, %v2470_v32 }
 0x491   : > { %v664_v1 = vsel %vm663_vm10, %v662_v45, %v657_v46 }
 0x492   : > { %v2444_v33 = vpop.xlane.xlu1 %610  ;;  %v2446_v18 = vpop.xlane.xlu0 %624 }
 0x493   : > { %v714_v47 = vrot.slane %v2446_v18, %v2466_v30  ;;  %v669_v49 = vrot.slane %v2444_v33, %v2473_v34 }
 0x495   : > { %v671_v3 = vsel %vm670_vm11, %v669_v49, %v664_v1 }
 0x496   : > { %v2448_v14 = vpop.xlane.xlu1 %612  ;;  %v2450_v39 = vpop.xlane.xlu0 %626 }
 0x497   : > { %v719_v50 = vrot.slane %v2450_v39, %v2473_v34  ;;  %v676_v52 = vrot.slane %v2448_v14, %v2477_v37 }
 0x499   : > { %v678_v7 = vsel %vm677_vm12, %v676_v52, %v671_v3 }
 0x49a   : > { %v2452_v31 = vpop.xlane.xlu1 %614  ;;  %v2454_v15 = vpop.xlane.xlu0 %628 }
 0x49b   : > { %v724_v53 = vrot.slane %v2454_v15, %v2477_v37  ;;  %v683_v55 = vrot.slane %v2452_v31, %v2480_v38 }
 0x49d   : > { %v685_v12 = vsel %vm684_vm13, %v683_v55, %v678_v7 }
 0x49e   : > { %v2461_v25 = vpop.xlane.xlu1 %616  ;;  %v2463_v29 = vpop.xlane.xlu0 %630 }
 0x49f   : > { %v729_v57 = vrot.slane %v2463_v29, %v2480_v38  ;;  %v690_v62 = vrot.slane %v2461_v25, %v2483_v40 }
 0x4a1   : > { %v692_v20 = vsel %vm691_vm14, %v690_v62, %v685_v12 }
 0x4a2   : > { %v2485_v41 = vpop.xlane.xlu0 %632  ;;  %v623_v42 = vpop.xlane.xlu1 %622 }
 0x4a3   : > { %v710_v48 = vrot.slane %v623_v42, %v2470_v32  ;;  %v734_v63 = vrot.slane %v2485_v41, %v2483_v40 }
 0x4a5   : > { %v715_v54 = vsel %vm663_vm10, %v714_v47, %v710_v48 }
 0x4a6   : > { %v720_v58 = vsel %vm670_vm11, %v719_v50, %v715_v54  ;;  %v635_v59 = vpop.xlane.xlu0 %634  ;;  %v2512_v60 = vpop.xlane.xlu1 %618 }
 0x4a7   : > { %v725_v2 = vsel %vm677_vm12, %v724_v53, %v720_v58  ;;  %v739_v4 = vrot.slane %v635_v59, %v2500_v21  ;;  %v697_v5 = vrot.slane %v2512_v60, %v2500_v21 }
 0x4a8   : > { %v730_v6 = vsel %vm684_vm13, %v729_v57, %v725_v2 }
 0x4a9   : > { %v735_v8 = vsel %vm691_vm14, %v734_v63, %v730_v6  ;;  %v699_v26 = vsel %vm698_vm15, %v697_v5, %v692_v20 }
 0x4aa   : > { %v637_v19 = vpop.xlane.xlu0 %636  ;;  %v2531_v9 = vpop.xlane.xlu1 %620  ;;  %v740_v43 = vsel %vm698_vm15, %v739_v4, %v735_v8 }
 0x4ab   : > { %v744_v22 = vrot.slane %v637_v19, %v2515_v61  ;;  %v704_v27 = vrot.slane %v2531_v9, %v2515_v61 }
 0x4ad   : > { %v706_v16 = vsel %vm705_vm0, %v704_v27, %v699_v26  ;;  %v745_v0 = vsel %vm705_vm0, %v744_v22, %v740_v43 }
 0x4ae   : > { %v746_v23 = vsel %vm378_vm1, %v745_v0, %v706_v16 }
 0x4af   : > { %v749_v24 = vsel %vm748_vm2, %v746_v23, -inf }
 0x4b0   : > { %750 = vmax.xlane.f32.xlu1 %v749_v24 }
 0x53d   : > { %v751_v45 = vpop.xlane.xlu1 %750 }
 0x53e   : > { %v2551_v46 = vrot.slane %v751_v45, %v2420_v56  ;;  %v760_v47 = vrot.slane %v751_v45, %v2548_v44 }
 0x540   : > { %v764_v48 = vsub.f32 %v2440_v28, %v2551_v46  ;;  %v763_v49 = vsub.f32 %v2442_v13, %v2551_v46  ;;  %v771_v50 = vsub.f32 %v623_v42, %v760_v47  ;;  %v775_v52 = vsub.f32 %v2463_v29, %v760_v47 }
 0x541   : > { %v772_v57 = vsub.f32 %v2446_v18, %v760_v47  ;;  %v776_v1 = vsub.f32 %v2485_v41, %v760_v47  ;;  %v765_v28 = vsub.f32 %v2444_v33, %v2551_v46  ;;  %v777_v42 = vsub.f32 %v635_v59, %v760_v47 }
 0x542   : > { %v781_v53 = vmul.f32 1.442695, %v764_v48  ;;  %v779_v54 = vmul.f32 1.442695, %v763_v49  ;;  %v795_v55 = vmul.f32 1.442695, %v771_v50  ;;  %v773_v63 = vsub.f32 %v2450_v39, %v760_v47 }
 0x543   : > { %v803_v58 = vmul.f32 1.442695, %v775_v52  ;;  %v797_v62 = vmul.f32 1.442695, %v772_v57  ;;  %v805_v13 = vmul.f32 1.442695, %v776_v1  ;;  %v778_v3 = vsub.f32 %v637_v19, %v760_v47 }
 0x544   : > { %1960 = vpow2.f32 %v781_v53  ;;  %v783_v29 = vmul.f32 1.442695, %v765_v28  ;;  %v807_v2 = vmul.f32 1.442695, %v777_v42  ;;  %v799_v33 = vmul.f32 1.442695, %v773_v63 }
 0x545   : > { %1962 = vpow2.f32 %v779_v54  ;;  %v766_v41 = vsub.f32 %v2448_v14, %v2551_v46  ;;  %v809_v59 = vmul.f32 1.442695, %v778_v3  ;;  %v774_v7 = vsub.f32 %v2454_v15, %v760_v47 }
 0x546   : > { %1964 = vpow2.f32 %v795_v55  ;;  %v767_v19 = vsub.f32 %v2452_v31, %v2551_v46  ;;  %v768_v27 = vsub.f32 %v2461_v25, %v2551_v46  ;;  %v769_v16 = vsub.f32 %v2512_v60, %v2551_v46 }
 0x547   : > { %1966 = vpow2.f32 %v803_v58  ;;  %v785_v6 = vmul.f32 1.442695, %v766_v41  ;;  %v801_v14 = vmul.f32 1.442695, %v774_v7  ;;  %v770_v25 = vsub.f32 %v2531_v9, %v2551_v46 }
 0x548   : > { %1968 = vpow2.f32 %v797_v62  ;;  %v787_v15 = vmul.f32 1.442695, %v767_v19  ;;  %v789_v31 = vmul.f32 1.442695, %v768_v27  ;;  %v791_v23 = vmul.f32 1.442695, %v769_v16 }
 0x549   : > { %1970 = vpow2.f32 %v805_v13  ;;  %v793_v45 = vmul.f32 1.442695, %v770_v25 }
 0x54a   : > { %1972 = vpow2.f32 %v783_v29 }
 0x54b   : > { %1974 = vpow2.f32 %v807_v2 }
 0x54c   : > { %1976 = vpow2.f32 %v799_v33 }
 0x54d   : > { %1978 = vpow2.f32 %v809_v59 }
 0x54e   : > { %v2564_v18 = vpop.eup %1960  ;;  %1980 = vpow2.f32 %v785_v6 }
 0x54f   : > { %v2566_v4 = vpop.eup %1962  ;;  %831 = vperm.xlu1 %1911, %v2564_v18   ;;  %1982 = vpow2.f32 %v801_v14 }
 0x550   : > { %828 = vperm.xlu0 %1910, %v2566_v4   ;;  %v2572_v5 = vpop.eup %1964  ;;  %1984 = vpow2.f32 %v787_v15 }
 0x551   : > { %v2574_v39 = vpop.eup %1966  ;;  %1986 = vpow2.f32 %v789_v31 }
 0x552   : > { %v2579_v8 = vpop.eup %1968  ;;  %1988 = vpow2.f32 %v791_v23 }
 0x553   : > { %852 = vperm.xlu1 %1911, %v2572_v5   ;;  %v2581_v12 = vpop.eup %1970  ;;  %1990 = vpow2.f32 %v793_v45 }
 0x554   : > { %864 = vperm.xlu0 %1910, %v2574_v39   ;;  %v2587_v20 = vpop.eup %1972 }
 0x555   : > { %v2589_v22 = vpop.eup %1974 }
 0x556   : > { %v2595_v26 = vpop.eup %1976 }
 0x557   : > { %855 = vperm.xlu1 %1911, %v2579_v8   ;;  %v2597_v43 = vpop.eup %1978 }
 0x558   : > { %867 = vperm.xlu0 %1910, %v2581_v12   ;;  %v2603_v0 = vpop.eup %1980 }
 0x559   : > { %v2608_v24 = vpop.eup %1982 }
 0x55a   : > { %v2611_v47 = vpop.eup %1984 }
 0x55b   : > { %834 = vperm.xlu1 %1911, %v2587_v20   ;;  %v2614_v60 = vpop.eup %1986 }
 0x55c   : > { %870 = vperm.xlu0 %1910, %v2589_v22   ;;  %v2617_v48 = vpop.eup %1988 }
 0x55d   : > { %v2620_v9 = vpop.eup %1990 }
 0x55f   : > { %858 = vperm.xlu1 %1911, %v2595_v26  }
 0x560   : > { %873 = vperm.xlu0 %1910, %v2597_v43  }
 0x563   : > { %837 = vperm.xlu1 %1911, %v2603_v0  }
 0x567   : > { %861 = vperm.xlu1 %1911, %v2608_v24  }
 0x56b   : > { %840 = vperm.xlu1 %1911, %v2611_v47  }
 0x56f   : > { %843 = vperm.xlu1 %1911, %v2614_v60  }
 0x573   : > { %846 = vperm.xlu1 %1911, %v2617_v48  }
 0x577   : > { %849 = vperm.xlu1 %1911, %v2620_v9  }
 0x5ce   : > { %v832_v46 = vpop.permute.xlu1 %831 }
 0x5cf   : > { %v829_v53 = vpop.permute.xlu0 %828  ;;  %v882_v6 = vrot.slane %v832_v46, %v2466_v30 }
 0x5d0   : > { %v878_v7 = vrot.slane %v829_v53, %v2470_v32 }
 0x5d2   : > { %v853_v49 = vpop.permute.xlu1 %852  ;;  %v883_v23 = vsel %vm663_vm10, %v882_v6, %v878_v7  ;;  %v2714_v6 = vld [vmem:[%s3016_s4 + $0x6c] ss:$16 sps:$4 sm:$0xff]   ;;  %v1930_v7 = vld [vmem:[%s3016_s4 + $0x60] ss:$16 sps:$4 sm:$0xff]  }
 0x5d3   : > { %v865_v55 = vpop.permute.xlu0 %864  ;;  %v917_v13 = vrot.slane %v853_v49, %v2470_v32 }
 0x5d4   : > { %v936_v33 = vrot.slane %v865_v55, %v2480_v38 }
 0x5d6   : > { %v856_v50 = vpop.permute.xlu1 %855 }
 0x5d7   : > { %v921_v1 = vrot.slane %v856_v50, %v2466_v30  ;;  %v868_v62 = vpop.permute.xlu0 %867 }
 0x5d8   : > { %v941_v15 = vrot.slane %v868_v62, %v2483_v40  ;;  %v1914_v62 = vld [vmem:[%s3016_s4 + $0x4] ss:$16 sps:$4 sm:$0xff]  }
 0x5d9   : > { %v922_v63 = vsel %vm663_vm10, %v921_v1, %v917_v13  ;;  %v1912_v1 = vld [vmem:[%s3016_s4] ss:$16 sps:$4 sm:$0xff]   ;;  %v1920_v13 = vld [vmem:[%s3016_s4 + $0x24] ss:$16 sps:$4 sm:$0xff]   ;;  %1304 = vmatprep.subr.bf16.mxu1 %v1914_v62 }
 0x5da   : > { %v835_v52 = vpop.permute.xlu1 %834  ;;  %1305 = vmatpush1.bf16.msra.mxu1 %v1912_v1 }
 0x5db   : > { %v871_v41 = vpop.permute.xlu0 %870  ;;  %v887_v14 = vrot.slane %v835_v52, %v2473_v34  ;;  %1306 = vmatprep.subr.bf16.mxu1 %v1920_v13 }
 0x5dc   : > { %v946_v32 = vrot.slane %v871_v41, %v2500_v21  ;;  %v2705_v41 = vld [vmem:[%s3016_s4 + $0x48] ss:$16 sps:$4 sm:$0xff]  }
 0x5dd   : > { %v888_v30 = vsel %vm670_vm11, %v887_v14, %v883_v23  ;;  %v2723_v14 = vld [vmem:[%s3016_s4 + $0x68] ss:$16 sps:$4 sm:$0xff]   ;;  %v2750_v23 = vld [vmem:[%s3016_s4 + $0xac] ss:$16 sps:$4 sm:$0xff]  }
 0x5de   : > { %v859_v54 = vpop.permute.xlu1 %858 }
 0x5df   : > { %v926_v28 = vrot.slane %v859_v54, %v2473_v34  ;;  %v874_v34 = vpop.permute.xlu0 %873 }
 0x5e0   : > { %v951_v52 = vrot.slane %v874_v34, %v2515_v61 }
 0x5e1   : > { %v927_v2 = vsel %vm670_vm11, %v926_v28, %v922_v63  ;;  %v2669_v28 = vld [vmem:[%s3016_s4 + $0xc] ss:$16 sps:$4 sm:$0xff]   ;;  %v2687_v63 = vld [vmem:[%s3016_s4 + $0x28] ss:$16 sps:$4 sm:$0xff]  }
 0x5e2   : > { %v838_v57 = vpop.permute.xlu1 %837  ;;  %1417 = vmatprep.subr.bf16.mxu0 %v2669_v28 }
 0x5e3   : > { %v892_v27 = vrot.slane %v838_v57, %v2477_v37 }
 0x5e5   : > { %v893_v49 = vsel %vm677_vm12, %v892_v27, %v888_v30  ;;  %v1936_v27 = vld [vmem:[%s3016_s4 + $0x80] ss:$16 sps:$4 sm:$0xff]   ;;  %v1950_v30 = vld [vmem:[%s3016_s4 + $0xc4] ss:$16 sps:$4 sm:$0xff]  }
 0x5e6   : > { %v862_v58 = vpop.permute.xlu1 %861 }
 0x5e7   : > { %v931_v42 = vrot.slane %v862_v58, %v2477_v37 }
 0x5e9   : > { %v932_v3 = vsel %vm677_vm12, %v931_v42, %v927_v2  ;;  %v2677_v42 = vld [vmem:[%s3016_s4 + $0x2c] ss:$16 sps:$4 sm:$0xff]   ;;  %v1926_v2 = vld [vmem:[%s3016_s4 + $0x44] ss:$16 sps:$4 sm:$0xff]  }
 0x5ea   : > { %v841_v29 = vpop.permute.xlu1 %840  ;;  %v937_v19 = vsel %vm684_vm13, %v936_v33, %v932_v3  ;;  %v2696_v3 = vld [vmem:[%s3016_s4 + $0x4c] ss:$16 sps:$4 sm:$0xff]   ;;  %v1924_v33 = vld [vmem:[%s3016_s4 + $0x40] ss:$16 sps:$4 sm:$0xff]  }
 0x5eb   : > { %v897_v31 = vrot.slane %v841_v29, %v2480_v38  ;;  %v942_v45 = vsel %vm691_vm14, %v941_v15, %v937_v19  ;;  %v1918_v29 = vld [vmem:[%s3016_s4 + $0x20] ss:$16 sps:$4 sm:$0xff]   ;;  %v1938_v19 = vld [vmem:[%s3016_s4 + $0x84] ss:$16 sps:$4 sm:$0xff]   ;;  %v2732_v15 = vld [vmem:[%s3016_s4 + $0x8c] ss:$16 sps:$4 sm:$0xff]  }
 0x5ec   : > { %v947_v38 = vsel %vm698_vm15, %v946_v32, %v942_v45  ;;  %1307 = vmatpush1.bf16.msra.mxu1 %v1918_v29  ;;  %v2759_v45 = vld [vmem:[%s3016_s4 + $0xa8] ss:$16 sps:$4 sm:$0xff]   ;;  %v1948_v32 = vld [vmem:[%s3016_s4 + $0xc0] ss:$16 sps:$4 sm:$0xff]  }
 0x5ed   : > { %v898_v37 = vsel %vm684_vm13, %v897_v31, %v893_v49  ;;  %v952_v57 = vsel %vm705_vm0, %v951_v52, %v947_v38  ;;  %1308 = vmatprep.subr.bf16.mxu1 %v1926_v2  ;;  %v2741_v31 = vld [vmem:[%s3016_s4 + $0x88] ss:$16 sps:$4 sm:$0xff]  }
 0x5ee   : > { %v844_v59 = vpop.permute.xlu1 %843  ;;  %v2776_v52 = vld [vmem:[%s3016_s4 + $0xc8] ss:$16 sps:$4 sm:$0xff]  }
 0x5ef   : > { %v902_v25 = vrot.slane %v844_v59, %v2483_v40  ;;  %v1932_v59 = vld [vmem:[%s3016_s4 + $0x64] ss:$16 sps:$4 sm:$0xff]  }
 0x5f0   : > { %1309 = vmatpush1.bf16.msra.mxu1 %v1924_v33  ;;  %v1996_v33 = vld [vmem:[%s2337_s14 + $0x28] sm:$0xff] }
 0x5f1   : > { %v903_v40 = vsel %vm691_vm14, %v902_v25, %v898_v37  ;;  %1310 = vmatprep.subr.bf16.mxu1 %v1932_v59  ;;  %v1942_v25 = vld [vmem:[%s3016_s4 + $0xa0] ss:$16 sps:$4 sm:$0xff]  }
 0x5f2   : > { %v847_v16 = vpop.permute.xlu1 %846 }
 0x5f3   : > { %v907_v46 = vrot.slane %v847_v16, %v2500_v21  ;;  %v1944_v16 = vld [vmem:[%s3016_s4 + $0xa4] ss:$16 sps:$4 sm:$0xff]  }
 0x5f4   : > { %1311 = vmatpush1.bf16.msra.mxu1 %v1930_v7 }
 0x5f5   : > { %v908_v54 = vsel %vm698_vm15, %v907_v46, %v903_v40  ;;  %1312 = vmatprep.subr.bf16.mxu1 %v1938_v19  ;;  %v2781_v40 = vld [vmem:[%s3016_s4 + $0xcc] ss:$16 sps:$4 sm:$0xff]  }
 0x5f6   : > { %v850_v50 = vpop.permute.xlu1 %849 }
 0x5f7   : > { %v912_v53 = vrot.slane %v850_v50, %v2515_v61  ;;  %v2664_v61 = vld [vmem:[%s3016_s4 + $0x8] ss:$16 sps:$4 sm:$0xff]  }
 0x5f8   : > { %1418 = vmatpush1.bf16.msra.mxu0 %v2664_v61  ;;  %1313 = vmatpush1.bf16.msra.mxu1 %v1936_v27 }
 0x5f9   : > { %v913_v55 = vsel %vm705_vm0, %v912_v53, %v908_v54  ;;  %1419 = vmatprep.subr.bf16.mxu0 %v2677_v42  ;;  %1314 = vmatprep.subr.bf16.mxu1 %v1944_v16  ;;  %v1954_v53 = vld [vmem:[%s3016_s4 + $0xe0] ss:$16 sps:$4 sm:$0xff]  }
 0x5fa   : > { %v953_v21 = vsel %vm378_vm1, %v952_v57, %v913_v55  ;;  %v2797_v57 = vld [vmem:[%s3016_s4 + $0xe8] ss:$16 sps:$4 sm:$0xff]  }
 0x5fb   : > { %v955_v58 = vsel %vm748_vm2, %v953_v21, 0.0 }
 0x5fc   : > { %956 = vadd.xlane.f32.xlu1 %v955_v58  ;;  %1420 = vmatpush1.bf16.msra.mxu0 %v2687_v63 }
 0x5fd   : > { %1421 = vmatprep.subr.bf16.mxu0 %v2696_v3  ;;  %1315 = vmatpush1.bf16.msra.mxu1 %v1942_v25 }
 0x5fe   : > { %1316 = vmatprep.subr.bf16.mxu1 %v1950_v30 }
 0x600   : > { %1422 = vmatpush1.bf16.msra.mxu0 %v2705_v41 }
 0x601   : > { %1423 = vmatprep.subr.bf16.mxu0 %v2714_v6  ;;  %1317 = vmatpush1.bf16.msra.mxu1 %v1948_v32  ;;  %v2000_v32 = vld [vmem:[%s2337_s14 + $0x58] sm:$0xff] }
 0x604   : > { %1424 = vmatpush1.bf16.msra.mxu0 %v2723_v14 }
 0x605   : > { %1425 = vmatprep.subr.bf16.mxu0 %v2732_v15 }
 0x608   : > { %1426 = vmatpush1.bf16.msra.mxu0 %v2741_v31 }
 0x609   : > { %1427 = vmatprep.subr.bf16.mxu0 %v2750_v23 }
 0x60c   : > { %1428 = vmatpush1.bf16.msra.mxu0 %v2759_v45 }
 0x60d   : > { %1429 = vmatprep.subr.bf16.mxu0 %v2781_v40 }
 0x610   : > { %1430 = vmatpush1.bf16.msra.mxu0 %v2776_v52 }
 0x689   : > { %v957_v34 = vpop.xlane.xlu1 %956 }
 0x68a   : > { %1992 = vrcp.f32 %v957_v34 }
 0x694   : > { %v1993_v46 = vpop.eup %1992 }
 0x695   : > { %v963_v49 = vrot.slane %v1993_v46, %v2420_v56  ;;  %v967_v37 = vrot.slane %v1993_v46, %v2548_v44 }
 0x697   : > { %v979_v50 = vmul.f32 %v2579_v8, %v967_v37  ;;  %v970_v38 = vmul.f32 %v2566_v4, %v963_v49  ;;  %v1956_v4 = vld [vmem:[%s3016_s4 + $0xe4] ss:$16 sps:$4 sm:$0xff]   ;;  %v984_v8 = vmul.f32 %v2589_v22, %v967_v37  ;;  %v971_v54 = vmul.f32 %v2564_v18, %v963_v49  ;;  %v2802_v22 = vld [vmem:[%s3016_s4 + $0xec] ss:$16 sps:$4 sm:$0xff]  }
 0x698   : > { %1318 = vmatprep.subr.bf16.mxu1 %v1956_v4  ;;  %v972_v55 = vmul.f32 %v2587_v20, %v963_v49  ;;  %1431 = vmatprep.subr.bf16.mxu0 %v2802_v22  ;;  %v973_v18 = vmul.f32 %v2603_v0, %v963_v49  ;;  %v974_v20 = vmul.f32 %v2611_v47, %v963_v49 }
 0x699   : > { %1033 = vperm.xlu1 %1911, %v979_v50   ;;  %988 = vperm.xlu0 %1910, %v970_v38   ;;  %v975_v21 = vmul.f32 %v2614_v60, %v963_v49  ;;  %v976_v58 = vmul.f32 %v2617_v48, %v963_v49  ;;  %v977_v1 = vmul.f32 %v2620_v9, %v963_v49  ;;  %v2001_v49 = vld [vmem:[%s2337_s14 + $0x50] sm:$0xff] }
 0x69a   : > { %1319 = vmatpush1.bf16.msra.mxu1 %v1954_v53  ;;  %1432 = vmatpush1.bf16.msra.mxu0 %v2797_v57  ;;  %v978_v62 = vmul.f32 %v2572_v5, %v967_v37  ;;  %v981_v0 = vmul.f32 %v2608_v24, %v967_v37  ;;  %v982_v47 = vmul.f32 %v2574_v39, %v967_v37  ;;  %v2003_v53 = vld [vmem:[%s2337_s14 + $0x60] sm:$0xff] }
 0x69b   : > { %1837 = vmatprep.subr.bf16.mxu1 %v2669_v28  ;;  %v980_v28 = vmul.f32 %v2595_v26, %v967_v37  ;;  %v983_v60 = vmul.f32 %v2581_v12, %v967_v37  ;;  %v985_v48 = vmul.f32 %v2597_v43, %v967_v37  ;;  %v1994_v12 = vld [vmem:[%s2337_s14 + $0x10] sm:$0xff] }
 0x69d   : > { %1058 = vperm.xlu1 %1911, %v984_v8   ;;  %993 = vperm.xlu0 %1910, %v971_v54  }
 0x6a1   : > { %998 = vperm.xlu0 %1910, %v972_v55  }
 0x6a5   : > { %1003 = vperm.xlu0 %1910, %v973_v18   ;;  %v2005_v18 = vld [vmem:[%s2337_s14 + $0x70] sm:$0xff] }
 0x6a9   : > { %1008 = vperm.xlu0 %1910, %v974_v20  }
 0x6ad   : > { %1013 = vperm.xlu0 %1910, %v975_v21  }
 0x6b1   : > { %1018 = vperm.xlu0 %1910, %v976_v58   ;;  %v1134_v58 = vsub.s32 2, %v2416_v51 }
 0x6b5   : > { %1023 = vperm.xlu0 %1910, %v977_v1   ;;  %v1122_v1 = vld [vmem:[#allocation7] sm:$0xf] }
 0x6b9   : > { %1028 = vperm.xlu0 %1910, %v978_v62   ;;  %v1138_v62 = vsub.s32 3, %v2416_v51 }
 0x6bd   : > { %1038 = vperm.xlu0 %1910, %v980_v28   ;;  %v2867_v28 = vrot.slane %v1122_v1, %v2420_v56 }
 0x6c1   : > { %1043 = vperm.xlu0 %1910, %v981_v0   ;;  %v2869_v0 = vrot.slane %v1122_v1, %v1134_v58 }
 0x6c5   : > { %1048 = vperm.xlu0 %1910, %v982_v47   ;;  %v2872_v47 = vrot.slane %v1122_v1, %v2548_v44 }
 0x6c9   : > { %1053 = vperm.xlu0 %1910, %v983_v60   ;;  %v2874_v60 = vrot.slane %v1122_v1, %v1138_v62 }
 0x6cd   : > { %1063 = vperm.xlu0 %1910, %v985_v48  }
 0x718   : > { %v989_v9 = vpop.permute.xlu0 %988  ;;  %v1034_v27 = vpop.permute.xlu1 %1033 }
 0x719   : > { %v1066_v5 = vmul.f32 %v989_v9, %v2341_v10 }
 0x71c   : > { %v994_v13 = vpop.permute.xlu0 %993  ;;  %v1059_v55 = vpop.permute.xlu1 %1058 }
 0x71d   : > { %v1067_v26 = vmul.f32 %v994_v13, %v2344_v11  ;;  %v1080_v20 = vmul.f32 %v2005_v18, %v1059_v55 }
 0x71f   : > { %v1082_v29 = vpack.c.bf16 %v1067_v26, %v1066_v5 }
 0x720   : > { %v999_v2 = vpop.permute.xlu0 %998 }
 0x721   : > { %1337 = vmatmul.mubr.bf16.vlgmr.msra.gmra.mrb[4].mxu1 %v1082_v29  ;;  %1450 = vmatmul.mubr.bf16.vlgmr.msra.gmra.mrb[4].mxu0 %v1082_v29  ;;  %v1068_v43 = vmul.f32 %v1994_v12, %v999_v2 }
 0x722   : > { %1845 = vmatpush1.bf16.msra.mxu1 %v2664_v61  ;;  %1346 = vmatprep.mubr.bf16.mxu1 %v2149_v36 }
 0x723   : > { %1838 = vmatprep.subr.bf16.mxu1 %v2677_v42  ;;  %1459 = vmatprep.mubr.bf16.mxu0 %v2149_v36  ;;  %v1995_v42 = vld [vmem:[%s2337_s14 + $0x20] sm:$0xff] }
 0x724   : > { %v1004_v39 = vpop.permute.xlu0 %1003 }
 0x725   : > { %v1069_v10 = vmul.f32 %v1004_v39, %v2352_v17 }
 0x726   : > { %1846 = vmatpush1.bf16.msra.mxu1 %v2687_v63 }
 0x727   : > { %v1083_v11 = vpack.c.bf16 %v1069_v10, %v1068_v43  ;;  %1839 = vmatprep.subr.bf16.mxu1 %v2696_v3 }
 0x728   : > { %v1009_v24 = vpop.permute.xlu0 %1008 }
 0x729   : > { %1347 = vmatmul.mubr.bf16.gmra.mrb[8].mxu1 %v1083_v11  ;;  %1460 = vmatmul.mubr.bf16.gmra.mrb[8].mxu0 %v1083_v11  ;;  %v1070_v17 = vmul.f32 %v1995_v42, %v1009_v24 }
 0x72a   : > { %1356 = vmatprep.mubr.bf16.mxu1 %v2149_v36  ;;  %1469 = vmatprep.mubr.bf16.mxu0 %v2149_v36 }
 0x72b   : > { %1847 = vmatpush1.bf16.msra.mxu1 %v2705_v41 }
 0x72c   : > { %v1014_v61 = vpop.permute.xlu0 %1013  ;;  %1840 = vmatprep.subr.bf16.mxu1 %v2714_v6  ;;  %v1997_v6 = vld [vmem:[%s2337_s14 + $0x30] sm:$0xff] }
 0x72d   : > { %v1071_v63 = vmul.f32 %v1996_v33, %v1014_v61 }
 0x72f   : > { %v1084_v59 = vpack.c.bf16 %v1071_v63, %v1070_v17  ;;  %1848 = vmatpush1.bf16.msra.mxu1 %v2723_v14 }
 0x730   : > { %v1019_v3 = vpop.permute.xlu0 %1018  ;;  %1841 = vmatprep.subr.bf16.mxu1 %v2732_v15 }
 0x731   : > { %1357 = vmatmul.mubr.bf16.gmra.mrb[12].mxu1 %v1084_v59  ;;  %1470 = vmatmul.mubr.bf16.gmra.mrb[12].mxu0 %v1084_v59  ;;  %v1072_v7 = vmul.f32 %v1997_v6, %v1019_v3 }
 0x732   : > { %1366 = vmatprep.mubr.bf16.mxu1 %v2149_v36  ;;  %1479 = vmatprep.mubr.bf16.mxu0 %v2149_v36 }
 0x733   : > { %1849 = vmatpush1.bf16.msra.mxu1 %v2741_v31  ;;  %v1998_v31 = vld [vmem:[%s2337_s14 + $0x40] sm:$0xff] }
 0x734   : > { %v1024_v41 = vpop.permute.xlu0 %1023  ;;  %1842 = vmatprep.subr.bf16.mxu1 %v2750_v23  ;;  %v1999_v23 = vld [vmem:[%s2337_s14 + $0x48] sm:$0xff] }
 0x735   : > { %v1073_v14 = vmul.f32 %v1024_v41, %v2390_v35  ;;  %v1075_v25 = vmul.f32 %v1999_v23, %v1034_v27 }
 0x737   : > { %v1085_v19 = vpack.c.bf16 %v1073_v14, %v1072_v7  ;;  %1850 = vmatpush1.bf16.msra.mxu1 %v2759_v45 }
 0x738   : > { %v1029_v15 = vpop.permute.xlu0 %1028  ;;  %1843 = vmatprep.subr.bf16.mxu1 %v2781_v40 }
 0x739   : > { %1367 = vmatmul.mubr.bf16.gmra.mrb[16].mxu1 %v1085_v19  ;;  %1480 = vmatmul.mubr.bf16.gmra.mrb[16].mxu0 %v1085_v19  ;;  %v1074_v16 = vmul.f32 %v1998_v31, %v1029_v15 }
 0x73a   : > { %1376 = vmatprep.mubr.bf16.mxu1 %v2149_v36  ;;  %1489 = vmatprep.mubr.bf16.mxu0 %v2149_v36 }
 0x73b   : > { %1851 = vmatpush1.bf16.msra.mxu1 %v2776_v52  ;;  %v1086_v45 = vpack.c.bf16 %v1075_v25, %v1074_v16  ;;  %v2002_v52 = vld [vmem:[%s2337_s14 + $0x68] sm:$0xff] }
 0x73c   : > { %v1039_v35 = vpop.permute.xlu0 %1038  ;;  %1844 = vmatprep.subr.bf16.mxu1 %v2802_v22 }
 0x73d   : > { %v1076_v37 = vmul.f32 %v2001_v49, %v1039_v35 }
 0x73f   : > { %1852 = vmatpush1.bf16.msra.mxu1 %v2797_v57  ;;  %v2004_v57 = vld [vmem:[%s2337_s14 + $0x78] sm:$0xff] }
 0x740   : > { %v1044_v30 = vpop.permute.xlu0 %1043 }
 0x741   : > { %1377 = vmatmul.mubr.bf16.gmra.mrb[20].mxu1 %v1086_v45  ;;  %1490 = vmatmul.mubr.bf16.gmra.mrb[20].mxu0 %v1086_v45  ;;  %v1077_v34 = vmul.f32 %v2000_v32, %v1044_v30 }
 0x742   : > { %1386 = vmatprep.mubr.bf16.mxu1 %v2149_v36  ;;  %1499 = vmatprep.mubr.bf16.mxu0 %v2149_v36 }
 0x743   : > { %v1087_v50 = vpack.c.bf16 %v1077_v34, %v1076_v37 }
 0x744   : > { %v1049_v46 = vpop.permute.xlu0 %1048 }
 0x745   : > { %v1078_v4 = vmul.f32 %v2003_v53, %v1049_v46 }
 0x748   : > { %v1054_v38 = vpop.permute.xlu0 %1053 }
 0x749   : > { %1387 = vmatmul.mubr.bf16.gmra.mrb[24].mxu1 %v1087_v50  ;;  %1500 = vmatmul.mubr.bf16.gmra.mrb[24].mxu0 %v1087_v50  ;;  %v1079_v40 = vmul.f32 %v2002_v52, %v1054_v38 }
 0x74a   : > { %1396 = vmatprep.mubr.bf16.mxu1 %v2149_v36  ;;  %1509 = vmatprep.mubr.bf16.mxu0 %v2149_v36 }
 0x74b   : > { %v1088_v8 = vpack.c.bf16 %v1079_v40, %v1078_v4 }
 0x74c   : > { %v1064_v54 = vpop.permute.xlu0 %1063 }
 0x74d   : > { %v1081_v22 = vmul.f32 %v2004_v57, %v1064_v54 }
 0x74f   : > { %v1089_v21 = vpack.c.bf16 %v1081_v22, %v1080_v20 }
 0x751   : > { %1397 = vmatmul.mubr.bf16.gmra.mrb[28].mxu1 %v1088_v8  ;;  %1510 = vmatmul.mubr.bf16.gmra.mrb[28].mxu0 %v1088_v8 }
 0x752   : > { %1406 = vmatprep.mubr.bf16.mxu1 %v2149_v36 }
 0x759   : > { %1407 = vmatmul.mubr.bf16.gmra.mrb[32].mxu1 %v1089_v21 }
 0x75a   : > { %1519 = vmatprep.mubr.bf16.mxu1 %v2149_v36 }
 0x761   : > { %1520 = vmatmul.mubr.bf16.vlgmr.msra.gmra.mrb[36].mxu1 %v1089_v21 }
 0x7f4   : > { %v1338_v36 = vpop.f32.mrb[4].mxu1  ;;  %v1451_v51 = vpop.f32.mrb[4].mxu0 }
 0x7f5   : > { %v1339_v56 = vadd.f32 %v1338_v36, %v2867_v28  ;;  %v1452_v48 = vadd.f32 %v1451_v51, %v2869_v0  ;;  %v1340_v9 = vpop.f32.mrb[5].mxu1  ;;  %v1453_v44 = vpop.f32.mrb[5].mxu0 }
 0x7f6   : > { %v1341_v13 = vadd.f32 %v1340_v9, %v2872_v47  ;;  %v1454_v5 = vadd.f32 %v1453_v44, %v2874_v60  ;;  %v1342_v26 = vpop.f32.mrb[6].mxu1  ;;  %v1455_v29 = vpop.f32.mrb[6].mxu0 }
 0x7f7   : > { %1530 = vst [vmem:[%s2879_s7] sm:$0xff] %v1339_v56  ;;  %1532 = vst [vmem:[%s2879_s7 + $0x10] sm:$0xff] %v1452_v48  ;;  %v1343_v2 = vadd.f32 %v1342_v26, %v2867_v28  ;;  %v1456_v39 = vadd.f32 %v1455_v29, %v2869_v0  ;;  %v1344_v12 = vpop.f32.mrb[7].mxu1  ;;  %v1457_v43 = vpop.f32.mrb[7].mxu0 }
 0x7f8   : > { %1531 = vst [vmem:[%s2879_s7 + $0x8] sm:$0xff] %v1341_v13  ;;  %1533 = vst [vmem:[%s2879_s7 + $0x18] sm:$0xff] %v1454_v5  ;;  %v1345_v10 = vadd.f32 %v1344_v12, %v2872_v47  ;;  %v1458_v11 = vadd.f32 %v1457_v43, %v2874_v60 }
 0x7f9   : > { %1534 = vst [vmem:[%s2879_s7 + $0x20] sm:$0xff] %v1343_v2  ;;  %1536 = vst [vmem:[%s2879_s7 + $0x30] sm:$0xff] %v1456_v39 }
 0x7fa   : > { %1535 = vst [vmem:[%s2879_s7 + $0x28] sm:$0xff] %v1345_v10  ;;  %1537 = vst [vmem:[%s2879_s7 + $0x38] sm:$0xff] %v1458_v11 }
 0x7fc   : > { %v1348_v24 = vpop.f32.mrb[8].mxu1  ;;  %v1461_v61 = vpop.f32.mrb[8].mxu0 }
 0x7fd   : > { %v1349_v42 = vadd.f32 %v1348_v24, %v2867_v28  ;;  %v1462_v17 = vadd.f32 %v1461_v61, %v2869_v0  ;;  %v1350_v33 = vpop.f32.mrb[9].mxu1  ;;  %v1463_v63 = vpop.f32.mrb[9].mxu0 }
 0x7fe   : > { %v1351_v59 = vadd.f32 %v1350_v33, %v2872_v47  ;;  %v1464_v3 = vadd.f32 %v1463_v63, %v2874_v60  ;;  %v1352_v41 = vpop.f32.mrb[10].mxu1  ;;  %v1465_v6 = vpop.f32.mrb[10].mxu0 }
 0x7ff   : > { %1538 = vst [vmem:[%s2879_s7 + $0x40] sm:$0xff] %v1349_v42  ;;  %1540 = vst [vmem:[%s2879_s7 + $0x50] sm:$0xff] %v1462_v17  ;;  %v1353_v7 = vadd.f32 %v1352_v41, %v2867_v28  ;;  %v1466_v14 = vadd.f32 %v1465_v6, %v2869_v0  ;;  %v1354_v19 = vpop.f32.mrb[11].mxu1  ;;  %v1467_v15 = vpop.f32.mrb[11].mxu0 }
 0x800   : > { %1539 = vst [vmem:[%s2879_s7 + $0x48] sm:$0xff] %v1351_v59  ;;  %1541 = vst [vmem:[%s2879_s7 + $0x58] sm:$0xff] %v1464_v3  ;;  %v1355_v27 = vadd.f32 %v1354_v19, %v2872_v47  ;;  %v1468_v31 = vadd.f32 %v1467_v15, %v2874_v60 }
 0x801   : > { %1542 = vst [vmem:[%s2879_s7 + $0x60] sm:$0xff] %v1353_v7  ;;  %1544 = vst [vmem:[%s2879_s7 + $0x70] sm:$0xff] %v1466_v14 }
 0x802   : > { %1543 = vst [vmem:[%s2879_s7 + $0x68] sm:$0xff] %v1355_v27  ;;  %1545 = vst [vmem:[%s2879_s7 + $0x78] sm:$0xff] %v1468_v31 }
 0x804   : > { %v1358_v16 = vpop.f32.mrb[12].mxu1  ;;  %v1471_v35 = vpop.f32.mrb[12].mxu0 }
 0x805   : > { %v1359_v23 = vadd.f32 %v1358_v16, %v2867_v28  ;;  %v1472_v25 = vadd.f32 %v1471_v35, %v2869_v0  ;;  %v1360_v45 = vpop.f32.mrb[13].mxu1  ;;  %v1473_v30 = vpop.f32.mrb[13].mxu0 }
 0x806   : > { %v1361_v32 = vadd.f32 %v1360_v45, %v2872_v47  ;;  %v1474_v34 = vadd.f32 %v1473_v30, %v2874_v60  ;;  %v1362_v46 = vpop.f32.mrb[14].mxu1  ;;  %v1475_v49 = vpop.f32.mrb[14].mxu0 }
 0x807   : > { %1546 = vst [vmem:[%s2879_s7 + $0x80] sm:$0xff] %v1359_v23  ;;  %1548 = vst [vmem:[%s2879_s7 + $0x90] sm:$0xff] %v1472_v25  ;;  %v1363_v37 = vadd.f32 %v1362_v46, %v2867_v28  ;;  %v1476_v50 = vadd.f32 %v1475_v49, %v2869_v0  ;;  %v1364_v38 = vpop.f32.mrb[15].mxu1  ;;  %v1477_v52 = vpop.f32.mrb[15].mxu0 }
 0x808   : > { %1547 = vst [vmem:[%s2879_s7 + $0x88] sm:$0xff] %v1361_v32  ;;  %1549 = vst [vmem:[%s2879_s7 + $0x98] sm:$0xff] %v1474_v34  ;;  %v1365_v40 = vadd.f32 %v1364_v38, %v2872_v47  ;;  %v1478_v53 = vadd.f32 %v1477_v52, %v2874_v60 }
 0x809   : > { %1550 = vst [vmem:[%s2879_s7 + $0xa0] sm:$0xff] %v1363_v37  ;;  %1552 = vst [vmem:[%s2879_s7 + $0xb0] sm:$0xff] %v1476_v50 }
 0x80a   : > { %1551 = vst [vmem:[%s2879_s7 + $0xa8] sm:$0xff] %v1365_v40  ;;  %1553 = vst [vmem:[%s2879_s7 + $0xb8] sm:$0xff] %v1478_v53 }
 0x80c   : > { %v1368_v4 = vpop.f32.mrb[16].mxu1  ;;  %v1481_v8 = vpop.f32.mrb[16].mxu0 }
 0x80d   : > { %v1369_v54 = vadd.f32 %v1368_v4, %v2867_v28  ;;  %v1482_v55 = vadd.f32 %v1481_v8, %v2869_v0  ;;  %v1370_v57 = vpop.f32.mrb[17].mxu1  ;;  %v1483_v22 = vpop.f32.mrb[17].mxu0 }
 0x80e   : > { %v1371_v18 = vadd.f32 %v1370_v57, %v2872_v47  ;;  %v1484_v20 = vadd.f32 %v1483_v22, %v2874_v60  ;;  %v1372_v21 = vpop.f32.mrb[18].mxu1  ;;  %v1485_v58 = vpop.f32.mrb[18].mxu0 }
 0x80f   : > { %1554 = vst [vmem:[%s2879_s7 + $0xc0] sm:$0xff] %v1369_v54  ;;  %1556 = vst [vmem:[%s2879_s7 + $0xd0] sm:$0xff] %v1482_v55  ;;  %v1373_v1 = vadd.f32 %v1372_v21, %v2867_v28  ;;  %v1486_v62 = vadd.f32 %v1485_v58, %v2869_v0  ;;  %v1374_v36 = vpop.f32.mrb[19].mxu1  ;;  %v1487_v51 = vpop.f32.mrb[19].mxu0 }
 0x810   : > { %1555 = vst [vmem:[%s2879_s7 + $0xc8] sm:$0xff] %v1371_v18  ;;  %1557 = vst [vmem:[%s2879_s7 + $0xd8] sm:$0xff] %v1484_v20  ;;  %v1375_v56 = vadd.f32 %v1374_v36, %v2872_v47  ;;  %v1488_v48 = vadd.f32 %v1487_v51, %v2874_v60 }
 0x811   : > { %1558 = vst [vmem:[%s2879_s7 + $0xe0] sm:$0xff] %v1373_v1  ;;  %1560 = vst [vmem:[%s2879_s7 + $0xf0] sm:$0xff] %v1486_v62 }
 0x812   : > { %1559 = vst [vmem:[%s2879_s7 + $0xe8] sm:$0xff] %v1375_v56  ;;  %1561 = vst [vmem:[%s2879_s7 + $0xf8] sm:$0xff] %v1488_v48 }
 0x814   : > { %v1378_v9 = vpop.f32.mrb[20].mxu1  ;;  %v1491_v44 = vpop.f32.mrb[20].mxu0 }
 0x815   : > { %v1379_v13 = vadd.f32 %v1378_v9, %v2867_v28  ;;  %v1492_v5 = vadd.f32 %v1491_v44, %v2869_v0  ;;  %v1380_v26 = vpop.f32.mrb[21].mxu1  ;;  %v1493_v29 = vpop.f32.mrb[21].mxu0 }
 0x816   : > { %v1381_v2 = vadd.f32 %v1380_v26, %v2872_v47  ;;  %v1494_v39 = vadd.f32 %v1493_v29, %v2874_v60  ;;  %v1382_v12 = vpop.f32.mrb[22].mxu1  ;;  %v1495_v43 = vpop.f32.mrb[22].mxu0 }
 0x817   : > { %1562 = vst [vmem:[%s2879_s7 + $0x100] sm:$0xff] %v1379_v13  ;;  %1564 = vst [vmem:[%s2879_s7 + $0x110] sm:$0xff] %v1492_v5  ;;  %v1383_v10 = vadd.f32 %v1382_v12, %v2867_v28  ;;  %v1496_v11 = vadd.f32 %v1495_v43, %v2869_v0  ;;  %v1384_v24 = vpop.f32.mrb[23].mxu1  ;;  %v1497_v61 = vpop.f32.mrb[23].mxu0 }
 0x818   : > { %1563 = vst [vmem:[%s2879_s7 + $0x108] sm:$0xff] %v1381_v2  ;;  %1565 = vst [vmem:[%s2879_s7 + $0x118] sm:$0xff] %v1494_v39  ;;  %v1385_v42 = vadd.f32 %v1384_v24, %v2872_v47  ;;  %v1498_v17 = vadd.f32 %v1497_v61, %v2874_v60 }
 0x819   : > { %1566 = vst [vmem:[%s2879_s7 + $0x120] sm:$0xff] %v1383_v10  ;;  %1568 = vst [vmem:[%s2879_s7 + $0x130] sm:$0xff] %v1496_v11 }
 0x81a   : > { %1567 = vst [vmem:[%s2879_s7 + $0x128] sm:$0xff] %v1385_v42  ;;  %1569 = vst [vmem:[%s2879_s7 + $0x138] sm:$0xff] %v1498_v17 }
 0x81c   : > { %v1388_v33 = vpop.f32.mrb[24].mxu1  ;;  %v1501_v63 = vpop.f32.mrb[24].mxu0 }
 0x81d   : > { %v1389_v59 = vadd.f32 %v1388_v33, %v2867_v28  ;;  %v1502_v3 = vadd.f32 %v1501_v63, %v2869_v0  ;;  %v1390_v41 = vpop.f32.mrb[25].mxu1  ;;  %v1503_v6 = vpop.f32.mrb[25].mxu0 }
 0x81e   : > { %v1391_v7 = vadd.f32 %v1390_v41, %v2872_v47  ;;  %v1504_v14 = vadd.f32 %v1503_v6, %v2874_v60  ;;  %v1392_v19 = vpop.f32.mrb[26].mxu1  ;;  %v1505_v15 = vpop.f32.mrb[26].mxu0 }
 0x81f   : > { %1570 = vst [vmem:[%s2879_s7 + $0x140] sm:$0xff] %v1389_v59  ;;  %1572 = vst [vmem:[%s2879_s7 + $0x150] sm:$0xff] %v1502_v3  ;;  %v1393_v27 = vadd.f32 %v1392_v19, %v2867_v28  ;;  %v1506_v31 = vadd.f32 %v1505_v15, %v2869_v0  ;;  %v1394_v16 = vpop.f32.mrb[27].mxu1  ;;  %v1507_v35 = vpop.f32.mrb[27].mxu0 }
 0x820   : > { %1571 = vst [vmem:[%s2879_s7 + $0x148] sm:$0xff] %v1391_v7  ;;  %1573 = vst [vmem:[%s2879_s7 + $0x158] sm:$0xff] %v1504_v14  ;;  %v1395_v23 = vadd.f32 %v1394_v16, %v2872_v47  ;;  %v1508_v25 = vadd.f32 %v1507_v35, %v2874_v60 }
 0x821   : > { %1574 = vst [vmem:[%s2879_s7 + $0x160] sm:$0xff] %v1393_v27  ;;  %1576 = vst [vmem:[%s2879_s7 + $0x170] sm:$0xff] %v1506_v31 }
 0x822   : > { %1575 = vst [vmem:[%s2879_s7 + $0x168] sm:$0xff] %v1395_v23  ;;  %1577 = vst [vmem:[%s2879_s7 + $0x178] sm:$0xff] %v1508_v25 }
 0x824   : > { %v1398_v45 = vpop.f32.mrb[28].mxu1  ;;  %v1511_v30 = vpop.f32.mrb[28].mxu0 }
 0x825   : > { %v1399_v32 = vadd.f32 %v1398_v45, %v2867_v28  ;;  %v1512_v34 = vadd.f32 %v1511_v30, %v2869_v0  ;;  %v1400_v46 = vpop.f32.mrb[29].mxu1  ;;  %v1513_v49 = vpop.f32.mrb[29].mxu0 }
 0x826   : > { %v1401_v37 = vadd.f32 %v1400_v46, %v2872_v47  ;;  %v1514_v50 = vadd.f32 %v1513_v49, %v2874_v60  ;;  %v1402_v38 = vpop.f32.mrb[30].mxu1  ;;  %v1515_v52 = vpop.f32.mrb[30].mxu0 }
 0x827   : > { %1578 = vst [vmem:[%s2879_s7 + $0x180] sm:$0xff] %v1399_v32  ;;  %1580 = vst [vmem:[%s2879_s7 + $0x190] sm:$0xff] %v1512_v34  ;;  %v1403_v40 = vadd.f32 %v1402_v38, %v2867_v28  ;;  %v1516_v53 = vadd.f32 %v1515_v52, %v2869_v0  ;;  %v1404_v4 = vpop.f32.mrb[31].mxu1  ;;  %v1517_v8 = vpop.f32.mrb[31].mxu0 }
 0x828   : > { %1579 = vst [vmem:[%s2879_s7 + $0x188] sm:$0xff] %v1401_v37  ;;  %1581 = vst [vmem:[%s2879_s7 + $0x198] sm:$0xff] %v1514_v50  ;;  %v1405_v54 = vadd.f32 %v1404_v4, %v2872_v47  ;;  %v1518_v55 = vadd.f32 %v1517_v8, %v2874_v60 }
 0x829   : > { %1582 = vst [vmem:[%s2879_s7 + $0x1a0] sm:$0xff] %v1403_v40  ;;  %1584 = vst [vmem:[%s2879_s7 + $0x1b0] sm:$0xff] %v1516_v53 }
 0x82a   : > { %1583 = vst [vmem:[%s2879_s7 + $0x1a8] sm:$0xff] %v1405_v54  ;;  %1585 = vst [vmem:[%s2879_s7 + $0x1b8] sm:$0xff] %v1518_v55 }
 0x82c   : > { %v1408_v57 = vpop.f32.mrb[32].mxu1 }
 0x82d   : > { %v1409_v22 = vadd.f32 %v1408_v57, %v2867_v28  ;;  %v1410_v18 = vpop.f32.mrb[33].mxu1 }
 0x82e   : > { %v1411_v20 = vadd.f32 %v1410_v18, %v2872_v47  ;;  %v1412_v21 = vpop.f32.mrb[34].mxu1 }
 0x82f   : > { %1586 = vst [vmem:[%s2879_s7 + $0x1c0] sm:$0xff] %v1409_v22  ;;  %v1413_v58 = vadd.f32 %v1412_v21, %v2867_v28  ;;  %v1414_v1 = vpop.f32.mrb[35].mxu1 }
 0x830   : > { %1587 = vst [vmem:[%s2879_s7 + $0x1c8] sm:$0xff] %v1411_v20  ;;  %v1415_v62 = vadd.f32 %v1414_v1, %v2872_v47 }
 0x831   : > { %1590 = vst [vmem:[%s2879_s7 + $0x1e0] sm:$0xff] %v1413_v58 }
 0x832   : > { %1591 = vst [vmem:[%s2879_s7 + $0x1e8] sm:$0xff] %v1415_v62 }
 0x834   : > { %v1521_v36 = vpop.f32.mrb[36].mxu1 }
 0x835   : > { %v1522_v51 = vadd.f32 %v1521_v36, %v2869_v0  ;;  %v1523_v56 = vpop.f32.mrb[37].mxu1 }
 0x836   : > { %v1524_v48 = vadd.f32 %v1523_v56, %v2874_v60  ;;  %v1525_v9 = vpop.f32.mrb[38].mxu1 }
 0x837   : > { %1588 = vst [vmem:[%s2879_s7 + $0x1d0] sm:$0xff] %v1522_v51  ;;  %v1526_v44 = vadd.f32 %v1525_v9, %v2869_v0  ;;  %v1527_v13 = vpop.f32.mrb[39].mxu1 }
 0x838   : > { %1589 = vst [vmem:[%s2879_s7 + $0x1d8] sm:$0xff] %v1524_v48  ;;  %v1528_v28 = vadd.f32 %v1527_v13, %v2874_v60 }
 0x839   : > { %1592 = vst [vmem:[%s2879_s7 + $0x1f0] sm:$0xff] %v1526_v44 }
 0x83a   : > { %1593 = vst [vmem:[%s2879_s7 + $0x1f8] sm:$0xff] %v1528_v28 }
 0x83b PF: > { %s19_s21 = sadd.s32 1, %s2136_s21  }
 0x83c   : > { %p16_p6 = scmp.ge.s32.totalorder %s19_s21, 6  }
 0x83e   :  { %18 = sbr.rel (!%p16_p6) target bundleno = 3 (0x3), region = 91 }
 0x845   :  { %1615 = vsyncpa [#allocation3], 1 }
 0x846   :  { %1617 = vsyncpa [#allocation3 + $0x1], 1 }
 0x847   :  { %1618 = vsyncpa [#allocation5], 1 }
 0x848   :  { %1619 = vsyncpa [#allocation8], 1 }

// kernel: _lambda_.3
= control target key start
LH: loop header
LB: loop body
LE: loop exit
PB: predicated region body
PF: predicated region fallthrough
CT: control target
= control target key end

     0   :  { %s886_s12 = smov 0   ;;  %s1182_s0 = inlined_call_operand.vmem [shape: f32[4,2,64,128], index: 0, kind: input, shape index: {}]   ;;  %s1183_s1 = inlined_call_operand.vmem [shape: bf16[128,512], index: 1, kind: input, shape index: {}]   ;;  %s1184_s2 = inlined_call_operand.vmem [shape: f32[1,512], index: 2, kind: input, shape index: {}]   ;;  %s1185_s3 = inlined_call_operand.vmem [shape: f32[4,128,512], index: 3, kind: output, shape index: {}]  }
   0x1 LB: > { %s755_s13 = sadd.s32 4294967295, %s863_s12   ;;  %p759_p0 = scmp.ge.s32.totalorder %s863_s12, 1  ;;  %s863_s12 = sphi %s886_s12, %s13_s12  }
   0x2   : > { %p137_p1 = scmp.lt.s32.totalorder %s863_s12, 5 }
   0x4   : > { %p138_p2 = pnand %p759_p0, %p137_p1 }
   0x5   : > { %v809_v0 = vld [vmem:[%s1183_s1 + $0x4] ss:$16 sps:$4 sm:$0xff] (!%p138_p2)   ;;  %v811_v1 = vld [vmem:[%s1183_s1 + $0xc] ss:$16 sps:$4 sm:$0xff] (!%p138_p2)   ;;  %v865_v2 = vmov (!%p138_p2), 0   ;;  %p161_p3 = scmp.lt.s32.totalorder (!%p138_p2), %s755_s13, 3  ;;  %v230_v57 = vlaneseq (!%p138_p2) }
   0x6   : > { %141 = sbr.rel (%p138_p2) target bundleno = 313 (0x139), region = 32  ;;  %442 = vmatprep.mubr.bf16.mxu0 (!%p138_p2), %v865_v2  ;;  %555 = vmatprep.mubr.bf16.mxu1 (!%p138_p2), %v865_v2  ;;  %v813_v3 = vld [vmem:[%s1183_s1] ss:$16 sps:$4 sm:$0xff] (!%p138_p2)   ;;  %v814_v4 = vld [vmem:[%s1183_s1 + $0x8] ss:$16 sps:$4 sm:$0xff] (!%p138_p2)  }
   0x7   : > { %410 = vmatprep.subr.bf16.mxu0 (!%p138_p2), %v809_v0  ;;  %523 = vmatprep.subr.bf16.mxu1 (!%p138_p2), %v811_v1  ;;  %v815_v5 = vld [vmem:[%s1183_s1 + $0x24] ss:$16 sps:$4 sm:$0xff] (!%p138_p2)   ;;  %v817_v6 = vld [vmem:[%s1183_s1 + $0x2c] ss:$16 sps:$4 sm:$0xff] (!%p138_p2)   ;;  %v819_v7 = vld [vmem:[%s1183_s1 + $0x20] ss:$16 sps:$4 sm:$0xff] (!%p138_p2)  }
   0x8   : > { %411 = vmatpush1.bf16.msra.mxu0 (!%p138_p2), %v813_v3  ;;  %524 = vmatpush1.bf16.msra.mxu1 (!%p138_p2), %v814_v4  ;;  %v820_v8 = vld [vmem:[%s1183_s1 + $0x28] ss:$16 sps:$4 sm:$0xff] (!%p138_p2)   ;;  %v821_v9 = vld [vmem:[%s1183_s1 + $0x44] ss:$16 sps:$4 sm:$0xff] (!%p138_p2)   ;;  %v823_v10 = vld [vmem:[%s1183_s1 + $0x4c] ss:$16 sps:$4 sm:$0xff] (!%p138_p2)  }
   0x9   : > { %412 = vmatprep.subr.bf16.mxu0 (!%p138_p2), %v815_v5  ;;  %525 = vmatprep.subr.bf16.mxu1 (!%p138_p2), %v817_v6  ;;  %v825_v11 = vld [vmem:[%s1183_s1 + $0x40] ss:$16 sps:$4 sm:$0xff] (!%p138_p2)   ;;  %v826_v12 = vld [vmem:[%s1183_s1 + $0x48] ss:$16 sps:$4 sm:$0xff] (!%p138_p2)   ;;  %v827_v13 = vld [vmem:[%s1183_s1 + $0x64] ss:$16 sps:$4 sm:$0xff] (!%p138_p2)  }
   0xa   : > { %v829_v14 = vld [vmem:[%s1183_s1 + $0x6c] ss:$16 sps:$4 sm:$0xff] (!%p138_p2)   ;;  %v831_v15 = vld [vmem:[%s1183_s1 + $0x60] ss:$16 sps:$4 sm:$0xff] (!%p138_p2)   ;;  %v832_v16 = vld [vmem:[%s1183_s1 + $0x68] ss:$16 sps:$4 sm:$0xff] (!%p138_p2)  }
   0xb   : > { %v833_v17 = vld [vmem:[%s1183_s1 + $0x84] ss:$16 sps:$4 sm:$0xff] (!%p138_p2)   ;;  %v835_v18 = vld [vmem:[%s1183_s1 + $0x8c] ss:$16 sps:$4 sm:$0xff] (!%p138_p2)   ;;  %v837_v19 = vld [vmem:[%s1183_s1 + $0x80] ss:$16 sps:$4 sm:$0xff] (!%p138_p2)  }
   0xc   : > { %413 = vmatpush1.bf16.msra.mxu0 (!%p138_p2), %v819_v7  ;;  %526 = vmatpush1.bf16.msra.mxu1 (!%p138_p2), %v820_v8  ;;  %v838_v20 = vld [vmem:[%s1183_s1 + $0x88] ss:$16 sps:$4 sm:$0xff] (!%p138_p2)   ;;  %v839_v21 = vld [vmem:[%s1183_s1 + $0xa4] ss:$16 sps:$4 sm:$0xff] (!%p138_p2)   ;;  %v841_v22 = vld [vmem:[%s1183_s1 + $0xac] ss:$16 sps:$4 sm:$0xff] (!%p138_p2)  }
   0xd   : > { %414 = vmatprep.subr.bf16.mxu0 %v821_v9  ;;  %527 = vmatprep.subr.bf16.mxu1 %v823_v10  ;;  %s1187_s13 = smov (!%p161_p3, %s755_s13), 3  ;;  %v843_v23 = vld [vmem:[%s1183_s1 + $0xa0] ss:$16 sps:$4 sm:$0xff]   ;;  %v844_v24 = vld [vmem:[%s1183_s1 + $0xa8] ss:$16 sps:$4 sm:$0xff]   ;;  %v231_v58 = vshrl.u32 %v230_v57, 7 }
   0xe   : > { %v845_v25 = vld [vmem:[%s1183_s1 + $0xc4] ss:$16 sps:$4 sm:$0xff]   ;;  %v847_v26 = vld [vmem:[%s1183_s1 + $0xcc] ss:$16 sps:$4 sm:$0xff]   ;;  %s798_s16 = sshll.u32 %s1187_s13, 7  ;;  %s799_s7 = sshll.u32 %s1187_s13, 9 }
   0xf   : > { %v849_v27 = vld [vmem:[%s1183_s1 + $0xc0] ss:$16 sps:$4 sm:$0xff]   ;;  %v850_v28 = vld [vmem:[%s1183_s1 + $0xc8] ss:$16 sps:$4 sm:$0xff]   ;;  %v851_v29 = vld [vmem:[%s1183_s1 + $0xe4] ss:$16 sps:$4 sm:$0xff]   ;;  %s996_s27 = scalar_lea.vmem %s1182_s0, %s798_s16  ;;  %s1049_s10 = scalar_lea.vmem %s1185_s3, %s799_s7 }
  0x10   : > { %415 = vmatpush1.bf16.msra.mxu0 %v825_v11  ;;  %528 = vmatpush1.bf16.msra.mxu1 %v826_v12  ;;  %v853_v30 = vld [vmem:[%s1183_s1 + $0xec] ss:$16 sps:$4 sm:$0xff]   ;;  %v855_v31 = vld [vmem:[%s1183_s1 + $0xe0] ss:$16 sps:$4 sm:$0xff]   ;;  %v856_v32 = vld [vmem:[%s1183_s1 + $0xe8] ss:$16 sps:$4 sm:$0xff]  }
  0x11   : > { %416 = vmatprep.subr.bf16.mxu0 %v827_v13  ;;  %529 = vmatprep.subr.bf16.mxu1 %v829_v14  ;;  %v172_v33 = vld [vmem:[%s996_s27] sm:$0xff]  ;;  %v173_v34 = vld [vmem:[%s996_s27 + $0x8] sm:$0xff]  ;;  %v174_v36 = vld [vmem:[%s996_s27 + $0x10] sm:$0xff]  ;;  %v232_v59 = vsub.s32 0, %v231_v58  ;;  %v240_v60 = vsub.s32 2, %v231_v58  ;;  %v236_v62 = vsub.s32 1, %v231_v58 }
  0x12   : > { %v188_v35 = vpack.c.bf16 %v173_v34, %v172_v33  ;;  %v175_v37 = vld [vmem:[%s996_s27 + $0x18] sm:$0xff]  ;;  %v176_v39 = vld [vmem:[%s996_s27 + $0x20] sm:$0xff]  ;;  %v177_v40 = vld [vmem:[%s996_s27 + $0x28] sm:$0xff]  ;;  %v244_v63 = vsub.s32 3, %v231_v58 }
  0x13   : > { %v189_v38 = vpack.c.bf16 %v175_v37, %v174_v36  ;;  %v190_v41 = vpack.c.bf16 %v177_v40, %v176_v39  ;;  %v178_v42 = vld [vmem:[%s996_s27 + $0x30] sm:$0xff]  ;;  %v179_v43 = vld [vmem:[%s996_s27 + $0x38] sm:$0xff]  ;;  %v180_v45 = vld [vmem:[%s996_s27 + $0x40] sm:$0xff] }
  0x14   : > { %417 = vmatpush1.bf16.msra.mxu0 %v831_v15  ;;  %530 = vmatpush1.bf16.msra.mxu1 %v832_v16  ;;  %v191_v44 = vpack.c.bf16 %v179_v43, %v178_v42  ;;  %v181_v46 = vld [vmem:[%s996_s27 + $0x48] sm:$0xff]  ;;  %v182_v48 = vld [vmem:[%s996_s27 + $0x50] sm:$0xff]  ;;  %v183_v49 = vld [vmem:[%s996_s27 + $0x58] sm:$0xff] }
  0x15   : > { %418 = vmatprep.subr.bf16.mxu0 %v833_v17  ;;  %531 = vmatprep.subr.bf16.mxu1 %v835_v18  ;;  %v192_v47 = vpack.c.bf16 %v181_v46, %v180_v45  ;;  %v193_v50 = vpack.c.bf16 %v183_v49, %v182_v48  ;;  %v184_v51 = vld [vmem:[%s996_s27 + $0x60] sm:$0xff]  ;;  %v185_v52 = vld [vmem:[%s996_s27 + $0x68] sm:$0xff]  ;;  %v186_v54 = vld [vmem:[%s996_s27 + $0x70] sm:$0xff] }
  0x16   : > { %v194_v53 = vpack.c.bf16 %v185_v52, %v184_v51  ;;  %v187_v55 = vld [vmem:[%s996_s27 + $0x78] sm:$0xff]  ;;  %v228_v61 = vld [vmem:[%s1184_s2] sm:$0xf] }
  0x17   : > { %v195_v56 = vpack.c.bf16 %v187_v55, %v186_v54  ;;  %v1038_v0 = vrot.slane %v228_v61, %v232_v59  ;;  %v1040_v1 = vrot.slane %v228_v61, %v240_v60  ;;  %v1044_v3 = vrot.slane %v228_v61, %v244_v63 }
  0x18   : > { %419 = vmatpush1.bf16.msra.mxu0 %v837_v19  ;;  %532 = vmatpush1.bf16.msra.mxu1 %v838_v20 }
  0x19   : > { %420 = vmatprep.subr.bf16.mxu0 %v839_v21  ;;  %533 = vmatprep.subr.bf16.mxu1 %v841_v22 }
  0x1c   : > { %421 = vmatpush1.bf16.msra.mxu0 %v843_v23  ;;  %534 = vmatpush1.bf16.msra.mxu1 %v844_v24 }
  0x1d   : > { %422 = vmatprep.subr.bf16.mxu0 %v845_v25  ;;  %535 = vmatprep.subr.bf16.mxu1 %v847_v26 }
  0x20   : > { %423 = vmatpush1.bf16.msra.mxu0 %v849_v27  ;;  %536 = vmatpush1.bf16.msra.mxu1 %v850_v28 }
  0x21   : > { %424 = vmatprep.subr.bf16.mxu0 %v851_v29  ;;  %537 = vmatprep.subr.bf16.mxu1 %v853_v30 }
  0x24   : > { %425 = vmatpush1.bf16.msra.mxu0 %v855_v31  ;;  %538 = vmatpush1.bf16.msra.mxu1 %v856_v32 }
  0x27   : > { %443 = vmatmul.mubr.bf16.vlgmr.msra.gmra.mrb[0].mxu0 %v188_v35  ;;  %556 = vmatmul.mubr.bf16.vlgmr.msra.gmra.mrb[0].mxu1 %v188_v35 }
  0x28   : > { %452 = vmatprep.mubr.bf16.mxu0 %v865_v2  ;;  %565 = vmatprep.mubr.bf16.mxu1 %v865_v2 }
  0x2f   : > { %453 = vmatmul.mubr.bf16.gmra.mrb[4].mxu0 %v189_v38  ;;  %566 = vmatmul.mubr.bf16.gmra.mrb[4].mxu1 %v189_v38 }
  0x30   : > { %462 = vmatprep.mubr.bf16.mxu0 %v865_v2  ;;  %575 = vmatprep.mubr.bf16.mxu1 %v865_v2 }
  0x37   : > { %463 = vmatmul.mubr.bf16.gmra.mrb[8].mxu0 %v190_v41  ;;  %576 = vmatmul.mubr.bf16.gmra.mrb[8].mxu1 %v190_v41 }
  0x38   : > { %472 = vmatprep.mubr.bf16.mxu0 %v865_v2  ;;  %585 = vmatprep.mubr.bf16.mxu1 %v865_v2 }
  0x3f   : > { %473 = vmatmul.mubr.bf16.gmra.mrb[12].mxu0 %v191_v44  ;;  %586 = vmatmul.mubr.bf16.gmra.mrb[12].mxu1 %v191_v44 }
  0x40   : > { %482 = vmatprep.mubr.bf16.mxu0 %v865_v2  ;;  %595 = vmatprep.mubr.bf16.mxu1 %v865_v2 }
  0x47   : > { %483 = vmatmul.mubr.bf16.gmra.mrb[16].mxu0 %v192_v47  ;;  %596 = vmatmul.mubr.bf16.gmra.mrb[16].mxu1 %v192_v47 }
  0x48   : > { %492 = vmatprep.mubr.bf16.mxu0 %v865_v2  ;;  %605 = vmatprep.mubr.bf16.mxu1 %v865_v2 }
  0x4f   : > { %493 = vmatmul.mubr.bf16.gmra.mrb[20].mxu0 %v193_v50  ;;  %606 = vmatmul.mubr.bf16.gmra.mrb[20].mxu1 %v193_v50 }
  0x50   : > { %502 = vmatprep.mubr.bf16.mxu0 %v865_v2  ;;  %615 = vmatprep.mubr.bf16.mxu1 %v865_v2 }
  0x57   : > { %503 = vmatmul.mubr.bf16.gmra.mrb[24].mxu0 %v194_v53  ;;  %616 = vmatmul.mubr.bf16.gmra.mrb[24].mxu1 %v194_v53 }
  0x58   : > { %512 = vmatprep.mubr.bf16.mxu0 %v865_v2  ;;  %625 = vmatprep.mubr.bf16.mxu1 %v865_v2  ;;  %v1042_v2 = vrot.slane %v228_v61, %v236_v62 }
  0x5f   : > { %513 = vmatmul.mubr.bf16.gmra.mrb[28].mxu0 %v195_v56  ;;  %626 = vmatmul.mubr.bf16.gmra.mrb[28].mxu1 %v195_v56 }
  0xfa   : > { %v444_v4 = vpop.f32.mrb[0].mxu0  ;;  %v557_v5 = vpop.f32.mrb[0].mxu1 }
  0xfb   : > { %v445_v6 = vadd.f32 %v444_v4, %v1038_v0  ;;  %v558_v7 = vadd.f32 %v557_v5, %v1040_v1  ;;  %v446_v8 = vpop.f32.mrb[1].mxu0  ;;  %v559_v9 = vpop.f32.mrb[1].mxu1 }
  0xfc   : > { %v447_v10 = vadd.f32 %v446_v8, %v1042_v2  ;;  %v560_v11 = vadd.f32 %v559_v9, %v1044_v3  ;;  %v448_v12 = vpop.f32.mrb[2].mxu0  ;;  %v561_v13 = vpop.f32.mrb[2].mxu1 }
  0xfd   : > { %636 = vst [vmem:[%s1049_s10] sm:$0xff] %v445_v6  ;;  %638 = vst [vmem:[%s1049_s10 + $0x10] sm:$0xff] %v558_v7  ;;  %v449_v14 = vadd.f32 %v448_v12, %v1038_v0  ;;  %v562_v15 = vadd.f32 %v561_v13, %v1040_v1  ;;  %v450_v16 = vpop.f32.mrb[3].mxu0  ;;  %v563_v17 = vpop.f32.mrb[3].mxu1 }
  0xfe   : > { %637 = vst [vmem:[%s1049_s10 + $0x8] sm:$0xff] %v447_v10  ;;  %639 = vst [vmem:[%s1049_s10 + $0x18] sm:$0xff] %v560_v11  ;;  %v451_v18 = vadd.f32 %v450_v16, %v1042_v2  ;;  %v564_v19 = vadd.f32 %v563_v17, %v1044_v3 }
  0xff   : > { %640 = vst [vmem:[%s1049_s10 + $0x20] sm:$0xff] %v449_v14  ;;  %642 = vst [vmem:[%s1049_s10 + $0x30] sm:$0xff] %v562_v15 }
 0x100   : > { %641 = vst [vmem:[%s1049_s10 + $0x28] sm:$0xff] %v451_v18  ;;  %643 = vst [vmem:[%s1049_s10 + $0x38] sm:$0xff] %v564_v19 }
 0x102   : > { %v454_v20 = vpop.f32.mrb[4].mxu0  ;;  %v567_v21 = vpop.f32.mrb[4].mxu1 }
 0x103   : > { %v455_v22 = vadd.f32 %v454_v20, %v1038_v0  ;;  %v568_v23 = vadd.f32 %v567_v21, %v1040_v1  ;;  %v456_v24 = vpop.f32.mrb[5].mxu0  ;;  %v569_v25 = vpop.f32.mrb[5].mxu1 }
 0x104   : > { %v457_v26 = vadd.f32 %v456_v24, %v1042_v2  ;;  %v570_v27 = vadd.f32 %v569_v25, %v1044_v3  ;;  %v458_v28 = vpop.f32.mrb[6].mxu0  ;;  %v571_v29 = vpop.f32.mrb[6].mxu1 }
 0x105   : > { %644 = vst [vmem:[%s1049_s10 + $0x40] sm:$0xff] %v455_v22  ;;  %646 = vst [vmem:[%s1049_s10 + $0x50] sm:$0xff] %v568_v23  ;;  %v459_v30 = vadd.f32 %v458_v28, %v1038_v0  ;;  %v572_v31 = vadd.f32 %v571_v29, %v1040_v1  ;;  %v460_v32 = vpop.f32.mrb[7].mxu0  ;;  %v573_v33 = vpop.f32.mrb[7].mxu1 }
 0x106   : > { %645 = vst [vmem:[%s1049_s10 + $0x48] sm:$0xff] %v457_v26  ;;  %647 = vst [vmem:[%s1049_s10 + $0x58] sm:$0xff] %v570_v27  ;;  %v461_v34 = vadd.f32 %v460_v32, %v1042_v2  ;;  %v574_v35 = vadd.f32 %v573_v33, %v1044_v3 }
 0x107   : > { %648 = vst [vmem:[%s1049_s10 + $0x60] sm:$0xff] %v459_v30  ;;  %650 = vst [vmem:[%s1049_s10 + $0x70] sm:$0xff] %v572_v31 }
 0x108   : > { %649 = vst [vmem:[%s1049_s10 + $0x68] sm:$0xff] %v461_v34  ;;  %651 = vst [vmem:[%s1049_s10 + $0x78] sm:$0xff] %v574_v35 }
 0x10a   : > { %v464_v36 = vpop.f32.mrb[8].mxu0  ;;  %v577_v37 = vpop.f32.mrb[8].mxu1 }
 0x10b   : > { %v465_v38 = vadd.f32 %v464_v36, %v1038_v0  ;;  %v578_v39 = vadd.f32 %v577_v37, %v1040_v1  ;;  %v466_v40 = vpop.f32.mrb[9].mxu0  ;;  %v579_v41 = vpop.f32.mrb[9].mxu1 }
 0x10c   : > { %v467_v42 = vadd.f32 %v466_v40, %v1042_v2  ;;  %v580_v43 = vadd.f32 %v579_v41, %v1044_v3  ;;  %v468_v44 = vpop.f32.mrb[10].mxu0  ;;  %v581_v45 = vpop.f32.mrb[10].mxu1 }
 0x10d   : > { %652 = vst [vmem:[%s1049_s10 + $0x80] sm:$0xff] %v465_v38  ;;  %654 = vst [vmem:[%s1049_s10 + $0x90] sm:$0xff] %v578_v39  ;;  %v469_v46 = vadd.f32 %v468_v44, %v1038_v0  ;;  %v582_v47 = vadd.f32 %v581_v45, %v1040_v1  ;;  %v470_v48 = vpop.f32.mrb[11].mxu0  ;;  %v583_v49 = vpop.f32.mrb[11].mxu1 }
 0x10e   : > { %653 = vst [vmem:[%s1049_s10 + $0x88] sm:$0xff] %v467_v42  ;;  %655 = vst [vmem:[%s1049_s10 + $0x98] sm:$0xff] %v580_v43  ;;  %v471_v50 = vadd.f32 %v470_v48, %v1042_v2  ;;  %v584_v51 = vadd.f32 %v583_v49, %v1044_v3 }
 0x10f   : > { %656 = vst [vmem:[%s1049_s10 + $0xa0] sm:$0xff] %v469_v46  ;;  %658 = vst [vmem:[%s1049_s10 + $0xb0] sm:$0xff] %v582_v47 }
 0x110   : > { %657 = vst [vmem:[%s1049_s10 + $0xa8] sm:$0xff] %v471_v50  ;;  %659 = vst [vmem:[%s1049_s10 + $0xb8] sm:$0xff] %v584_v51 }
 0x112   : > { %v474_v52 = vpop.f32.mrb[12].mxu0  ;;  %v587_v53 = vpop.f32.mrb[12].mxu1 }
 0x113   : > { %v475_v54 = vadd.f32 %v474_v52, %v1038_v0  ;;  %v588_v55 = vadd.f32 %v587_v53, %v1040_v1  ;;  %v476_v56 = vpop.f32.mrb[13].mxu0  ;;  %v589_v57 = vpop.f32.mrb[13].mxu1 }
 0x114   : > { %v477_v58 = vadd.f32 %v476_v56, %v1042_v2  ;;  %v590_v59 = vadd.f32 %v589_v57, %v1044_v3  ;;  %v478_v60 = vpop.f32.mrb[14].mxu0  ;;  %v591_v61 = vpop.f32.mrb[14].mxu1 }
 0x115   : > { %660 = vst [vmem:[%s1049_s10 + $0xc0] sm:$0xff] %v475_v54  ;;  %662 = vst [vmem:[%s1049_s10 + $0xd0] sm:$0xff] %v588_v55  ;;  %v479_v62 = vadd.f32 %v478_v60, %v1038_v0  ;;  %v592_v63 = vadd.f32 %v591_v61, %v1040_v1  ;;  %v480_v4 = vpop.f32.mrb[15].mxu0  ;;  %v593_v5 = vpop.f32.mrb[15].mxu1 }
 0x116   : > { %661 = vst [vmem:[%s1049_s10 + $0xc8] sm:$0xff] %v477_v58  ;;  %663 = vst [vmem:[%s1049_s10 + $0xd8] sm:$0xff] %v590_v59  ;;  %v481_v6 = vadd.f32 %v480_v4, %v1042_v2  ;;  %v594_v7 = vadd.f32 %v593_v5, %v1044_v3 }
 0x117   : > { %664 = vst [vmem:[%s1049_s10 + $0xe0] sm:$0xff] %v479_v62  ;;  %666 = vst [vmem:[%s1049_s10 + $0xf0] sm:$0xff] %v592_v63 }
 0x118   : > { %665 = vst [vmem:[%s1049_s10 + $0xe8] sm:$0xff] %v481_v6  ;;  %667 = vst [vmem:[%s1049_s10 + $0xf8] sm:$0xff] %v594_v7 }
 0x11a   : > { %v484_v8 = vpop.f32.mrb[16].mxu0  ;;  %v597_v9 = vpop.f32.mrb[16].mxu1 }
 0x11b   : > { %v485_v10 = vadd.f32 %v484_v8, %v1038_v0  ;;  %v598_v11 = vadd.f32 %v597_v9, %v1040_v1  ;;  %v486_v12 = vpop.f32.mrb[17].mxu0  ;;  %v599_v13 = vpop.f32.mrb[17].mxu1 }
 0x11c   : > { %v487_v14 = vadd.f32 %v486_v12, %v1042_v2  ;;  %v600_v15 = vadd.f32 %v599_v13, %v1044_v3  ;;  %v488_v16 = vpop.f32.mrb[18].mxu0  ;;  %v601_v17 = vpop.f32.mrb[18].mxu1 }
 0x11d   : > { %668 = vst [vmem:[%s1049_s10 + $0x100] sm:$0xff] %v485_v10  ;;  %670 = vst [vmem:[%s1049_s10 + $0x110] sm:$0xff] %v598_v11  ;;  %v489_v18 = vadd.f32 %v488_v16, %v1038_v0  ;;  %v602_v19 = vadd.f32 %v601_v17, %v1040_v1  ;;  %v490_v20 = vpop.f32.mrb[19].mxu0  ;;  %v603_v21 = vpop.f32.mrb[19].mxu1 }
 0x11e   : > { %669 = vst [vmem:[%s1049_s10 + $0x108] sm:$0xff] %v487_v14  ;;  %671 = vst [vmem:[%s1049_s10 + $0x118] sm:$0xff] %v600_v15  ;;  %v491_v22 = vadd.f32 %v490_v20, %v1042_v2  ;;  %v604_v23 = vadd.f32 %v603_v21, %v1044_v3 }
 0x11f   : > { %672 = vst [vmem:[%s1049_s10 + $0x120] sm:$0xff] %v489_v18  ;;  %674 = vst [vmem:[%s1049_s10 + $0x130] sm:$0xff] %v602_v19 }
 0x120   : > { %673 = vst [vmem:[%s1049_s10 + $0x128] sm:$0xff] %v491_v22  ;;  %675 = vst [vmem:[%s1049_s10 + $0x138] sm:$0xff] %v604_v23 }
 0x122   : > { %v494_v24 = vpop.f32.mrb[20].mxu0  ;;  %v607_v25 = vpop.f32.mrb[20].mxu1 }
 0x123   : > { %v495_v26 = vadd.f32 %v494_v24, %v1038_v0  ;;  %v608_v27 = vadd.f32 %v607_v25, %v1040_v1  ;;  %v496_v28 = vpop.f32.mrb[21].mxu0  ;;  %v609_v29 = vpop.f32.mrb[21].mxu1 }
 0x124   : > { %v497_v30 = vadd.f32 %v496_v28, %v1042_v2  ;;  %v610_v31 = vadd.f32 %v609_v29, %v1044_v3  ;;  %v498_v32 = vpop.f32.mrb[22].mxu0  ;;  %v611_v33 = vpop.f32.mrb[22].mxu1 }
 0x125   : > { %676 = vst [vmem:[%s1049_s10 + $0x140] sm:$0xff] %v495_v26  ;;  %678 = vst [vmem:[%s1049_s10 + $0x150] sm:$0xff] %v608_v27  ;;  %v499_v34 = vadd.f32 %v498_v32, %v1038_v0  ;;  %v612_v35 = vadd.f32 %v611_v33, %v1040_v1  ;;  %v500_v36 = vpop.f32.mrb[23].mxu0  ;;  %v613_v37 = vpop.f32.mrb[23].mxu1 }
 0x126   : > { %677 = vst [vmem:[%s1049_s10 + $0x148] sm:$0xff] %v497_v30  ;;  %679 = vst [vmem:[%s1049_s10 + $0x158] sm:$0xff] %v610_v31  ;;  %v501_v38 = vadd.f32 %v500_v36, %v1042_v2  ;;  %v614_v39 = vadd.f32 %v613_v37, %v1044_v3 }
 0x127   : > { %680 = vst [vmem:[%s1049_s10 + $0x160] sm:$0xff] %v499_v34  ;;  %682 = vst [vmem:[%s1049_s10 + $0x170] sm:$0xff] %v612_v35 }
 0x128   : > { %681 = vst [vmem:[%s1049_s10 + $0x168] sm:$0xff] %v501_v38  ;;  %683 = vst [vmem:[%s1049_s10 + $0x178] sm:$0xff] %v614_v39 }
 0x12a   : > { %v504_v40 = vpop.f32.mrb[24].mxu0  ;;  %v617_v41 = vpop.f32.mrb[24].mxu1 }
 0x12b   : > { %v505_v42 = vadd.f32 %v504_v40, %v1038_v0  ;;  %v618_v43 = vadd.f32 %v617_v41, %v1040_v1  ;;  %v506_v44 = vpop.f32.mrb[25].mxu0  ;;  %v619_v45 = vpop.f32.mrb[25].mxu1 }
 0x12c   : > { %v507_v46 = vadd.f32 %v506_v44, %v1042_v2  ;;  %v620_v47 = vadd.f32 %v619_v45, %v1044_v3  ;;  %v508_v48 = vpop.f32.mrb[26].mxu0  ;;  %v621_v49 = vpop.f32.mrb[26].mxu1 }
 0x12d   : > { %684 = vst [vmem:[%s1049_s10 + $0x180] sm:$0xff] %v505_v42  ;;  %686 = vst [vmem:[%s1049_s10 + $0x190] sm:$0xff] %v618_v43  ;;  %v509_v50 = vadd.f32 %v508_v48, %v1038_v0  ;;  %v622_v51 = vadd.f32 %v621_v49, %v1040_v1  ;;  %v510_v52 = vpop.f32.mrb[27].mxu0  ;;  %v623_v53 = vpop.f32.mrb[27].mxu1 }
 0x12e   : > { %685 = vst [vmem:[%s1049_s10 + $0x188] sm:$0xff] %v507_v46  ;;  %687 = vst [vmem:[%s1049_s10 + $0x198] sm:$0xff] %v620_v47  ;;  %v511_v54 = vadd.f32 %v510_v52, %v1042_v2  ;;  %v624_v55 = vadd.f32 %v623_v53, %v1044_v3 }
 0x12f   : > { %688 = vst [vmem:[%s1049_s10 + $0x1a0] sm:$0xff] %v509_v50  ;;  %690 = vst [vmem:[%s1049_s10 + $0x1b0] sm:$0xff] %v622_v51 }
 0x130   : > { %689 = vst [vmem:[%s1049_s10 + $0x1a8] sm:$0xff] %v511_v54  ;;  %691 = vst [vmem:[%s1049_s10 + $0x1b8] sm:$0xff] %v624_v55 }
 0x132   : > { %v514_v56 = vpop.f32.mrb[28].mxu0  ;;  %v627_v57 = vpop.f32.mrb[28].mxu1 }
 0x133   : > { %v515_v58 = vadd.f32 %v514_v56, %v1038_v0  ;;  %v628_v59 = vadd.f32 %v627_v57, %v1040_v1  ;;  %v516_v60 = vpop.f32.mrb[29].mxu0  ;;  %v629_v61 = vpop.f32.mrb[29].mxu1 }
 0x134   : > { %v517_v62 = vadd.f32 %v516_v60, %v1042_v2  ;;  %v630_v63 = vadd.f32 %v629_v61, %v1044_v3  ;;  %v518_v4 = vpop.f32.mrb[30].mxu0  ;;  %v631_v5 = vpop.f32.mrb[30].mxu1 }
 0x135   : > { %692 = vst [vmem:[%s1049_s10 + $0x1c0] sm:$0xff] %v515_v58  ;;  %694 = vst [vmem:[%s1049_s10 + $0x1d0] sm:$0xff] %v628_v59  ;;  %v519_v6 = vadd.f32 %v518_v4, %v1038_v0  ;;  %v632_v7 = vadd.f32 %v631_v5, %v1040_v1  ;;  %v520_v8 = vpop.f32.mrb[31].mxu0  ;;  %v633_v9 = vpop.f32.mrb[31].mxu1 }
 0x136   : > { %693 = vst [vmem:[%s1049_s10 + $0x1c8] sm:$0xff] %v517_v62  ;;  %695 = vst [vmem:[%s1049_s10 + $0x1d8] sm:$0xff] %v630_v63  ;;  %v521_v10 = vadd.f32 %v520_v8, %v1042_v2  ;;  %v634_v11 = vadd.f32 %v633_v9, %v1044_v3 }
 0x137   : > { %696 = vst [vmem:[%s1049_s10 + $0x1e0] sm:$0xff] %v519_v6  ;;  %698 = vst [vmem:[%s1049_s10 + $0x1f0] sm:$0xff] %v632_v7 }
 0x138   : > { %697 = vst [vmem:[%s1049_s10 + $0x1e8] sm:$0xff] %v521_v10  ;;  %699 = vst [vmem:[%s1049_s10 + $0x1f8] sm:$0xff] %v634_v11 }
 0x139 PF: > { %s13_s12 = sadd.s32 1, %s863_s12  }
 0x13a   : > { %p10_p4 = scmp.ge.s32.totalorder %s13_s12, 6  }
 0x13c   :  { %12 = sbr.rel (!%p10_p4) target bundleno = 1 (0x1), region = 62 }

// kernel: _lambda_.5
= control target key start
LH: loop header
LB: loop body
LE: loop exit
PB: predicated region body
PF: predicated region fallthrough
CT: control target
= control target key end

     0   :  { %s1610_s9 = smov 0   ;;  %s1612_s10 = smov 0   ;;  %s1947_s0 = inlined_call_operand.vmem [shape: f32[2,4,128,512], index: 0, kind: input, shape index: {}]   ;;  %s1948_s1 = inlined_call_operand.vmem [shape: bf16[2,128,512], index: 1, kind: input, shape index: {}]   ;;  %s1949_s2 = inlined_call_operand.vmem [shape: f32[2,2,128], index: 2, kind: output, shape index: {}]  }
   0x1   :  { %s1614_s11 = smov 0   ;;  %s1616_s12 = smov 0  }
   0x2   :  { %s1618_s13 = smov 0  }
   0x3 LB: > { %s21_s14 = sadd.s32 1, %s1583_s11  ;;  %s24_s15 = sadd.s32 1, %s1587_s12  ;;  %s1591_s13 = sphi %s1618_s13, %s12_s13   ;;  %s1587_s12 = sphi %s1616_s12, %s1953_s12   ;;  %s1583_s11 = sphi %s1614_s11, %s1952_s11   ;;  %s1579_s10 = sphi %s1612_s10, %s1951_s10   ;;  %s1575_s9 = sphi %s1610_s9, %s1950_s9  }
   0x4   : > { %p22_p0 = scmp.ge.s32.totalorder %s21_s14, 4  ;;  %p1259_p1 = scmp.ge.s32.totalorder %s1591_s13, 1 }
   0x5   : > { %p140_p2 = scmp.lt.s32.totalorder %s1591_s13, 9 }
   0x6   : > { %s1955_s14 = smov (%p22_p0, %s21_s14), 0  ;;  %s1957_s15 = smov (!%p22_p0, %s24_s15), %s1587_s12 }
   0x7   : > { %p141_p3 = pnand %p1259_p1, %p140_p2  ;;  %p26_p4 = scmp.ge.s32.totalorder %s1957_s15, 2 }
   0x8   : > { %p170_p5 = scmp.lt.s32.totalorder (!%p141_p3), %s1579_s10, 1  ;;  %p172_p6 = scmp.lt.s32.totalorder (!%p141_p3), %s1575_s9, 3 }
   0x9   : > { %s1959_s15 = smov (%p26_p4, %s1957_s15), 0  ;;  %144 = sbr.rel (%p141_p3) target bundleno = 414 (0x19e), region = 28 }
   0xa   : > { %p1266_p7 = scmp.ne.s32.totalorder (!%p141_p3), %s1575_s9, 0 }
  0x10   : > { %s1961_s10 = smov (!%p170_p5, %s1579_s10), 1  ;;  %192 = sbr.rel (%p1266_p7) target bundleno = 35 (0x23), region = 32 }
  0x11   : > { %s173_s16 = scalar_select %p172_p6, %s1575_s9, 3 }
  0x12   : > { %s1261_s17 = sshll.u32 %s1961_s10, 8  ;;  %s1265_s18 = sshll.u32 %s1961_s10, 1  ;;  %v1593_v0 = vmov (!%p1266_p7), 0.0  }
  0x13   : > { %s1260_s19 = sshll.u32 %s173_s16, 6  ;;  %s1647_s22 = scalar_lea.vmem %s1948_s1, %s1261_s17  ;;  %193 = vst [vmem:[#allocation2] sm:$0xff] (!%p1266_p7), %v1593_v0  ;;  %194 = vst [vmem:[#allocation2 + $0x8] sm:$0xff] (!%p1266_p7), %v1593_v0 }
  0x14   : > { %s176_s23 = sadd.s32 %s1261_s17, %s1260_s19  ;;  %s1652_s26 = scalar_lea.vmem %s1949_s2, %s1265_s18  ;;  %195 = vst [vmem:[#allocation2 + $0x10] sm:$0xff] (!%p1266_p7), %v1593_v0  ;;  %196 = vst [vmem:[#allocation2 + $0x18] sm:$0xff] (!%p1266_p7), %v1593_v0 }
  0x15   : > { %s1262_s27 = sshll.u32 %s176_s23, 3  ;;  %197 = vst [vmem:[#allocation2 + $0x20] sm:$0xff] (!%p1266_p7), %v1593_v0  ;;  %198 = vst [vmem:[#allocation2 + $0x28] sm:$0xff] (!%p1266_p7), %v1593_v0 }
  0x16   : > { %s1657_s30 = scalar_lea.vmem %s1947_s0, %s1262_s27  ;;  %199 = vst [vmem:[#allocation2 + $0x30] sm:$0xff] (!%p1266_p7), %v1593_v0  ;;  %200 = vst [vmem:[#allocation2 + $0x38] sm:$0xff] (!%p1266_p7), %v1593_v0 }
  0x17   : > { %201 = vst [vmem:[#allocation2 + $0x40] sm:$0xff] %v1593_v0  ;;  %202 = vst [vmem:[#allocation2 + $0x48] sm:$0xff] %v1593_v0 }
  0x18   : > { %203 = vst [vmem:[#allocation2 + $0x50] sm:$0xff] %v1593_v0  ;;  %204 = vst [vmem:[#allocation2 + $0x58] sm:$0xff] %v1593_v0 }
  0x19   : > { %205 = vst [vmem:[#allocation2 + $0x60] sm:$0xff] %v1593_v0  ;;  %206 = vst [vmem:[#allocation2 + $0x68] sm:$0xff] %v1593_v0 }
  0x1a   : > { %207 = vst [vmem:[#allocation2 + $0x70] sm:$0xff] %v1593_v0  ;;  %208 = vst [vmem:[#allocation2 + $0x78] sm:$0xff] %v1593_v0 }
  0x1b   : > { %209 = vst [vmem:[#allocation3] sm:$0xff] %v1593_v0  ;;  %210 = vst [vmem:[#allocation3 + $0x8] sm:$0xff] %v1593_v0 }
  0x1c   : > { %211 = vst [vmem:[#allocation3 + $0x10] sm:$0xff] %v1593_v0  ;;  %212 = vst [vmem:[#allocation3 + $0x18] sm:$0xff] %v1593_v0 }
  0x1d   : > { %213 = vst [vmem:[#allocation3 + $0x20] sm:$0xff] %v1593_v0  ;;  %214 = vst [vmem:[#allocation3 + $0x28] sm:$0xff] %v1593_v0 }
  0x1e   : > { %215 = vst [vmem:[#allocation3 + $0x30] sm:$0xff] %v1593_v0  ;;  %216 = vst [vmem:[#allocation3 + $0x38] sm:$0xff] %v1593_v0 }
  0x1f   : > { %217 = vst [vmem:[#allocation3 + $0x40] sm:$0xff] %v1593_v0  ;;  %218 = vst [vmem:[#allocation3 + $0x48] sm:$0xff] %v1593_v0 }
  0x20   : > { %219 = vst [vmem:[#allocation3 + $0x50] sm:$0xff] %v1593_v0  ;;  %220 = vst [vmem:[#allocation3 + $0x58] sm:$0xff] %v1593_v0 }
  0x21   : > { %221 = vst [vmem:[#allocation3 + $0x60] sm:$0xff] %v1593_v0  ;;  %222 = vst [vmem:[#allocation3 + $0x68] sm:$0xff] %v1593_v0 }
  0x22   : > { %223 = vst [vmem:[#allocation3 + $0x70] sm:$0xff] %v1593_v0  ;;  %224 = vst [vmem:[#allocation3 + $0x78] sm:$0xff] %v1593_v0 }
  0x23 PF: > { %v1345_v1 = vld [vmem:[%s1647_s22 + $0x4] ss:$16 sps:$4 sm:$0xff]   ;;  %v1347_v2 = vld [vmem:[%s1647_s22] ss:$16 sps:$4 sm:$0xff]   ;;  %v1594_v3 = vmov 0   ;;  %v300_v50 = vld [vmem:[#allocation2 + $0x58] sm:$0xff] }
  0x24   : > { %537 = vmatprep.mubr.bf16.mxu0 %v1594_v3  ;;  %650 = vmatprep.mubr.bf16.mxu1 %v1594_v3  ;;  %v1348_v4 = vld [vmem:[%s1647_s22 + $0xc] ss:$16 sps:$4 sm:$0xff]   ;;  %v1350_v5 = vld [vmem:[%s1647_s22 + $0x24] ss:$16 sps:$4 sm:$0xff]   ;;  %v1352_v6 = vld [vmem:[%s1647_s22 + $0x8] ss:$16 sps:$4 sm:$0xff]  }
  0x25   : > { %505 = vmatprep.subr.bf16.mxu0 %v1345_v1  ;;  %v1353_v7 = vld [vmem:[%s1647_s22 + $0x20] ss:$16 sps:$4 sm:$0xff]   ;;  %618 = vmatprep.subr.bf16.mxu1 %v1348_v4  ;;  %v1354_v8 = vld [vmem:[%s1647_s22 + $0x2c] ss:$16 sps:$4 sm:$0xff]   ;;  %v1356_v9 = vld [vmem:[%s1647_s22 + $0x44] ss:$16 sps:$4 sm:$0xff]  }
  0x26   : > { %506 = vmatpush1.bf16.msra.mxu0 %v1347_v2  ;;  %619 = vmatpush1.bf16.msra.mxu1 %v1352_v6  ;;  %v1358_v10 = vld [vmem:[%s1647_s22 + $0x28] ss:$16 sps:$4 sm:$0xff]   ;;  %v1359_v11 = vld [vmem:[%s1647_s22 + $0x40] ss:$16 sps:$4 sm:$0xff]   ;;  %v1360_v12 = vld [vmem:[%s1647_s22 + $0x4c] ss:$16 sps:$4 sm:$0xff]  }
  0x27   : > { %507 = vmatprep.subr.bf16.mxu0 %v1350_v5  ;;  %620 = vmatprep.subr.bf16.mxu1 %v1354_v8  ;;  %v1362_v13 = vld [vmem:[%s1647_s22 + $0x64] ss:$16 sps:$4 sm:$0xff]   ;;  %v1364_v14 = vld [vmem:[%s1647_s22 + $0x48] ss:$16 sps:$4 sm:$0xff]   ;;  %v1366_v15 = vld [vmem:[%s1647_s22 + $0x6c] ss:$16 sps:$4 sm:$0xff]  }
  0x28   : > { %v1365_v16 = vld [vmem:[%s1647_s22 + $0x60] ss:$16 sps:$4 sm:$0xff]   ;;  %v1368_v17 = vld [vmem:[%s1647_s22 + $0x84] ss:$16 sps:$4 sm:$0xff]   ;;  %v1370_v18 = vld [vmem:[%s1647_s22 + $0x68] ss:$16 sps:$4 sm:$0xff]  }
  0x29   : > { %v1372_v19 = vld [vmem:[%s1647_s22 + $0x8c] ss:$16 sps:$4 sm:$0xff]   ;;  %v1371_v20 = vld [vmem:[%s1647_s22 + $0x80] ss:$16 sps:$4 sm:$0xff]   ;;  %v1374_v21 = vld [vmem:[%s1647_s22 + $0xa4] ss:$16 sps:$4 sm:$0xff]  }
  0x2a   : > { %508 = vmatpush1.bf16.msra.mxu0 %v1353_v7  ;;  %621 = vmatpush1.bf16.msra.mxu1 %v1358_v10  ;;  %v1376_v22 = vld [vmem:[%s1647_s22 + $0x88] ss:$16 sps:$4 sm:$0xff]   ;;  %v1378_v23 = vld [vmem:[%s1647_s22 + $0xac] ss:$16 sps:$4 sm:$0xff]   ;;  %v1377_v24 = vld [vmem:[%s1647_s22 + $0xa0] ss:$16 sps:$4 sm:$0xff]  }
  0x2b   : > { %509 = vmatprep.subr.bf16.mxu0 %v1356_v9  ;;  %622 = vmatprep.subr.bf16.mxu1 %v1360_v12  ;;  %v1380_v25 = vld [vmem:[%s1647_s22 + $0xc4] ss:$16 sps:$4 sm:$0xff]   ;;  %v1382_v26 = vld [vmem:[%s1647_s22 + $0xa8] ss:$16 sps:$4 sm:$0xff]   ;;  %v1384_v27 = vld [vmem:[%s1647_s22 + $0xcc] ss:$16 sps:$4 sm:$0xff]  }
  0x2c   : > { %v1383_v28 = vld [vmem:[%s1647_s22 + $0xc0] ss:$16 sps:$4 sm:$0xff]   ;;  %v1386_v29 = vld [vmem:[%s1647_s22 + $0xe4] ss:$16 sps:$4 sm:$0xff]   ;;  %v1388_v30 = vld [vmem:[%s1647_s22 + $0xc8] ss:$16 sps:$4 sm:$0xff]  }
  0x2d   : > { %v1390_v31 = vld [vmem:[%s1647_s22 + $0xec] ss:$16 sps:$4 sm:$0xff]   ;;  %v1389_v32 = vld [vmem:[%s1647_s22 + $0xe0] ss:$16 sps:$4 sm:$0xff]   ;;  %v1392_v35 = vld [vmem:[%s1647_s22 + $0xe8] ss:$16 sps:$4 sm:$0xff]  }
  0x2e   : > { %510 = vmatpush1.bf16.msra.mxu0 %v1359_v11  ;;  %623 = vmatpush1.bf16.msra.mxu1 %v1364_v14  ;;  %v289_v33 = vld [vmem:[#allocation2] sm:$0xff]  ;;  %v290_v34 = vld [vmem:[#allocation2 + $0x8] sm:$0xff]  ;;  %v291_v37 = vld [vmem:[#allocation2 + $0x10] sm:$0xff]  ;;  %p1299_p8 = scmp.ne.s32.totalorder %s1575_s9, 3 }
  0x2f   : > { %511 = vmatprep.subr.bf16.mxu0 %v1362_v13  ;;  %624 = vmatprep.subr.bf16.mxu1 %v1366_v15  ;;  %v305_v36 = vpack.c.bf16 %v290_v34, %v289_v33  ;;  %v292_v38 = vld [vmem:[#allocation2 + $0x18] sm:$0xff]  ;;  %v293_v40 = vld [vmem:[#allocation2 + $0x20] sm:$0xff]  ;;  %v294_v41 = vld [vmem:[#allocation2 + $0x28] sm:$0xff]  ;;  %vm1166_vm0 = vcmask (!%p1299_p8), 1041409  }
  0x30   : > { %v306_v39 = vpack.c.bf16 %v292_v38, %v291_v37  ;;  %v307_v42 = vpack.c.bf16 %v294_v41, %v293_v40  ;;  %v295_v43 = vld [vmem:[#allocation2 + $0x30] sm:$0xff]  ;;  %v296_v44 = vld [vmem:[#allocation2 + $0x38] sm:$0xff]  ;;  %v297_v46 = vld [vmem:[#allocation2 + $0x40] sm:$0xff] }
  0x31   : > { %v308_v45 = vpack.c.bf16 %v296_v44, %v295_v43  ;;  %v298_v47 = vld [vmem:[#allocation2 + $0x48] sm:$0xff]  ;;  %v299_v49 = vld [vmem:[#allocation2 + $0x50] sm:$0xff]  ;;  %v301_v52 = vld [vmem:[#allocation2 + $0x60] sm:$0xff] }
  0x32   : > { %512 = vmatpush1.bf16.msra.mxu0 %v1365_v16  ;;  %625 = vmatpush1.bf16.msra.mxu1 %v1370_v18  ;;  %v309_v48 = vpack.c.bf16 %v298_v47, %v297_v46  ;;  %v310_v51 = vpack.c.bf16 %v300_v50, %v299_v49  ;;  %v302_v53 = vld [vmem:[#allocation2 + $0x68] sm:$0xff]  ;;  %v303_v55 = vld [vmem:[#allocation2 + $0x70] sm:$0xff]  ;;  %v304_v56 = vld [vmem:[#allocation2 + $0x78] sm:$0xff] }
  0x33   : > { %513 = vmatprep.subr.bf16.mxu0 %v1368_v17  ;;  %626 = vmatprep.subr.bf16.mxu1 %v1372_v19  ;;  %v311_v54 = vpack.c.bf16 %v302_v53, %v301_v52  ;;  %v312_v57 = vpack.c.bf16 %v304_v56, %v303_v55  ;;  %v225_v58 = vld [vmem:[%s1657_s30] sm:$0xff]  ;;  %v226_v59 = vld [vmem:[%s1657_s30 + $0x8] sm:$0xff]  ;;  %v227_v62 = vld [vmem:[%s1657_s30 + $0x10] sm:$0xff] }
  0x34   : > { %v229_v61 = vld [vmem:[%s1657_s30 + $0x20] sm:$0xff]  ;;  %v230_v1 = vld [vmem:[%s1657_s30 + $0x28] sm:$0xff]  ;;  %v231_v6 = vld [vmem:[%s1657_s30 + $0x30] sm:$0xff] }
  0x35   : > { %v228_v10 = vld [vmem:[%s1657_s30 + $0x18] sm:$0xff]  ;;  %v241_v52 = vld [vmem:[%s1657_s30 + $0x80] sm:$0xff]  ;;  %v242_v55 = vld [vmem:[%s1657_s30 + $0x88] sm:$0xff] }
  0x36   : > { %514 = vmatpush1.bf16.msra.mxu0 %v1371_v20  ;;  %627 = vmatpush1.bf16.msra.mxu1 %v1376_v22  ;;  %v232_v18 = vld [vmem:[%s1657_s30 + $0x38] sm:$0xff]  ;;  %v233_v22 = vld [vmem:[%s1657_s30 + $0x40] sm:$0xff] }
  0x37   : > { %515 = vmatprep.subr.bf16.mxu0 %v1374_v21  ;;  %628 = vmatprep.subr.bf16.mxu1 %v1378_v23  ;;  %v236_v40 = vld [vmem:[%s1657_s30 + $0x58] sm:$0xff] }
  0x3a   : > { %516 = vmatpush1.bf16.msra.mxu0 %v1377_v24  ;;  %629 = vmatpush1.bf16.msra.mxu1 %v1382_v26  ;;  %v234_v24 = vld [vmem:[%s1657_s30 + $0x48] sm:$0xff] }
  0x3b   : > { %517 = vmatprep.subr.bf16.mxu0 %v1380_v25  ;;  %630 = vmatprep.subr.bf16.mxu1 %v1384_v27  ;;  %v237_v27 = vld [vmem:[%s1657_s30 + $0x60] sm:$0xff] }
  0x3e   : > { %518 = vmatpush1.bf16.msra.mxu0 %v1383_v28  ;;  %631 = vmatpush1.bf16.msra.mxu1 %v1388_v30  ;;  %v235_v28 = vld [vmem:[%s1657_s30 + $0x50] sm:$0xff] }
  0x3f   : > { %519 = vmatprep.subr.bf16.mxu0 %v1386_v29  ;;  %632 = vmatprep.subr.bf16.mxu1 %v1390_v31  ;;  %v238_v31 = vld [vmem:[%s1657_s30 + $0x68] sm:$0xff] }
  0x42   : > { %520 = vmatpush1.bf16.msra.mxu0 %v1389_v32  ;;  %633 = vmatpush1.bf16.msra.mxu1 %v1392_v35  ;;  %v239_v35 = vld [vmem:[%s1657_s30 + $0x70] sm:$0xff] }
  0x45   : > { %538 = vmatmul.mubr.bf16.vlgmr.msra.gmra.mrb[0].mxu0 %v305_v36  ;;  %651 = vmatmul.mubr.bf16.vlgmr.msra.gmra.mrb[0].mxu1 %v305_v36 }
  0x46   : > { %547 = vmatprep.mubr.bf16.mxu0 %v1594_v3  ;;  %660 = vmatprep.mubr.bf16.mxu1 %v1594_v3 }
  0x4d   : > { %548 = vmatmul.mubr.bf16.gmra.mrb[4].mxu0 %v306_v39  ;;  %661 = vmatmul.mubr.bf16.gmra.mrb[4].mxu1 %v306_v39 }
  0x4e   : > { %557 = vmatprep.mubr.bf16.mxu0 %v1594_v3  ;;  %670 = vmatprep.mubr.bf16.mxu1 %v1594_v3 }
  0x55   : > { %558 = vmatmul.mubr.bf16.gmra.mrb[8].mxu0 %v307_v42  ;;  %671 = vmatmul.mubr.bf16.gmra.mrb[8].mxu1 %v307_v42 }
  0x56   : > { %567 = vmatprep.mubr.bf16.mxu0 %v1594_v3  ;;  %680 = vmatprep.mubr.bf16.mxu1 %v1594_v3 }
  0x5d   : > { %568 = vmatmul.mubr.bf16.gmra.mrb[12].mxu0 %v308_v45  ;;  %681 = vmatmul.mubr.bf16.gmra.mrb[12].mxu1 %v308_v45 }
  0x5e   : > { %577 = vmatprep.mubr.bf16.mxu0 %v1594_v3  ;;  %690 = vmatprep.mubr.bf16.mxu1 %v1594_v3 }
  0x65   : > { %578 = vmatmul.mubr.bf16.gmra.mrb[16].mxu0 %v309_v48  ;;  %691 = vmatmul.mubr.bf16.gmra.mrb[16].mxu1 %v309_v48  ;;  %v240_v48 = vld [vmem:[%s1657_s30 + $0x78] sm:$0xff] }
  0x66   : > { %587 = vmatprep.mubr.bf16.mxu0 %v1594_v3  ;;  %700 = vmatprep.mubr.bf16.mxu1 %v1594_v3 }
  0x6d   : > { %588 = vmatmul.mubr.bf16.gmra.mrb[20].mxu0 %v310_v51  ;;  %701 = vmatmul.mubr.bf16.gmra.mrb[20].mxu1 %v310_v51 }
  0x6e   : > { %597 = vmatprep.mubr.bf16.mxu0 %v1594_v3  ;;  %710 = vmatprep.mubr.bf16.mxu1 %v1594_v3 }
  0x75   : > { %598 = vmatmul.mubr.bf16.gmra.mrb[24].mxu0 %v311_v54  ;;  %711 = vmatmul.mubr.bf16.gmra.mrb[24].mxu1 %v311_v54 }
  0x76   : > { %607 = vmatprep.mubr.bf16.mxu0 %v1594_v3  ;;  %720 = vmatprep.mubr.bf16.mxu1 %v1594_v3 }
  0x7d   : > { %608 = vmatmul.mubr.bf16.gmra.mrb[28].mxu0 %v312_v57  ;;  %721 = vmatmul.mubr.bf16.gmra.mrb[28].mxu1 %v312_v57 }
 0x118   : > { %v539_v60 = vpop.f32.mrb[0].mxu0  ;;  %v652_v5 = vpop.f32.mrb[0].mxu1 }
 0x119   : > { %v731_v63 = vadd.f32 %v539_v60, %v225_v58  ;;  %v541_v0 = vpop.f32.mrb[1].mxu0  ;;  %v733_v9 = vadd.f32 %v652_v5, %v227_v62  ;;  %v654_v11 = vpop.f32.mrb[1].mxu1 }
 0x11a   : > { %v732_v2 = vadd.f32 %v541_v0, %v226_v59  ;;  %v543_v4 = vpop.f32.mrb[2].mxu0  ;;  %v656_v14 = vpop.f32.mrb[2].mxu1  ;;  %v734_v21 = vadd.f32 %v654_v11, %v228_v10  ;;  %v245_v11 = vld [vmem:[%s1657_s30 + $0xa0] sm:$0xff] }
 0x11b   : > { %v795_v7 = vmul.f32 0.5, %v731_v63  ;;  %v735_v8 = vadd.f32 %v543_v4, %v229_v61  ;;  %v545_v3 = vpop.f32.mrb[3].mxu0  ;;  %v797_v16 = vmul.f32 0.5, %v733_v9  ;;  %v737_v17 = vadd.f32 %v656_v14, %v231_v6  ;;  %v658_v19 = vpop.f32.mrb[3].mxu1 }
 0x11c   : > { %v796_v12 = vmul.f32 0.5, %v732_v2  ;;  %v736_v13 = vadd.f32 %v545_v3, %v230_v1  ;;  %v738_v25 = vadd.f32 %v658_v19, %v232_v18  ;;  %v1003_v2 = vld [vmem:[#allocation3] sm:$0xff]  ;;  %v246_v18 = vld [vmem:[%s1657_s30 + $0xa8] sm:$0xff] }
 0x11d   : > { %1393 = vtanh.f32 %v795_v7  ;;  %v798_v15 = vmul.f32 0.5, %v735_v8  ;;  %v800_v23 = vmul.f32 0.5, %v737_v17 }
 0x11e   : > { %1395 = vtanh.f32 %v796_v12  ;;  %v799_v20 = vmul.f32 0.5, %v736_v13 }
 0x11f   : > { %1397 = vtanh.f32 %v798_v15 }
 0x120   : > { %1399 = vtanh.f32 %v799_v20  ;;  %v549_v26 = vpop.f32.mrb[4].mxu0  ;;  %v662_v34 = vpop.f32.mrb[4].mxu1 }
 0x121   : > { %1401 = vtanh.f32 %v797_v16  ;;  %v739_v29 = vadd.f32 %v549_v26, %v233_v22  ;;  %v551_v30 = vpop.f32.mrb[5].mxu0  ;;  %v741_v39 = vadd.f32 %v662_v34, %v235_v28  ;;  %v664_v41 = vpop.f32.mrb[5].mxu1  ;;  %v1004_v16 = vld [vmem:[#allocation3 + $0x8] sm:$0xff] }
 0x122   : > { %1403 = vtanh.f32 %v734_v21  ;;  %v740_v32 = vadd.f32 %v551_v30, %v234_v24  ;;  %v553_v33 = vpop.f32.mrb[6].mxu0  ;;  %v666_v44 = vpop.f32.mrb[6].mxu1  ;;  %v742_v51 = vadd.f32 %v664_v41, %v236_v40  ;;  %v243_v24 = vld [vmem:[%s1657_s30 + $0x90] sm:$0xff] }
 0x123   : > { %1405 = vtanh.f32 %v800_v23  ;;  %v801_v36 = vmul.f32 0.5, %v739_v29  ;;  %v743_v37 = vadd.f32 %v553_v33, %v237_v27  ;;  %v555_v38 = vpop.f32.mrb[7].mxu0  ;;  %v803_v46 = vmul.f32 0.5, %v741_v39  ;;  %v668_v49 = vpop.f32.mrb[7].mxu1  ;;  %v244_v39 = vld [vmem:[%s1657_s30 + $0x98] sm:$0xff] }
 0x124   : > { %1407 = vtanh.f32 %v738_v25  ;;  %v802_v42 = vmul.f32 0.5, %v740_v32  ;;  %v744_v43 = vadd.f32 %v555_v38, %v238_v31  ;;  %v745_v47 = vadd.f32 %v666_v44, %v239_v35 }
 0x125   : > { %1409 = vtanh.f32 %v801_v36  ;;  %v804_v45 = vmul.f32 0.5, %v743_v37  ;;  %v746_v58 = vadd.f32 %v668_v49, %v240_v48  ;;  %v1005_v49 = vld [vmem:[#allocation3 + $0x10] sm:$0xff] }
 0x126   : > { %1411 = vtanh.f32 %v802_v42  ;;  %v805_v50 = vmul.f32 0.5, %v744_v43  ;;  %v806_v54 = vmul.f32 0.5, %v745_v47 }
 0x127   : > { %v1394_v53 = vpop.eup %1393  ;;  %1413 = vtanh.f32 %v804_v45  ;;  %v247_v45 = vld [vmem:[%s1657_s30 + $0xb0] sm:$0xff] }
 0x128   : > { %v1396_v56 = vpop.eup %1395  ;;  %v891_v57 = vadd.f32 1.0, %v1394_v53  ;;  %1415 = vtanh.f32 %v805_v50  ;;  %v559_v59 = vpop.f32.mrb[8].mxu0 }
 0x129   : > { %v1398_v60 = vpop.eup %1397  ;;  %v892_v61 = vadd.f32 1.0, %v1396_v56  ;;  %1417 = vtanh.f32 %v803_v46  ;;  %v747_v62 = vadd.f32 %v559_v59, %v241_v52  ;;  %v561_v63 = vpop.f32.mrb[9].mxu0 }
 0x12a   : > { %v1400_v0 = vpop.eup %1399  ;;  %v939_v1 = vmul.f32 0.5, %v891_v57  ;;  %v894_v4 = vadd.f32 1.0, %v1398_v60  ;;  %1419 = vtanh.f32 %v742_v51  ;;  %v748_v5 = vadd.f32 %v561_v63, %v242_v55  ;;  %v563_v6 = vpop.f32.mrb[10].mxu0 }
 0x12b   : > { %v672_v7 = vpop.f32.mrb[8].mxu1  ;;  %v1402_v8 = vpop.eup %1401  ;;  %v940_v3 = vmul.f32 0.5, %v892_v61  ;;  %v895_v9 = vadd.f32 1.0, %v1400_v0  ;;  %1421 = vtanh.f32 %v806_v54  ;;  %v807_v10 = vmul.f32 0.5, %v747_v62  ;;  %v1006_v62 = vld [vmem:[#allocation3 + $0x18] sm:$0xff] }
 0x12c   : > { %v565_v12 = vpop.f32.mrb[11].mxu0  ;;  %v674_v13 = vpop.f32.mrb[9].mxu1  ;;  %v942_v15 = vmul.f32 0.5, %v894_v4  ;;  %1423 = vtanh.f32 %v746_v58  ;;  %v808_v17 = vmul.f32 0.5, %v748_v5  ;;  %v893_v27 = vadd.f32 1.0, %v1402_v8  ;;  %v249_v8 = vld [vmem:[%s1657_s30 + $0xc0] sm:$0xff] }
 0x12d   : > { %v1404_v14 = vpop.eup %1403  ;;  %v676_v19 = vpop.f32.mrb[10].mxu1  ;;  %v1019_v21 = vmul.f32 %v1003_v2, %v940_v3  ;;  %v943_v22 = vmul.f32 0.5, %v895_v9  ;;  %1425 = vtanh.f32 %v807_v10  ;;  %v751_v28 = vadd.f32 %v563_v6, %v245_v11 }
 0x12e   : > { %v1406_v20 = vpop.eup %1405  ;;  %v1035_v23 = vmul.f32 %v1404_v14, %v939_v1  ;;  %v1729_v25 = vpop.f32.mrb[11].mxu1  ;;  %1427 = vtanh.f32 %v808_v17  ;;  %v752_v33 = vadd.f32 %v565_v12, %v246_v18  ;;  %v749_v38 = vadd.f32 %v672_v7, %v243_v24  ;;  %v248_v1 = vld [vmem:[%s1657_s30 + $0xb8] sm:$0xff]  ;;  %v254_v24 = vld [vmem:[%s1657_s30 + $0xe8] sm:$0xff] }
 0x12f   : > { %v1408_v26 = vpop.eup %1407  ;;  %v1020_v30 = vmul.f32 %v1004_v16, %v943_v22  ;;  %v896_v35 = vadd.f32 1.0, %v1406_v20  ;;  %v810_v37 = vmul.f32 0.5, %v751_v28  ;;  %v750_v57 = vadd.f32 %v674_v13, %v244_v39  ;;  %v250_v13 = vld [vmem:[%s1657_s30 + $0xc8] sm:$0xff] }
 0x130   : > { %v1410_v29 = vpop.eup %1409  ;;  %v1051_v31 = vadd.f32 %v1035_v23, %v1019_v21  ;;  %v1036_v32 = vmul.f32 %v1408_v26, %v942_v15  ;;  %v569_v40 = vpop.f32.mrb[12].mxu0  ;;  %v811_v44 = vmul.f32 0.5, %v752_v33  ;;  %v809_v51 = vmul.f32 0.5, %v749_v38 }
 0x131   : > { %v1412_v34 = vpop.eup %1411  ;;  %v897_v36 = vadd.f32 1.0, %v1410_v29  ;;  %v571_v46 = vpop.f32.mrb[13].mxu0  ;;  %v753_v0 = vadd.f32 %v676_v19, %v247_v45  ;;  %v941_v10 = vmul.f32 0.5, %v893_v27  ;;  %v944_v11 = vmul.f32 0.5, %v896_v35  ;;  %v253_v19 = vld [vmem:[%s1657_s30 + $0xe0] sm:$0xff] }
 0x132   : > { %v1414_v41 = vpop.eup %1413  ;;  %1429 = vtanh.f32 %v1051_v31  ;;  %1115 = vst [vmem:[#allocation3] sm:$0xff] %v1051_v31  ;;  %v1052_v42 = vadd.f32 %v1036_v32, %v1020_v30  ;;  %v898_v43 = vadd.f32 1.0, %v1412_v34  ;;  %v573_v52 = vpop.f32.mrb[14].mxu0  ;;  %v754_v18 = vadd.f32 %v1729_v25, %v248_v1  ;;  %v251_v30 = vld [vmem:[%s1657_s30 + $0xd0] sm:$0xff]  ;;  %v1007_v45 = vld [vmem:[#allocation3 + $0x20] sm:$0xff] }
 0x133   : > { %v1416_v47 = vpop.eup %1415  ;;  %v945_v48 = vmul.f32 0.5, %v897_v36  ;;  %v900_v50 = vadd.f32 1.0, %v1414_v41  ;;  %1431 = vtanh.f32 %v810_v37  ;;  %v1733_v53 = vpop.f32.mrb[12].mxu1  ;;  %v812_v12 = vmul.f32 0.5, %v753_v0 }
 0x134   : > { %v1418_v54 = vpop.eup %1417  ;;  %1433 = vtanh.f32 %v1052_v42  ;;  %1116 = vst [vmem:[#allocation3 + $0x8] sm:$0xff] %v1052_v42  ;;  %v946_v55 = vmul.f32 0.5, %v898_v43  ;;  %v901_v56 = vadd.f32 1.0, %v1416_v47  ;;  %v575_v58 = vpop.f32.mrb[15].mxu0  ;;  %v755_v23 = vadd.f32 %v569_v40, %v249_v8  ;;  %v252_v40 = vld [vmem:[%s1657_s30 + $0xd8] sm:$0xff] }
 0x135   : > { %v1735_v59 = vpop.f32.mrb[13].mxu1  ;;  %v1420_v60 = vpop.eup %1419  ;;  %v948_v61 = vmul.f32 0.5, %v900_v50  ;;  %v899_v63 = vadd.f32 1.0, %v1418_v54  ;;  %1435 = vtanh.f32 %v811_v44  ;;  %v756_v29 = vadd.f32 %v571_v46, %v250_v13  ;;  %v261_v13 = vld [vmem:[%s1657_s30 + $0x120] sm:$0xff] }
 0x136   : > { %v1738_v2 = vpop.f32.mrb[14].mxu1  ;;  %v1422_v4 = vpop.eup %1421  ;;  %v1021_v5 = vmul.f32 %v1005_v49, %v946_v55  ;;  %v949_v6 = vmul.f32 0.5, %v901_v56  ;;  %v1037_v7 = vmul.f32 %v1420_v60, %v945_v48  ;;  %1437 = vtanh.f32 %v809_v51  ;;  %v255_v48 = vld [vmem:[%s1657_s30 + $0xf0] sm:$0xff]  ;;  %v256_v55 = vld [vmem:[%s1657_s30 + $0xf8] sm:$0xff]  ;;  %v257_v56 = vld [vmem:[%s1657_s30 + $0x100] sm:$0xff] }
 0x137   : > { %v1741_v3 = vpop.f32.mrb[15].mxu1  ;;  %v1424_v9 = vpop.eup %1423  ;;  %1439 = vtanh.f32 %v750_v57  ;;  %v1746_v21 = vmul.f32 0.5, %v899_v63  ;;  %v902_v32 = vadd.f32 1.0, %v1422_v4  ;;  %v813_v25 = vmul.f32 0.5, %v755_v23  ;;  %v258_v4 = vld [vmem:[%s1657_s30 + $0x108] sm:$0xff] }
 0x138   : > { %v1426_v14 = vpop.eup %1425  ;;  %v1022_v15 = vmul.f32 %v1006_v62, %v949_v6  ;;  %v1053_v16 = vadd.f32 %v1037_v7, %v1021_v5  ;;  %v1038_v17 = vmul.f32 %v1424_v9, %v948_v61  ;;  %1441 = vtanh.f32 %v812_v12  ;;  %v579_v26 = vpop.f32.mrb[16].mxu0  ;;  %v1008_v7 = vld [vmem:[#allocation3 + $0x28] sm:$0xff] }
 0x139   : > { %v1428_v20 = vpop.eup %1427  ;;  %v903_v22 = vadd.f32 1.0, %v1426_v14  ;;  %v581_v31 = vpop.f32.mrb[17].mxu0  ;;  %v759_v33 = vadd.f32 %v573_v52, %v253_v19  ;;  %v814_v38 = vmul.f32 0.5, %v756_v29  ;;  %v760_v39 = vadd.f32 %v575_v58, %v254_v24 }
 0x13a   : > { %1443 = vtanh.f32 %v1053_v16  ;;  %1117 = vst [vmem:[#allocation3 + $0x10] sm:$0xff] %v1053_v16  ;;  %v1054_v27 = vadd.f32 %v1038_v17, %v1022_v15  ;;  %v904_v28 = vadd.f32 1.0, %v1428_v20  ;;  %v1750_v34 = vpop.f32.mrb[18].mxu0  ;;  %v1752_v35 = vpop.f32.mrb[16].mxu1  ;;  %v757_v47 = vadd.f32 %v1733_v53, %v251_v30 }
 0x13b   : > { %1445 = vtanh.f32 %v754_v18  ;;  %v1755_v41 = vpop.f32.mrb[19].mxu0  ;;  %v1757_v42 = vpop.f32.mrb[17].mxu1  ;;  %v816_v46 = vmul.f32 0.5, %v759_v33  ;;  %v951_v51 = vmul.f32 0.5, %v903_v22  ;;  %v817_v54 = vmul.f32 0.5, %v760_v39  ;;  %v262_v18 = vld [vmem:[%s1657_s30 + $0x128] sm:$0xff] }
 0x13c   : > { %v1430_v36 = vpop.eup %1429  ;;  %1447 = vtanh.f32 %v1054_v27  ;;  %1118 = vst [vmem:[#allocation3 + $0x18] sm:$0xff] %v1054_v27  ;;  %v952_v37 = vmul.f32 0.5, %v904_v28  ;;  %v1763_v49 = vpop.f32.mrb[18].mxu1  ;;  %v815_v53 = vmul.f32 0.5, %v757_v47  ;;  %v758_v61 = vadd.f32 %v1735_v59, %v252_v40  ;;  %v263_v40 = vld [vmem:[%s1657_s30 + $0x130] sm:$0xff]  ;;  %v264_v47 = vld [vmem:[%s1657_s30 + $0x138] sm:$0xff] }
 0x13d   : > { %v1432_v43 = vpop.eup %1431  ;;  %v1759_v44 = vmul.f32 %v1430_v36, %v941_v10  ;;  %1449 = vtanh.f32 %v813_v25  ;;  %v1767_v57 = vpop.f32.mrb[19].mxu1  ;;  %v761_v1 = vadd.f32 %v1738_v2, %v255_v48  ;;  %v762_v8 = vadd.f32 %v1741_v3, %v256_v55  ;;  %v260_v25 = vld [vmem:[%s1657_s30 + $0x118] sm:$0xff] }
 0x13e   : > { %v1434_v50 = vpop.eup %1433  ;;  %v906_v52 = vadd.f32 1.0, %v1432_v43  ;;  %1451 = vtanh.f32 %v814_v38  ;;  %v1023_v63 = vmul.f32 %v1007_v45, %v952_v37  ;;  %v763_v9 = vadd.f32 %v579_v26, %v257_v56  ;;  %v259_v26 = vld [vmem:[%s1657_s30 + $0x110] sm:$0xff] }
 0x13f   : > { %v1436_v58 = vpop.eup %1435  ;;  %1099 = vst [vmem:[#allocation2] sm:$0xff] %v1759_v44  ;;  %v1770_v60 = vmul.f32 %v1434_v50, %v944_v11  ;;  %1453 = vtanh.f32 %v816_v46  ;;  %v818_v12 = vmul.f32 0.5, %v761_v1  ;;  %v950_v15 = vmul.f32 0.5, %v902_v32 }
 0x140   : > { %v1438_v62 = vpop.eup %1437  ;;  %v907_v0 = vadd.f32 1.0, %v1436_v58  ;;  %1455 = vtanh.f32 %v817_v54  ;;  %v954_v6 = vmul.f32 0.5, %v906_v52  ;;  %v1777_v10 = vpop.f32.mrb[20].mxu0  ;;  %v819_v16 = vmul.f32 0.5, %v763_v9 }
 0x141   : > { %v1440_v5 = vpop.eup %1439  ;;  %1100 = vst [vmem:[#allocation2 + $0x8] sm:$0xff] %v1770_v60  ;;  %1457 = vtanh.f32 %v815_v53  ;;  %v1780_v2 = vpop.f32.mrb[21].mxu0  ;;  %v764_v17 = vadd.f32 %v581_v31, %v258_v4  ;;  %v1787_v23 = vadd.f32 1.0, %v1438_v62  ;;  %v767_v32 = vadd.f32 %v1750_v34, %v261_v13  ;;  %v265_v53 = vld [vmem:[%s1657_s30 + $0x140] sm:$0xff] }
 0x142   : > { %v955_v59 = vmul.f32 0.5, %v907_v0  ;;  %v1039_v11 = vmul.f32 %v1440_v5, %v951_v51  ;;  %1459 = vtanh.f32 %v758_v61  ;;  %v1442_v14 = vpop.eup %1441  ;;  %v1783_v19 = vpop.f32.mrb[22].mxu0  ;;  %v768_v39 = vadd.f32 %v1755_v41, %v262_v18  ;;  %v266_v18 = vld [vmem:[%s1657_s30 + $0x148] sm:$0xff] }
 0x143   : > { %1461 = vtanh.f32 %v762_v8  ;;  %v1785_v3 = vpop.f32.mrb[20].mxu1  ;;  %v1790_v27 = vpop.f32.mrb[23].mxu0  ;;  %v820_v31 = vmul.f32 0.5, %v764_v17  ;;  %v908_v37 = vadd.f32 1.0, %v1442_v14  ;;  %v822_v34 = vmul.f32 0.5, %v767_v32 }
 0x144   : > { %v1444_v20 = vpop.eup %1443  ;;  %v1024_v22 = vmul.f32 %v1008_v7, %v955_v59  ;;  %v1055_v24 = vadd.f32 %v1039_v11, %v1023_v63  ;;  %1463 = vtanh.f32 %v818_v12  ;;  %v1792_v28 = vpop.f32.mrb[21].mxu1  ;;  %v765_v46 = vadd.f32 %v1752_v35, %v259_v26  ;;  %v1009_v63 = vld [vmem:[#allocation3 + $0x30] sm:$0xff]  ;;  %v1010_v11 = vld [vmem:[#allocation3 + $0x38] sm:$0xff] }
 0x145   : > { %v1446_v29 = vpop.eup %1445  ;;  %v1795_v30 = vmul.f32 %v1444_v20, %v1746_v21  ;;  %1465 = vtanh.f32 %v819_v16  ;;  %v1799_v33 = vpop.f32.mrb[22].mxu1  ;;  %v823_v52 = vmul.f32 0.5, %v768_v39  ;;  %v766_v41 = vadd.f32 %v1757_v42, %v260_v25  ;;  %v269_v20 = vld [vmem:[%s1657_s30 + $0x160] sm:$0xff] }
 0x146   : > { %v1448_v36 = vpop.eup %1447  ;;  %1467 = vtanh.f32 %v1055_v24  ;;  %1119 = vst [vmem:[#allocation3 + $0x20] sm:$0xff] %v1055_v24  ;;  %v1040_v38 = vmul.f32 %v1446_v29, %v954_v6  ;;  %v1803_v43 = vpop.f32.mrb[23].mxu1  ;;  %v821_v56 = vmul.f32 0.5, %v765_v46  ;;  %v769_v58 = vadd.f32 %v1763_v49, %v263_v40  ;;  %v267_v46 = vld [vmem:[%s1657_s30 + $0x150] sm:$0xff] }
 0x147   : > { %v1450_v21 = vpop.eup %1449  ;;  %1101 = vst [vmem:[#allocation2 + $0x10] sm:$0xff] %v1795_v30  ;;  %v1806_v45 = vmul.f32 %v1448_v36, %v950_v15  ;;  %1469 = vtanh.f32 %v820_v31  ;;  %v770_v1 = vadd.f32 %v1767_v57, %v264_v47  ;;  %v771_v12 = vadd.f32 %v1777_v10, %v265_v53  ;;  %v268_v47 = vld [vmem:[%s1657_s30 + $0x158] sm:$0xff]  ;;  %v1011_v53 = vld [vmem:[#allocation3 + $0x40] sm:$0xff] }
 0x148   : > { %v1452_v48 = vpop.eup %1451  ;;  %v1056_v50 = vadd.f32 %v1040_v38, %v1024_v22  ;;  %v909_v51 = vadd.f32 1.0, %v1450_v21  ;;  %1471 = vtanh.f32 %v822_v34  ;;  %v1814_v61 = vpop.f32.mrb[24].mxu0  ;;  %v824_v7 = vmul.f32 0.5, %v769_v58  ;;  %v270_v34 = vld [vmem:[%s1657_s30 + $0x168] sm:$0xff] }
 0x149   : > { %v1454_v54 = vpop.eup %1453  ;;  %1102 = vst [vmem:[#allocation2 + $0x18] sm:$0xff] %v1806_v45  ;;  %v910_v55 = vadd.f32 1.0, %v1452_v48  ;;  %v1817_v42 = vpop.f32.mrb[25].mxu0  ;;  %v953_v26 = vmul.f32 0.5, %v1787_v23  ;;  %v825_v10 = vmul.f32 0.5, %v771_v12  ;;  %v956_v25 = vmul.f32 0.5, %v908_v37 }
 0x14a   : > { %v1456_v62 = vpop.eup %1455  ;;  %1473 = vtanh.f32 %v1056_v50  ;;  %1120 = vst [vmem:[#allocation3 + $0x28] sm:$0xff] %v1056_v50  ;;  %v957_v35 = vmul.f32 0.5, %v909_v51  ;;  %v912_v0 = vadd.f32 1.0, %v1454_v54  ;;  %v1819_v49 = vpop.f32.mrb[26].mxu0  ;;  %v772_v21 = vadd.f32 %v1780_v2, %v266_v18  ;;  %v271_v2 = vld [vmem:[%s1657_s30 + $0x170] sm:$0xff] }
 0x14b   : > { %v1458_v4 = vpop.eup %1457  ;;  %v958_v5 = vmul.f32 0.5, %v910_v55  ;;  %v913_v6 = vadd.f32 1.0, %v1456_v62  ;;  %1475 = vtanh.f32 %v823_v52  ;;  %v1821_v8 = vpop.f32.mrb[24].mxu1  ;;  %v775_v23 = vadd.f32 %v1783_v19, %v269_v20 }
 0x14c   : > { %v1460_v9 = vpop.eup %1459  ;;  %v960_v59 = vmul.f32 0.5, %v912_v0  ;;  %1477 = vtanh.f32 %v821_v56  ;;  %v1824_v57 = vpop.f32.mrb[27].mxu0  ;;  %v911_v51 = vadd.f32 1.0, %v1458_v4  ;;  %v826_v55 = vmul.f32 0.5, %v772_v21 }
 0x14d   : > { %v1826_v13 = vpop.f32.mrb[25].mxu1  ;;  %v1462_v14 = vpop.eup %1461  ;;  %v1025_v15 = vmul.f32 %v1009_v63, %v958_v5  ;;  %v961_v16 = vmul.f32 0.5, %v913_v6  ;;  %v1041_v17 = vmul.f32 %v1460_v9, %v957_v35  ;;  %1479 = vtanh.f32 %v766_v41  ;;  %v272_v9 = vld [vmem:[%s1657_s30 + $0x178] sm:$0xff] }
 0x14e   : > { %v1830_v22 = vpop.f32.mrb[26].mxu1  ;;  %v1464_v24 = vpop.eup %1463  ;;  %v1042_v29 = vmul.f32 %v1462_v14, %v960_v59  ;;  %1481 = vtanh.f32 %v824_v7  ;;  %v828_v56 = vmul.f32 0.5, %v775_v23  ;;  %v776_v62 = vadd.f32 %v1790_v27, %v270_v34  ;;  %v273_v14 = vld [vmem:[%s1657_s30 + $0x180] sm:$0xff] }
 0x14f   : > { %v1833_v31 = vpop.f32.mrb[27].mxu1  ;;  %v1466_v32 = vpop.eup %1465  ;;  %v1026_v36 = vmul.f32 %v1010_v11, %v961_v16  ;;  %v1057_v38 = vadd.f32 %v1041_v17, %v1025_v15  ;;  %1483 = vtanh.f32 %v770_v1  ;;  %v914_v41 = vadd.f32 1.0, %v1464_v24  ;;  %v274_v24 = vld [vmem:[%s1657_s30 + $0x188] sm:$0xff] }
 0x150   : > { %v1468_v39 = vpop.eup %1467  ;;  %v915_v40 = vadd.f32 1.0, %v1466_v32  ;;  %1485 = vtanh.f32 %v825_v10  ;;  %v1842_v52 = vpop.f32.mrb[28].mxu0  ;;  %v773_v35 = vadd.f32 %v1785_v3, %v267_v46  ;;  %v774_v63 = vadd.f32 %v1792_v28, %v268_v47  ;;  %v1012_v10 = vld [vmem:[#allocation3 + $0x48] sm:$0xff] }
 0x151   : > { %v1470_v48 = vpop.eup %1469  ;;  %v1840_v50 = vmul.f32 %v1468_v39, %v953_v26  ;;  %1487 = vtanh.f32 %v1057_v38  ;;  %1121 = vst [vmem:[#allocation3 + $0x30] sm:$0xff] %v1057_v38  ;;  %v1058_v37 = vadd.f32 %v1042_v29, %v1026_v36  ;;  %v1845_v58 = vpop.f32.mrb[29].mxu0  ;;  %v829_v28 = vmul.f32 0.5, %v776_v62 }
 0x152   : > { %v916_v54 = vadd.f32 1.0, %v1470_v48  ;;  %v1472_v19 = vpop.eup %1471  ;;  %v1851_v0 = vpop.f32.mrb[30].mxu0  ;;  %v963_v5 = vmul.f32 0.5, %v915_v40  ;;  %v777_v12 = vadd.f32 %v1799_v33, %v271_v2  ;;  %v827_v32 = vmul.f32 0.5, %v773_v35  ;;  %v277_v48 = vld [vmem:[%s1657_s30 + $0x1a0] sm:$0xff] }
 0x153   : > { %1103 = vst [vmem:[#allocation2 + $0x20] sm:$0xff] %v1840_v50  ;;  %1489 = vtanh.f32 %v1058_v37  ;;  %1122 = vst [vmem:[#allocation3 + $0x38] sm:$0xff] %v1058_v37  ;;  %v1853_v1 = vpop.f32.mrb[28].mxu1  ;;  %v918_v7 = vadd.f32 1.0, %v1472_v19  ;;  %v1856_v59 = vpop.f32.mrb[31].mxu0  ;;  %v778_v33 = vadd.f32 %v1803_v43, %v272_v9  ;;  %v959_v36 = vmul.f32 0.5, %v911_v51 }
 0x154   : > { %v1474_v4 = vpop.eup %1473  ;;  %v964_v6 = vmul.f32 0.5, %v916_v54  ;;  %1491 = vtanh.f32 %v826_v55  ;;  %v1858_v11 = vpop.f32.mrb[29].mxu1  ;;  %v779_v40 = vadd.f32 %v1814_v61, %v273_v14  ;;  %v962_v23 = vmul.f32 0.5, %v914_v41  ;;  %v278_v51 = vld [vmem:[%s1657_s30 + $0x1a8] sm:$0xff]  ;;  %v280_v9 = vld [vmem:[%s1657_s30 + $0x1b8] sm:$0xff] }
 0x155   : > { %v1476_v27 = vpop.eup %1475  ;;  %v1860_v3 = vmul.f32 %v1474_v4, %v956_v25  ;;  %1493 = vtanh.f32 %v828_v56  ;;  %v1864_v15 = vpop.f32.mrb[30].mxu1  ;;  %v966_v18 = vmul.f32 0.5, %v918_v7  ;;  %v830_v46 = vmul.f32 0.5, %v777_v12  ;;  %v275_v56 = vld [vmem:[%s1657_s30 + $0x190] sm:$0xff] }
 0x156   : > { %v1478_v16 = vpop.eup %1477  ;;  %v1027_v17 = vmul.f32 %v1011_v53, %v964_v6  ;;  %v919_v20 = vadd.f32 1.0, %v1476_v27  ;;  %1495 = vtanh.f32 %v774_v63  ;;  %v1867_v26 = vpop.f32.mrb[31].mxu1  ;;  %v780_v47 = vadd.f32 %v1817_v42, %v274_v24  ;;  %v276_v53 = vld [vmem:[%s1657_s30 + $0x198] sm:$0xff]  ;;  %v279_v7 = vld [vmem:[%s1657_s30 + $0x1b0] sm:$0xff] }
 0x157   : > { %v1480_v29 = vpop.eup %1479  ;;  %1104 = vst [vmem:[#allocation2 + $0x28] sm:$0xff] %v1860_v3  ;;  %1497 = vtanh.f32 %v829_v28  ;;  %v1872_v34 = vadd.f32 1.0, %v1478_v16  ;;  %v831_v61 = vmul.f32 0.5, %v779_v40  ;;  %v783_v35 = vadd.f32 %v1819_v49, %v277_v48  ;;  %v281_v49 = vld [vmem:[%s1657_s30 + $0x1c0] sm:$0xff] }
 0x158   : > { %v1482_v25 = vpop.eup %1481  ;;  %v967_v38 = vmul.f32 0.5, %v919_v20  ;;  %v1043_v39 = vmul.f32 %v1480_v29, %v963_v5  ;;  %1499 = vtanh.f32 %v778_v33  ;;  %v832_v41 = vmul.f32 0.5, %v780_v47  ;;  %v1013_v20 = vld [vmem:[#allocation3 + $0x50] sm:$0xff]  ;;  %v1014_v47 = vld [vmem:[#allocation3 + $0x58] sm:$0xff] }
 0x159   : > { %v1484_v21 = vpop.eup %1483  ;;  %1501 = vtanh.f32 %v827_v32  ;;  %v784_v5 = vadd.f32 %v1824_v57, %v278_v51  ;;  %v781_v6 = vadd.f32 %v1821_v8, %v275_v56  ;;  %v834_v12 = vmul.f32 0.5, %v783_v35 }
 0x15a   : > { %v1486_v37 = vpop.eup %1485  ;;  %v1028_v54 = vmul.f32 %v1012_v10, %v967_v38  ;;  %v1059_v43 = vadd.f32 %v1043_v39, %v1027_v17  ;;  %v1044_v55 = vmul.f32 %v1484_v21, %v966_v18  ;;  %v782_v14 = vadd.f32 %v1826_v13, %v276_v53  ;;  %v282_v38 = vld [vmem:[%s1657_s30 + $0x1c8] sm:$0xff] }
 0x15b   : > { %v1488_v2 = vpop.eup %1487  ;;  %v921_v19 = vadd.f32 1.0, %v1486_v37  ;;  %v835_v57 = vmul.f32 0.5, %v784_v5  ;;  %v833_v18 = vmul.f32 0.5, %v781_v6  ;;  %v785_v29 = vadd.f32 %v1830_v22, %v279_v7 }
 0x15c   : > { %v1879_v62 = vmul.f32 %v1488_v2, %v959_v36  ;;  %1503 = vtanh.f32 %v1059_v43  ;;  %1123 = vst [vmem:[#allocation3 + $0x40] sm:$0xff] %v1059_v43  ;;  %v1060_v42 = vadd.f32 %v1044_v55, %v1028_v54  ;;  %v786_v10 = vadd.f32 %v1833_v31, %v280_v9  ;;  %v285_v43 = vld [vmem:[%s1657_s30 + $0x1e0] sm:$0xff]  ;;  %v286_v55 = vld [vmem:[%s1657_s30 + $0x1e8] sm:$0xff] }
 0x15d   : > { %v1490_v63 = vpop.eup %1489  ;;  %v969_v4 = vmul.f32 0.5, %v921_v19  ;;  %1505 = vtanh.f32 %v831_v61  ;;  %v787_v36 = vadd.f32 %v1842_v52, %v281_v49  ;;  %v920_v39 = vadd.f32 1.0, %v1482_v25 }
 0x15e   : > { %v1492_v27 = vpop.eup %1491  ;;  %1105 = vst [vmem:[#allocation2 + $0x30] sm:$0xff] %v1879_v62  ;;  %v1887_v28 = vmul.f32 %v1490_v63, %v962_v23  ;;  %1507 = vtanh.f32 %v1060_v42  ;;  %1124 = vst [vmem:[#allocation3 + $0x48] sm:$0xff] %v1060_v42  ;;  %v965_v31 = vmul.f32 0.5, %v1872_v34  ;;  %v788_v54 = vadd.f32 %v1845_v58, %v282_v38  ;;  %v284_v42 = vld [vmem:[%s1657_s30 + $0x1d8] sm:$0xff] }
 0x15f   : > { %v1494_v16 = vpop.eup %1493  ;;  %v922_v17 = vadd.f32 1.0, %v1492_v27  ;;  %1509 = vtanh.f32 %v832_v41  ;;  %v837_v48 = vmul.f32 0.5, %v787_v36  ;;  %v836_v56 = vmul.f32 0.5, %v785_v29  ;;  %v288_v27 = vld [vmem:[%s1657_s30 + $0x1f8] sm:$0xff]  ;;  %v287_v29 = vld [vmem:[%s1657_s30 + $0x1f0] sm:$0xff] }
 0x160   : > { %v1496_v8 = vpop.eup %1495  ;;  %1106 = vst [vmem:[#allocation2 + $0x38] sm:$0xff] %v1887_v28  ;;  %v924_v24 = vadd.f32 1.0, %v1494_v16  ;;  %1511 = vtanh.f32 %v834_v12  ;;  %v968_v2 = vmul.f32 0.5, %v920_v39  ;;  %v838_v61 = vmul.f32 0.5, %v788_v54 }
 0x161   : > { %v1498_v32 = vpop.eup %1497  ;;  %v970_v33 = vmul.f32 0.5, %v922_v17  ;;  %v1045_v13 = vmul.f32 %v1496_v8, %v969_v4  ;;  %1513 = vtanh.f32 %v835_v57  ;;  %v791_v58 = vadd.f32 %v1851_v0, %v285_v43  ;;  %v1015_v57 = vld [vmem:[#allocation3 + $0x60] sm:$0xff] }
 0x162   : > { %v972_v40 = vmul.f32 0.5, %v924_v24  ;;  %v925_v21 = vadd.f32 1.0, %v1498_v32  ;;  %1515 = vtanh.f32 %v830_v46  ;;  %v1500_v22 = vpop.eup %1499  ;;  %v792_v34 = vadd.f32 %v1856_v59, %v286_v55 }
 0x163   : > { %v1029_v23 = vmul.f32 %v1013_v20, %v970_v33  ;;  %1517 = vtanh.f32 %v782_v14  ;;  %v1502_v52 = vpop.eup %1501  ;;  %v840_v7 = vmul.f32 0.5, %v791_v58  ;;  %v283_v14 = vld [vmem:[%s1657_s30 + $0x1d0] sm:$0xff]  ;;  %v790_v49 = vadd.f32 %v1858_v11, %v284_v42 }
 0x164   : > { %v973_v37 = vmul.f32 0.5, %v925_v21  ;;  %1519 = vtanh.f32 %v833_v18  ;;  %v1046_v25 = vmul.f32 %v1500_v22, %v972_v40  ;;  %v841_v9 = vmul.f32 0.5, %v792_v34 }
 0x165   : > { %v1061_v51 = vadd.f32 %v1045_v13, %v1029_v23  ;;  %1521 = vtanh.f32 %v786_v10  ;;  %v923_v17 = vadd.f32 1.0, %v1502_v52  ;;  %v794_v10 = vadd.f32 %v1867_v26, %v288_v27  ;;  %v1016_v13 = vld [vmem:[#allocation3 + $0x68] sm:$0xff]  ;;  %v1018_v27 = vld [vmem:[#allocation3 + $0x78] sm:$0xff] }
 0x166   : > { %v1504_v46 = vpop.eup %1503  ;;  %v1030_v19 = vmul.f32 %v1014_v47, %v973_v37  ;;  %1523 = vtanh.f32 %v837_v48  ;;  %v789_v36 = vadd.f32 %v1853_v1, %v283_v14  ;;  %v793_v48 = vadd.f32 %v1864_v15, %v287_v29  ;;  %v1017_v15 = vld [vmem:[#allocation3 + $0x70] sm:$0xff] }
 0x167   : > { %v1506_v41 = vpop.eup %1505  ;;  %v1900_v53 = vmul.f32 %v1504_v46, %v965_v31  ;;  %1525 = vtanh.f32 %v1061_v51  ;;  %1125 = vst [vmem:[#allocation3 + $0x50] sm:$0xff] %v1061_v51  ;;  %v971_v23 = vmul.f32 0.5, %v923_v17 }
 0x168   : > { %v1508_v35 = vpop.eup %1507  ;;  %v1062_v63 = vadd.f32 %v1046_v25, %v1030_v19  ;;  %v927_v4 = vadd.f32 1.0, %v1506_v41  ;;  %1527 = vtanh.f32 %v838_v61  ;;  %v839_v55 = vmul.f32 0.5, %v789_v36 }
 0x169   : > { %v1510_v5 = vpop.eup %1509  ;;  %1107 = vst [vmem:[#allocation2 + $0x40] sm:$0xff] %v1900_v53  ;;  %v1906_v6 = vmul.f32 %v1508_v35, %v968_v2  ;;  %1529 = vtanh.f32 %v836_v56  ;;  %v842_v2 = vmul.f32 0.5, %v793_v48 }
 0x16a   : > { %v1512_v12 = vpop.eup %1511  ;;  %1531 = vtanh.f32 %v1062_v63  ;;  %1126 = vst [vmem:[#allocation3 + $0x58] sm:$0xff] %v1062_v63  ;;  %v975_v0 = vmul.f32 0.5, %v927_v4  ;;  %v928_v59 = vadd.f32 1.0, %v1510_v5 }
 0x16b   : > { %v1514_v16 = vpop.eup %1513  ;;  %1108 = vst [vmem:[#allocation2 + $0x48] sm:$0xff] %v1906_v6  ;;  %v930_v18 = vadd.f32 1.0, %v1512_v12  ;;  %1533 = vtanh.f32 %v840_v7  ;;  %v1148_v48 = vadd.f32 (!%p1299_p8), %v1906_v6, %v1900_v53 }
 0x16c   : > { %v1516_v8 = vpop.eup %1515  ;;  %v976_v20 = vmul.f32 0.5, %v928_v59  ;;  %v931_v24 = vadd.f32 1.0, %v1514_v16  ;;  %1535 = vtanh.f32 %v841_v9 }
 0x16d   : > { %v1518_v32 = vpop.eup %1517  ;;  %v978_v33 = vmul.f32 0.5, %v930_v18  ;;  %1537 = vtanh.f32 %v790_v49  ;;  %v926_v47 = vadd.f32 1.0, %v1516_v8 }
 0x16e   : > { %v1520_v11 = vpop.eup %1519  ;;  %v1031_v38 = vmul.f32 %v1015_v57, %v976_v20  ;;  %v979_v39 = vmul.f32 0.5, %v931_v24  ;;  %v1047_v40 = vmul.f32 %v1518_v32, %v975_v0  ;;  %1539 = vtanh.f32 %v794_v10 }
 0x16f   : > { %v1522_v21 = vpop.eup %1521  ;;  %v974_v56 = vmul.f32 0.5, %v926_v47  ;;  %v929_v63 = vadd.f32 1.0, %v1520_v11  ;;  %v1135_v47 = vadd.f32 (!%p1299_p8), %v1770_v60, %v1759_v44 }
 0x170   : > { %v1524_v22 = vpop.eup %1523  ;;  %v1032_v31 = vmul.f32 %v1016_v13, %v979_v39  ;;  %v1063_v37 = vadd.f32 %v1047_v40, %v1031_v38  ;;  %v1048_v54 = vmul.f32 %v1522_v21, %v978_v33 }
 0x171   : > { %v1526_v26 = vpop.eup %1525  ;;  %v933_v43 = vadd.f32 1.0, %v1524_v22  ;;  %v977_v49 = vmul.f32 0.5, %v929_v63  ;;  %v1136_v22 = vadd.f32 (!%p1299_p8), %v1135_v47, %v1795_v30 }
 0x172   : > { %v1528_v52 = vpop.eup %1527  ;;  %v1916_v1 = vmul.f32 %v1526_v26, %v971_v23  ;;  %1541 = vtanh.f32 %v1063_v37  ;;  %1127 = vst [vmem:[#allocation3 + $0x60] sm:$0xff] %v1063_v37  ;;  %v1064_v51 = vadd.f32 %v1048_v54, %v1032_v31 }
 0x173   : > { %v1530_v25 = vpop.eup %1529  ;;  %v934_v46 = vadd.f32 1.0, %v1528_v52  ;;  %v981_v58 = vmul.f32 0.5, %v933_v43  ;;  %v1137_v37 = vadd.f32 (!%p1299_p8), %v1136_v22, %v1806_v45 }
 0x174   : > { %v1532_v19 = vpop.eup %1531  ;;  %1109 = vst [vmem:[#allocation2 + $0x50] sm:$0xff] %v1916_v1  ;;  %1543 = vtanh.f32 %v1064_v51  ;;  %1128 = vst [vmem:[#allocation3 + $0x68] sm:$0xff] %v1064_v51  ;;  %v932_v12 = vadd.f32 1.0, %v1530_v25  ;;  %v1149_v31 = vadd.f32 (!%p1299_p8), %v1148_v48, %v1916_v1 }
 0x175   : > { %v1534_v61 = vpop.eup %1533  ;;  %v1094_v41 = vmul.f32 %v1532_v19, %v974_v56  ;;  %v982_v34 = vmul.f32 0.5, %v934_v46  ;;  %1545 = vtanh.f32 %v839_v55  ;;  %v1138_v26 = vadd.f32 (!%p1299_p8), %v1137_v37, %v1840_v50 }
 0x176   : > { %v1536_v42 = vpop.eup %1535  ;;  %v936_v35 = vadd.f32 1.0, %v1534_v61  ;;  %1547 = vtanh.f32 %v842_v2  ;;  %v980_v20 = vmul.f32 0.5, %v932_v12 }
 0x177   : > { %1110 = vst [vmem:[#allocation2 + $0x58] sm:$0xff] %v1094_v41  ;;  %v1033_v4 = vmul.f32 %v1017_v15, %v982_v34  ;;  %v937_v5 = vadd.f32 1.0, %v1536_v42  ;;  %v1538_v7 = vpop.eup %1537  ;;  %v1150_v54 = vadd.f32 (!%p1299_p8), %v1149_v31, %v1094_v41  ;;  %v1139_v55 = vadd.f32 (!%p1299_p8), %v1138_v26, %v1860_v3 }
 0x178   : > { %v984_v9 = vmul.f32 0.5, %v936_v35  ;;  %v1049_v59 = vmul.f32 %v1538_v7, %v981_v58  ;;  %v1540_v14 = vpop.eup %1539 }
 0x179   : > { %v985_v0 = vmul.f32 0.5, %v937_v5  ;;  %v1140_v51 = vadd.f32 (!%p1299_p8), %v1139_v55, %v1879_v62 }
 0x17a   : > { %v1065_v17 = vadd.f32 %v1049_v59, %v1033_v4  ;;  %v1050_v57 = vmul.f32 %v1540_v14, %v984_v9 }
 0x17b   : > { %v1034_v16 = vmul.f32 %v1018_v27, %v985_v0  ;;  %v1141_v44 = vadd.f32 (!%p1299_p8), %v1140_v51, %v1887_v28 }
 0x17c   : > { %v1542_v18 = vpop.eup %1541  ;;  %1549 = vtanh.f32 %v1065_v17  ;;  %1129 = vst [vmem:[#allocation3 + $0x70] sm:$0xff] %v1065_v17 }
 0x17d   : > { %v1095_v8 = vmul.f32 %v1542_v18, %v977_v49  ;;  %v1066_v24 = vadd.f32 %v1050_v57, %v1034_v16  ;;  %v1142_v53 = vrot.slane (!%p1299_p8), %v1141_v44, 4 }
 0x17e   : > { %v1544_v29 = vpop.eup %1543 }
 0x17f   : > { %v1546_v10 = vpop.eup %1545  ;;  %1111 = vst [vmem:[#allocation2 + $0x60] sm:$0xff] %v1095_v8  ;;  %v1096_v32 = vmul.f32 %v1544_v29, %v980_v20  ;;  %1551 = vtanh.f32 %v1066_v24  ;;  %1130 = vst [vmem:[#allocation3 + $0x78] sm:$0xff] %v1066_v24  ;;  %v1151_v43 = vadd.f32 (!%p1299_p8), %v1150_v54, %v1095_v8  ;;  %v1143_v6 = vadd.f32 (!%p1299_p8), %v1142_v53, %v1141_v44 }
 0x180   : > { %v1548_v33 = vpop.eup %1547  ;;  %v935_v13 = vadd.f32 1.0, %v1546_v10 }
 0x181   : > { %1112 = vst [vmem:[#allocation2 + $0x68] sm:$0xff] %v1096_v32  ;;  %v938_v36 = vadd.f32 1.0, %v1548_v33  ;;  %v1152_v52 = vadd.f32 (!%p1299_p8), %v1151_v43, %v1096_v32  ;;  %v1144_v56 = vrot.slane (!%p1299_p8), %v1143_v6, 2 }
 0x182   : > { %v983_v11 = vmul.f32 0.5, %v935_v13 }
 0x183   : > { %v986_v40 = vmul.f32 0.5, %v938_v36  ;;  %v1145_v46 = vadd.f32 (!%p1299_p8), %v1144_v56, %v1143_v6 }
 0x185   : > { %v1146_v50 = vrot.slane (!%p1299_p8), %v1145_v46, 1 }
 0x186   : > { %v1550_v38 = vpop.eup %1549  ;;  %1134 = sbr.rel (%p1299_p8) target bundleno = 414 (0x19e), region = 36 }
 0x187   : > { %v1097_v39 = vmul.f32 %v1550_v38, %v983_v11  ;;  %v1147_v15 = vadd.f32 (!%p1299_p8), %v1146_v50, %v1145_v46 }
 0x189   : > { %v1552_v21 = vpop.eup %1551  ;;  %1113 = vst [vmem:[#allocation2 + $0x70] sm:$0xff] %v1097_v39  ;;  %v1153_v25 = vadd.f32 (!%p1299_p8), %v1152_v52, %v1097_v39  ;;  %v1162_v61 = vmul.f32 (!%p1299_p8), 0.015625, %v1147_v15 }
 0x18a   : > { %v1098_v23 = vmul.f32 %v1552_v21, %v986_v40 }
 0x18c   : > { %1114 = vst [vmem:[#allocation2 + $0x78] sm:$0xff] %v1098_v23  ;;  %v1154_v60 = vadd.f32 (!%p1299_p8), %v1153_v25, %v1098_v23 }
 0x18e   : > { %v1155_v30 = vrot.slane %v1154_v60, 4 }
 0x190   : > { %v1156_v1 = vadd.f32 %v1155_v30, %v1154_v60 }
 0x192   : > { %v1157_v45 = vrot.slane %v1156_v1, 2 }
 0x194   : > { %v1158_v2 = vadd.f32 %v1157_v45, %v1156_v1 }
 0x196   : > { %v1159_v19 = vrot.slane %v1158_v2, 1 }
 0x198   : > { %v1160_v3 = vadd.f32 %v1159_v19, %v1158_v2 }
 0x19a   : > { %v1163_v62 = vmul.f32 0.015625, %v1160_v3 }
 0x19c   : > { %v1167_v41 = vsel %vm1166_vm0, %v1163_v62, %v1162_v61 }
 0x19d   : > { %1169 = vst [vmem:[%s1652_s26] sm:$0x3] %v1167_v41 }
 0x19e PF: > { %s12_s13 = sadd.s32 1, %s1591_s13   ;;  %s1950_s9 = smov %s1583_s11 }
 0x19f   : > { %p9_p9 = scmp.ge.s32.totalorder %s12_s13, 10   ;;  %s1951_s10 = smov %s1587_s12 }
 0x1a0   : > { %s1952_s11 = smov %s1955_s14  ;;  %s1953_s12 = smov %s1959_s15 }
 0x1a1   :  { %11 = sbr.rel (!%p9_p9) target bundleno = 3 (0x3), region = 69 }

</bundles_post_ra>
